<compile_context>
chip_gen: v7x
topology: tpu7x:2x2x1
jax: 0.10.0
libtpu: 0.0.40
codegen_flags: <defaults>
</compile_context>

<pallas_src>
import functools
import math

import jax
import jax.numpy as jnp
from jax.experimental import pallas as pl
from jax.experimental.pallas import tpu as pltpu

BN_EPS = 1e-5
VMEM_LIMIT = 32 * 1024 * 1024  # safe on v5e/v6e (128 MiB) and v7x (64 MiB)


# ----------------------------- Pallas kernels ------------------------------ #

def _gemm_bias_act_kernel(x_ref, w_ref, b_ref, o_ref, *, relu):
    """One M-tile of the fused conv GEMM.
    x_ref: (TILE_M, K) bf16 im2col tile, w_ref: (K, Cout) bf16 BN-folded
    weights, b_ref: (1, Cout) f32 folded BN bias, o_ref: (TILE_M, Cout)."""
    y = jnp.dot(x_ref[...], w_ref[...],
                preferred_element_type=jnp.float32) + b_ref[...]
    if relu:
        y = jnp.maximum(y, 0.0)
    o_ref[...] = y.astype(o_ref.dtype)


def _conv_se_res_kernel(xt_ref, w_ref, b_ref, res_ref,
                        w1_ref, b1_ref, w2_ref, b2_ref, o_ref, *, inv_hw):
    """Fused conv2 + BN2 + SE gate + residual add + ReLU for one image.
    xt_ref: (1, HW, K) bf16 im2col of conv2 input; w_ref: (K, C) bf16;
    b_ref: (1, C) f32; res_ref: (1, HW, C) bf16; w1: (C, Cm) f32;
    b1: (1, Cm) f32; w2: (Cm, C) f32; b2: (1, C) f32; o_ref: (1, HW, C)."""
    # conv2 + folded BN (f32 accumulation on the MXU)
    y = jnp.dot(xt_ref[0], w_ref[...],
                preferred_element_type=jnp.float32) + b_ref[...]        # (HW, C)
    # SE squeeze: single reduction pass + precomputed 1/(H*W)
    pooled = jnp.sum(y, axis=0, keepdims=True) * inv_hw                 # (1, C)
    hid = jnp.dot(pooled, w1_ref[...],
                  preferred_element_type=jnp.float32) + b1_ref[...]
    hid = jnp.maximum(hid, 0.0)                                         # (1, Cm)
    gate = jnp.dot(hid, w2_ref[...],
                   preferred_element_type=jnp.float32) + b2_ref[...]
    gate = 1.0 / (1.0 + jnp.exp(-gate))                                 # sigmoid (EUP)
    out = y * gate + res_ref[0].astype(jnp.float32)
    o_ref[0] = jnp.maximum(out, 0.0).astype(o_ref.dtype)


def _head_kernel(x_ref, w_ref, b_ref, o_ref, *, inv_hw):
    """Global average pool + Linear. x_ref: (N, HW, C), w: (C, K), b: (1, K)."""
    x = x_ref[...].astype(jnp.float32)
    pooled = jnp.sum(x, axis=1) * inv_hw                                # (N, C)
    y = jnp.dot(pooled, w_ref[...],
                preferred_element_type=jnp.float32) + b_ref[...]
    o_ref[...] = y.astype(o_ref.dtype)


# ------------------------------- wrappers ---------------------------------- #

def _pick_tile_m(m, cap=512):
    """Largest M tile (multiple of 8) that divides M; whole M if it fits."""
    if m <= cap:
        return m
    for t in (512, 256, 128, 64, 32, 16, 8):
        if t <= cap and m % t == 0:
            return t
    return m


def _fold_bn(w, gamma, beta, mean, var):
    """Fold BN scale into the conv weights; return (bf16 weights, f32 bias)."""
    scale = gamma / jnp.sqrt(var + BN_EPS)                  # (Cout,)
    bias = (beta - mean * scale).astype(jnp.float32)        # (Cout,)
    wf = (w * scale).astype(jnp.bfloat16)                   # broadcast over Cout
    return wf, bias


def _im2col(x, kh, kw, pad, stride, ho, wo):
    """x: (N, H, W, Cin) -> (N, ho, wo, kh*kw*Cin), tap-major / channel-minor
    (matches w.reshape(kh*kw*Cin, Cout) ordering for HWIO weights).
    TODO(synk): replace with in-kernel tap construction to avoid the HBM blow-up."""
    xp = jnp.pad(x, ((0, 0), (pad, pad), (pad, pad), (0, 0)))
    taps = []
    for i in range(kh):
        for j in range(kw):
            taps.append(
                xp[:, i:i + stride * (ho - 1) + 1:stride,
                      j:j + stride * (wo - 1) + 1:stride, :])
    return jnp.concatenate(taps, axis=-1)


def conv_bn_act(x, w, gamma, beta, mean, var, stride=1, relu=True):
    """x: (N, H, W, Cin) NHWC bf16; w: (kh, kw, Cin, Cout) HWIO f32.
    Bias-free conv (pad = (k-1)//2) fused with BN (+ReLU) as one M-tiled GEMM
    with K = kh*kw*Cin."""
    kh, kw, cin, cout = w.shape
    pad = (kh - 1) // 2
    n, hh, ww, _ = x.shape
    ho = (hh + 2 * pad - kh) // stride + 1
    wo = (ww + 2 * pad - kw) // stride + 1
    m = n * ho * wo
    k = kh * kw * cin

    wf, bias = _fold_bn(w, gamma, beta, mean, var)
    xt = _im2col(x, kh, kw, pad, stride, ho, wo).reshape(m, k)  # bf16

    tile_m = _pick_tile_m(m)
    out = pl.pallas_call(
        functools.partial(_gemm_bias_act_kernel, relu=relu),
        grid=(m // tile_m,),
        in_specs=[
            pl.BlockSpec((tile_m, k), lambda i: (i, 0)),     # M-tiled activations
            pl.BlockSpec((k, cout), lambda i: (0, 0)),       # resident weights
            pl.BlockSpec((1, cout), lambda i: (0, 0)),       # resident bias
        ],
        out_specs=pl.BlockSpec((tile_m, cout), lambda i: (i, 0)),
        out_shape=jax.ShapeDtypeStruct((m, cout), jnp.bfloat16),
        compiler_params=pltpu.CompilerParams(
            dimension_semantics=("parallel",),
            vmem_limit_bytes=VMEM_LIMIT),
    )(xt, wf.reshape(k, cout), bias.reshape(1, cout))
    return out.reshape(n, ho, wo, cout)


def conv2_bn_se_residual(x, residual, w, gamma, beta, mean, var, w1, b1, w2, b2):
    """Fused conv2(3x3, stride 1) + BN2 + SE + residual + ReLU, one image per
    grid step.  x/residual: (N, H, W, C) bf16; w: (3, 3, C, C) HWIO f32."""
    kh, kw, cin, cout = w.shape
    n, h, wd, _ = x.shape
    hw = h * wd
    k = kh * kw * cin
    cm = w1.shape[1]

    wf, bias = _fold_bn(w, gamma, beta, mean, var)
    xt = _im2col(x, kh, kw, (kh - 1) // 2, 1, h, wd).reshape(n, hw, k)
    res2 = residual.reshape(n, hw, cout)

    out = pl.pallas_call(
        functools.partial(_conv_se_res_kernel, inv_hw=1.0 / float(hw)),
        grid=(n,),
        in_specs=[
            pl.BlockSpec((1, hw, k), lambda b: (b, 0, 0)),
            pl.BlockSpec((k, cout), lambda b: (0, 0)),
            pl.BlockSpec((1, cout), lambda b: (0, 0)),
            pl.BlockSpec((1, hw, cout), lambda b: (b, 0, 0)),
            pl.BlockSpec((cout, cm), lambda b: (0, 0)),
            pl.BlockSpec((1, cm), lambda b: (0, 0)),
            pl.BlockSpec((cm, cout), lambda b: (0, 0)),
            pl.BlockSpec((1, cout), lambda b: (0, 0)),
        ],
        out_specs=pl.BlockSpec((1, hw, cout), lambda b: (b, 0, 0)),
        out_shape=jax.ShapeDtypeStruct((n, hw, cout), jnp.bfloat16),
        compiler_params=pltpu.CompilerParams(
            dimension_semantics=("parallel",),
            vmem_limit_bytes=VMEM_LIMIT),
    )(xt, wf.reshape(k, cout), bias.reshape(1, cout), res2,
      w1.astype(jnp.float32), b1.reshape(1, cm).astype(jnp.float32),
      w2.astype(jnp.float32), b2.reshape(1, cout).astype(jnp.float32))
    return out.reshape(n, h, wd, cout)


def head(x_flat, fc_w, fc_b):
    """x_flat: (N, HW, C) -> global average pool + Linear -> (N, num_classes)."""
    n, hw, c = x_flat.shape
    kk = fc_w.shape[1]
    return pl.pallas_call(
        functools.partial(_head_kernel, inv_hw=1.0 / float(hw)),
        grid=(1,),
        in_specs=[
            pl.BlockSpec((n, hw, c), lambda i: (0, 0, 0)),
            pl.BlockSpec((c, kk), lambda i: (0, 0)),
            pl.BlockSpec((1, kk), lambda i: (0, 0)),
        ],
        out_specs=pl.BlockSpec((n, kk), lambda i: (0, 0)),
        out_shape=jax.ShapeDtypeStruct((n, kk), jnp.float32),
        compiler_params=pltpu.CompilerParams(vmem_limit_bytes=VMEM_LIMIT),
    )(x_flat, fc_w.astype(jnp.float32), fc_b.reshape(1, kk).astype(jnp.float32))


# --------------------------- model / parameters ---------------------------- #

def _kaiming(key, shape):
    # PyTorch kaiming_normal_ (fan_in, gain = sqrt(2)); shape HWIO.
    fan_in = shape[0] * shape[1] * shape[2]
    std = math.sqrt(2.0 / fan_in)
    return std * jax.random.normal(key, shape, jnp.float32)


def _bn_params(c):
    # module's initialize(): gamma = 1, beta = 0; fresh running stats.
    return dict(gamma=jnp.ones((c,), jnp.float32), beta=jnp.zeros((c,), jnp.float32),
                mean=jnp.zeros((c,), jnp.float32), var=jnp.ones((c,), jnp.float32))


def init_params(key, n_size=1, num_classes=10, reduction=4):
    keys = iter(jax.random.split(key, 256))
    p = {}
    p['conv1_w'] = _kaiming(next(keys), (3, 3, 3, 16))
    p['bn1'] = _bn_params(16)
    inplane = 16
    layers = []
    for planes, stride in ((16, 1), (32, 2), (64, 2)):
        blocks = []
        strides = [stride] + [1] * (n_size - 1)
        for s in strides:
            blk = {'stride': s}
            blk['conv1_w'] = _kaiming(next(keys), (3, 3, inplane, planes))
            blk['bn1'] = _bn_params(planes)
            blk['conv2_w'] = _kaiming(next(keys), (3, 3, planes, planes))
            blk['bn2'] = _bn_params(planes)
            cm = max(planes // reduction, 1)
            lim1 = 1.0 / math.sqrt(planes)
            blk['se_w1'] = jax.random.uniform(next(keys), (planes, cm), jnp.float32, -lim1, lim1)
            blk['se_b1'] = jax.random.uniform(next(keys), (cm,), jnp.float32, -lim1, lim1)
            lim2 = 1.0 / math.sqrt(cm)
            blk['se_w2'] = jax.random.uniform(next(keys), (cm, planes), jnp.float32, -lim2, lim2)
            blk['se_b2'] = jax.random.uniform(next(keys), (planes,), jnp.float32, -lim2, lim2)
            if inplane != planes:
                blk['down_w'] = _kaiming(next(keys), (1, 1, inplane, planes))
                blk['down_bn'] = _bn_params(planes)
            blocks.append(blk)
            inplane = planes
        layers.append(blocks)
    p['layers'] = layers
    lim = 1.0 / math.sqrt(64)
    p['fc_w'] = jax.random.uniform(next(keys), (64, num_classes), jnp.float32, -lim, lim)
    p['fc_b'] = jax.random.uniform(next(keys), (num_classes,), jnp.float32, -lim, lim)
    return p


def se_basic_block(x, blk):
    stride = blk['stride']
    if 'down_w' in blk:
        # TODO(synk): the 1x1 downsample input is the center tap of conv1's
        # im2col -- could be fused into the conv1 call to drop one more launch.
        residual = conv_bn_act(x, blk['down_w'], **blk['down_bn'], stride=stride, relu=False)
    else:
        residual = x
    out = conv_bn_act(x, blk['conv1_w'], **blk['bn1'], stride=stride, relu=True)
    out = conv2_bn_se_residual(out, residual, blk['conv2_w'], **blk['bn2'],
                               w1=blk['se_w1'], b1=blk['se_b1'],
                               w2=blk['se_w2'], b2=blk['se_b2'])
    return out


def cifar_se_resnet_forward(params, x_nchw):
    # PyTorch input is NCHW; convert once to the kernel layout (NHWC, bf16).
    x = jnp.transpose(x_nchw, (0, 2, 3, 1)).astype(jnp.bfloat16)
    x = conv_bn_act(x, params['conv1_w'], **params['bn1'], stride=1, relu=True)
    for layer in params['layers']:
        for blk in layer:
            x = se_basic_block(x, blk)
    n, h, w, c = x.shape
    return head(x.reshape(n, h * w, c), params['fc_w'], params['fc_b'])


# ---------------------------------- main ------------------------------------ #

if __name__ == "__main__":
    key = jax.random.PRNGKey(0)
    pkey, xkey = jax.random.split(key)
    # small CIFAR-like input: batch=2, channels=3, spatial=16x16 (NCHW)
    params = init_params(pkey, n_size=1, num_classes=10, reduction=4)
    x = jax.random.normal(xkey, (2, 3, 16, 16), jnp.float32)

    # Jit the whole forward (params closed over so strides stay static Python
    # ints) -> single XLA program, no per-layer dispatch overhead.
    fwd = jax.jit(lambda inp: cifar_se_resnet_forward(params, inp))
    out = fwd(x)
    jax.block_until_ready(out)
    assert out.shape == (2, 10) and out.dtype == jnp.float32
    print("KERNEL_OK")
</pallas_src>

<mosaic_0001>
module attributes {stable_mosaic.version = 11 : i64} {
  func.func @_gemm_bias_act_kernel(%arg0: i32, %arg1: memref<512x27xbf16, #tpu.memory_space<vmem>>, %arg2: memref<27x16xbf16, #tpu.memory_space<vmem>>, %arg3: memref<1x16xf32, #tpu.memory_space<vmem>>, %arg4: memref<512x16xbf16, #tpu.memory_space<vmem>>) attributes {dimension_semantics = [#tpu.dimension_semantics<parallel>], iteration_bounds = array<i64: 1>, scalar_prefetch = 0 : i64, scratch_operands = 0 : i64, tpu.core_type = #tpu.core_type<tc>, window_params = [{transform_indices = @transform_0, window_bounds = array<i64: 512, 27>}, {pipeline_mode = #tpu.pipeline_mode<synchronous>, transform_indices = @transform_1, window_bounds = array<i64: 27, 16>}, {pipeline_mode = #tpu.pipeline_mode<synchronous>, transform_indices = @transform_2, window_bounds = array<i64: 1, 16>}, {transform_indices = @transform_3, window_bounds = array<i64: 512, 16>}]} {
    %c0 = arith.constant 0 : index
    %c0_0 = arith.constant 0 : index
    %0 = vector.load %arg1[%c0, %c0_0] : memref<512x27xbf16, #tpu.memory_space<vmem>>, vector<512x27xbf16>
    %c0_1 = arith.constant 0 : index
    %c0_2 = arith.constant 0 : index
    %1 = vector.load %arg2[%c0_1, %c0_2] : memref<27x16xbf16, #tpu.memory_space<vmem>>, vector<27x16xbf16>
    %cst = arith.constant dense<0.000000e+00> : vector<512x16xf32>
    %2 = tpu.matmul %0, %1, %cst {dimension_numbers = #tpu.dot_dimension_numbers<[1], [0], [0], [1], [0, 0, 1, 1], [], []>} : vector<512x27xbf16>, vector<27x16xbf16>, vector<512x16xf32> -> vector<512x16xf32>
    %c0_3 = arith.constant 0 : index
    %c0_4 = arith.constant 0 : index
    %3 = vector.load %arg3[%c0_3, %c0_4] : memref<1x16xf32, #tpu.memory_space<vmem>>, vector<1x16xf32>
    %4 = vector.broadcast %3 : vector<1x16xf32> to vector<512x16xf32>
    %5 = arith.addf %2, %4 : vector<512x16xf32>
    %cst_5 = arith.constant 0.000000e+00 : f32
    %6 = vector.broadcast %cst_5 : f32 to vector<512x16xf32>
    %7 = arith.maximumf %5, %6 : vector<512x16xf32>
    %8 = arith.truncf %7 : vector<512x16xf32> to vector<512x16xbf16>
    %c0_6 = arith.constant 0 : index
    %c0_7 = arith.constant 0 : index
    %9 = vector.load %arg4[%c0_6, %c0_7] : memref<512x16xbf16, #tpu.memory_space<vmem>>, vector<512x16xbf16>
    tpu.vector_store %arg4[%c0_6, %c0_7], %8 {strides = array<i32>} : memref<512x16xbf16, #tpu.memory_space<vmem>>, vector<512x16xbf16>,
    return
  }
  func.func @transform_0(%arg0: i32) -> (i32, i32) {
    %c0_i32 = arith.constant 0 : i32
    %c0_i32_0 = arith.constant 0 : i32
    return %arg0, %c0_i32 : i32, i32
  }
  func.func @transform_1(%arg0: i32) -> (i32, i32) {
    %c0_i32 = arith.constant 0 : i32
    %c0_i32_0 = arith.constant 0 : i32
    %c0_i32_1 = arith.constant 0 : i32
    return %c0_i32, %c0_i32_0 : i32, i32
  }
  func.func @transform_2(%arg0: i32) -> (i32, i32) {
    %c0_i32 = arith.constant 0 : i32
    %c0_i32_0 = arith.constant 0 : i32
    %c0_i32_1 = arith.constant 0 : i32
    return %c0_i32, %c0_i32_0 : i32, i32
  }
  func.func @transform_3(%arg0: i32) -> (i32, i32) {
    %c0_i32 = arith.constant 0 : i32
    %c0_i32_0 = arith.constant 0 : i32
    return %arg0, %c0_i32 : i32, i32
  }
}

module attributes {stable_mosaic.version = 11 : i64} {
  func.func @_gemm_bias_act_kernel(%arg0: i32, %arg1: memref<512x144xbf16, #tpu.memory_space<vmem>>, %arg2: memref<144x16xbf16, #tpu.memory_space<vmem>>, %arg3: memref<1x16xf32, #tpu.memory_space<vmem>>, %arg4: memref<512x16xbf16, #tpu.memory_space<vmem>>) attributes {dimension_semantics = [#tpu.dimension_semantics<parallel>], iteration_bounds = array<i64: 1>, scalar_prefetch = 0 : i64, scratch_operands = 0 : i64, tpu.core_type = #tpu.core_type<tc>, window_params = [{transform_indices = @transform_0, window_bounds = array<i64: 512, 144>}, {pipeline_mode = #tpu.pipeline_mode<synchronous>, transform_indices = @transform_1, window_bounds = array<i64: 144, 16>}, {pipeline_mode = #tpu.pipeline_mode<synchronous>, transform_indices = @transform_2, window_bounds = array<i64: 1, 16>}, {transform_indices = @transform_3, window_bounds = array<i64: 512, 16>}]} {
    %c0 = arith.constant 0 : index
    %c0_0 = arith.constant 0 : index
    %0 = vector.load %arg1[%c0, %c0_0] : memref<512x144xbf16, #tpu.memory_space<vmem>>, vector<512x144xbf16>
    %c0_1 = arith.constant 0 : index
    %c0_2 = arith.constant 0 : index
    %1 = vector.load %arg2[%c0_1, %c0_2] : memref<144x16xbf16, #tpu.memory_space<vmem>>, vector<144x16xbf16>
    %cst = arith.constant dense<0.000000e+00> : vector<512x16xf32>
    %2 = tpu.matmul %0, %1, %cst {dimension_numbers = #tpu.dot_dimension_numbers<[1], [0], [0], [1], [0, 0, 1, 1], [], []>} : vector<512x144xbf16>, vector<144x16xbf16>, vector<512x16xf32> -> vector<512x16xf32>
    %c0_3 = arith.constant 0 : index
    %c0_4 = arith.constant 0 : index
    %3 = vector.load %arg3[%c0_3, %c0_4] : memref<1x16xf32, #tpu.memory_space<vmem>>, vector<1x16xf32>
    %4 = vector.broadcast %3 : vector<1x16xf32> to vector<512x16xf32>
    %5 = arith.addf %2, %4 : vector<512x16xf32>
    %cst_5 = arith.constant 0.000000e+00 : f32
    %6 = vector.broadcast %cst_5 : f32 to vector<512x16xf32>
    %7 = arith.maximumf %5, %6 : vector<512x16xf32>
    %8 = arith.truncf %7 : vector<512x16xf32> to vector<512x16xbf16>
    %c0_6 = arith.constant 0 : index
    %c0_7 = arith.constant 0 : index
    %9 = vector.load %arg4[%c0_6, %c0_7] : memref<512x16xbf16, #tpu.memory_space<vmem>>, vector<512x16xbf16>
    tpu.vector_store %arg4[%c0_6, %c0_7], %8 {strides = array<i32>} : memref<512x16xbf16, #tpu.memory_space<vmem>>, vector<512x16xbf16>,
    return
  }
  func.func @transform_0(%arg0: i32) -> (i32, i32) {
    %c0_i32 = arith.constant 0 : i32
    %c0_i32_0 = arith.constant 0 : i32
    return %arg0, %c0_i32 : i32, i32
  }
  func.func @transform_1(%arg0: i32) -> (i32, i32) {
    %c0_i32 = arith.constant 0 : i32
    %c0_i32_0 = arith.constant 0 : i32
    %c0_i32_1 = arith.constant 0 : i32
    return %c0_i32, %c0_i32_0 : i32, i32
  }
  func.func @transform_2(%arg0: i32) -> (i32, i32) {
    %c0_i32 = arith.constant 0 : i32
    %c0_i32_0 = arith.constant 0 : i32
    %c0_i32_1 = arith.constant 0 : i32
    return %c0_i32, %c0_i32_0 : i32, i32
  }
  func.func @transform_3(%arg0: i32) -> (i32, i32) {
    %c0_i32 = arith.constant 0 : i32
    %c0_i32_0 = arith.constant 0 : i32
    return %arg0, %c0_i32 : i32, i32
  }
}

module attributes {stable_mosaic.version = 11 : i64} {
  func.func @_conv_se_res_kernel(%arg0: i32, %arg1: memref<1x256x144xbf16, #tpu.memory_space<vmem>>, %arg2: memref<144x16xbf16, #tpu.memory_space<vmem>>, %arg3: memref<1x16xf32, #tpu.memory_space<vmem>>, %arg4: memref<1x256x16xbf16, #tpu.memory_space<vmem>>, %arg5: memref<16x4xf32, #tpu.memory_space<vmem>>, %arg6: memref<1x4xf32, #tpu.memory_space<vmem>>, %arg7: memref<4x16xf32, #tpu.memory_space<vmem>>, %arg8: memref<1x16xf32, #tpu.memory_space<vmem>>, %arg9: memref<1x256x16xbf16, #tpu.memory_space<vmem>>) attributes {dimension_semantics = [#tpu.dimension_semantics<parallel>], iteration_bounds = array<i64: 2>, scalar_prefetch = 0 : i64, scratch_operands = 0 : i64, tpu.core_type = #tpu.core_type<tc>, window_params = [{transform_indices = @transform_0, window_bounds = array<i64: 1, 256, 144>}, {pipeline_mode = #tpu.pipeline_mode<synchronous>, transform_indices = @transform_1, window_bounds = array<i64: 144, 16>}, {pipeline_mode = #tpu.pipeline_mode<synchronous>, transform_indices = @transform_2, window_bounds = array<i64: 1, 16>}, {transform_indices = @transform_3, window_bounds = array<i64: 1, 256, 16>}, {pipeline_mode = #tpu.pipeline_mode<synchronous>, transform_indices = @transform_4, window_bounds = array<i64: 16, 4>}, {pipeline_mode = #tpu.pipeline_mode<synchronous>, transform_indices = @transform_5, window_bounds = array<i64: 1, 4>}, {pipeline_mode = #tpu.pipeline_mode<synchronous>, transform_indices = @transform_6, window_bounds = array<i64: 4, 16>}, {pipeline_mode = #tpu.pipeline_mode<synchronous>, transform_indices = @transform_7, window_bounds = array<i64: 1, 16>}, {transform_indices = @transform_8, window_bounds = array<i64: 1, 256, 16>}]} {
    %c0 = arith.constant 0 : index
    %c0_0 = arith.constant 0 : index
    %c0_1 = arith.constant 0 : index
    %0 = vector.load %arg1[%c0, %c0_0, %c0_1] : memref<1x256x144xbf16, #tpu.memory_space<vmem>>, vector<1x256x144xbf16>
    %1 = vector.shape_cast %0 : vector<1x256x144xbf16> to vector<256x144xbf16>
    %c0_2 = arith.constant 0 : index
    %c0_3 = arith.constant 0 : index
    %2 = vector.load %arg2[%c0_2, %c0_3] : memref<144x16xbf16, #tpu.memory_space<vmem>>, vector<144x16xbf16>
    %cst = arith.constant dense<0.000000e+00> : vector<256x16xf32>
    %3 = tpu.matmul %1, %2, %cst {dimension_numbers = #tpu.dot_dimension_numbers<[1], [0], [0], [1], [0, 0, 1, 1], [], []>} : vector<256x144xbf16>, vector<144x16xbf16>, vector<256x16xf32> -> vector<256x16xf32>
    %c0_4 = arith.constant 0 : index
    %c0_5 = arith.constant 0 : index
    %4 = vector.load %arg3[%c0_4, %c0_5] : memref<1x16xf32, #tpu.memory_space<vmem>>, vector<1x16xf32>
    %5 = vector.broadcast %4 : vector<1x16xf32> to vector<256x16xf32>
    %6 = arith.addf %3, %5 : vector<256x16xf32>
    %cst_6 = arith.constant dense<0.000000e+00> : vector<16xf32>
    %7 = vector.multi_reduction <add>, %6, %cst_6 [0] : vector<256x16xf32> to vector<16xf32>
    %8 = vector.shape_cast %7 : vector<16xf32> to vector<1x16xf32>
    %cst_7 = arith.constant 3.906250e-03 : f32
    %9 = vector.broadcast %cst_7 : f32 to vector<1x16xf32>
    %10 = arith.mulf %8, %9 : vector<1x16xf32>
    %c0_8 = arith.constant 0 : index
    %c0_9 = arith.constant 0 : index
    %11 = vector.load %arg5[%c0_8, %c0_9] : memref<16x4xf32, #tpu.memory_space<vmem>>, vector<16x4xf32>
    %cst_10 = arith.constant dense<0.000000e+00> : vector<1x4xf32>
    %12 = tpu.matmul %10, %11, %cst_10 {dimension_numbers = #tpu.dot_dimension_numbers<[1], [0], [0], [1], [0, 0, 1, 1], [], []>} : vector<1x16xf32>, vector<16x4xf32>, vector<1x4xf32> -> vector<1x4xf32>
    %c0_11 = arith.constant 0 : index
    %c0_12 = arith.constant 0 : index
    %13 = vector.load %arg6[%c0_11, %c0_12] : memref<1x4xf32, #tpu.memory_space<vmem>>, vector<1x4xf32>
    %14 = arith.addf %12, %13 : vector<1x4xf32>
    %cst_13 = arith.constant 0.000000e+00 : f32
    %15 = vector.broadcast %cst_13 : f32 to vector<1x4xf32>
    %16 = arith.maximumf %14, %15 : vector<1x4xf32>
    %c0_14 = arith.constant 0 : index
    %c0_15 = arith.constant 0 : index
    %17 = vector.load %arg7[%c0_14, %c0_15] : memref<4x16xf32, #tpu.memory_space<vmem>>, vector<4x16xf32>
    %cst_16 = arith.constant dense<0.000000e+00> : vector<1x16xf32>
    %18 = tpu.matmul %16, %17, %cst_16 {dimension_numbers = #tpu.dot_dimension_numbers<[1], [0], [0], [1], [0, 0, 1, 1], [], []>} : vector<1x4xf32>, vector<4x16xf32>, vector<1x16xf32> -> vector<1x16xf32>
    %c0_17 = arith.constant 0 : index
    %c0_18 = arith.constant 0 : index
    %19 = vector.load %arg8[%c0_17, %c0_18] : memref<1x16xf32, #tpu.memory_space<vmem>>, vector<1x16xf32>
    %20 = arith.addf %18, %19 : vector<1x16xf32>
    %cst_19 = arith.constant 0.000000e+00 : f32
    %21 = vector.broadcast %cst_19 : f32 to vector<1x16xf32>
    %22 = arith.subf %21, %20 : vector<1x16xf32>
    %23 = math.exp %22 : vector<1x16xf32>
    %cst_20 = arith.constant 1.000000e+00 : f32
    %24 = vector.broadcast %cst_20 : f32 to vector<1x16xf32>
    %25 = arith.addf %24, %23 : vector<1x16xf32>
    %cst_21 = arith.constant 1.000000e+00 : f32
    %26 = vector.broadcast %cst_21 : f32 to vector<1x16xf32>
    %27 = arith.divf %26, %25 : vector<1x16xf32>
    %28 = vector.broadcast %27 : vector<1x16xf32> to vector<256x16xf32>
    %29 = arith.mulf %6, %28 : vector<256x16xf32>
    %c0_22 = arith.constant 0 : index
    %c0_23 = arith.constant 0 : index
    %c0_24 = arith.constant 0 : index
    %30 = vector.load %arg4[%c0_22, %c0_23, %c0_24] : memref<1x256x16xbf16, #tpu.memory_space<vmem>>, vector<1x256x16xbf16>
    %31 = vector.shape_cast %30 : vector<1x256x16xbf16> to vector<256x16xbf16>
    %32 = arith.extf %31 : vector<256x16xbf16> to vector<256x16xf32>
    %33 = arith.addf %29, %32 : vector<256x16xf32>
    %cst_25 = arith.constant 0.000000e+00 : f32
    %34 = vector.broadcast %cst_25 : f32 to vector<256x16xf32>
    %35 = arith.maximumf %33, %34 : vector<256x16xf32>
    %36 = arith.truncf %35 : vector<256x16xf32> to vector<256x16xbf16>
    %c0_26 = arith.constant 0 : index
    %c0_27 = arith.constant 0 : index
    %c0_28 = arith.constant 0 : index
    %37 = vector.load %arg9[%c0_26, %c0_27, %c0_28] : memref<1x256x16xbf16, #tpu.memory_space<vmem>>, vector<1x256x16xbf16>
    %38 = vector.shape_cast %37 : vector<1x256x16xbf16> to vector<256x16xbf16>
    %39 = vector.shape_cast %36 : vector<256x16xbf16> to vector<1x256x16xbf16>
    tpu.vector_store %arg9[%c0_26, %c0_27, %c0_28], %39 {strides = array<i32>} : memref<1x256x16xbf16, #tpu.memory_space<vmem>>, vector<1x256x16xbf16>,
    return
  }
  func.func @transform_0(%arg0: i32) -> (i32, i32, i32) {
    %c0_i32 = arith.constant 0 : i32
    %c0_i32_0 = arith.constant 0 : i32
    %c0_i32_1 = arith.constant 0 : i32
    return %arg0, %c0_i32, %c0_i32_0 : i32, i32, i32
  }
  func.func @transform_1(%arg0: i32) -> (i32, i32) {
    %c0_i32 = arith.constant 0 : i32
    %c0_i32_0 = arith.constant 0 : i32
    %c0_i32_1 = arith.constant 0 : i32
    return %c0_i32, %c0_i32_0 : i32, i32
  }
  func.func @transform_2(%arg0: i32) -> (i32, i32) {
    %c0_i32 = arith.constant 0 : i32
    %c0_i32_0 = arith.constant 0 : i32
    %c0_i32_1 = arith.constant 0 : i32
    return %c0_i32, %c0_i32_0 : i32, i32
  }
  func.func @transform_3(%arg0: i32) -> (i32, i32, i32) {
    %c0_i32 = arith.constant 0 : i32
    %c0_i32_0 = arith.constant 0 : i32
    %c0_i32_1 = arith.constant 0 : i32
    return %arg0, %c0_i32, %c0_i32_0 : i32, i32, i32
  }
  func.func @transform_4(%arg0: i32) -> (i32, i32) {
    %c0_i32 = arith.constant 0 : i32
    %c0_i32_0 = arith.constant 0 : i32
    %c0_i32_1 = arith.constant 0 : i32
    return %c0_i32, %c0_i32_0 : i32, i32
  }
  func.func @transform_5(%arg0: i32) -> (i32, i32) {
    %c0_i32 = arith.constant 0 : i32
    %c0_i32_0 = arith.constant 0 : i32
    %c0_i32_1 = arith.constant 0 : i32
    return %c0_i32, %c0_i32_0 : i32, i32
  }
  func.func @transform_6(%arg0: i32) -> (i32, i32) {
    %c0_i32 = arith.constant 0 : i32
    %c0_i32_0 = arith.constant 0 : i32
    %c0_i32_1 = arith.constant 0 : i32
    return %c0_i32, %c0_i32_0 : i32, i32
  }
  func.func @transform_7(%arg0: i32) -> (i32, i32) {
    %c0_i32 = arith.constant 0 : i32
    %c0_i32_0 = arith.constant 0 : i32
    %c0_i32_1 = arith.constant 0 : i32
    return %c0_i32, %c0_i32_0 : i32, i32
  }
  func.func @transform_8(%arg0: i32) -> (i32, i32, i32) {
    %c0_i32 = arith.constant 0 : i32
    %c0_i32_0 = arith.constant 0 : i32
    %c0_i32_1 = arith.constant 0 : i32
    return %arg0, %c0_i32, %c0_i32_0 : i32, i32, i32
  }
}

module attributes {stable_mosaic.version = 11 : i64} {
  func.func @_gemm_bias_act_kernel(%arg0: i32, %arg1: memref<128x144xbf16, #tpu.memory_space<vmem>>, %arg2: memref<144x32xbf16, #tpu.memory_space<vmem>>, %arg3: memref<1x32xf32, #tpu.memory_space<vmem>>, %arg4: memref<128x32xbf16, #tpu.memory_space<vmem>>) attributes {dimension_semantics = [#tpu.dimension_semantics<parallel>], iteration_bounds = array<i64: 1>, scalar_prefetch = 0 : i64, scratch_operands = 0 : i64, tpu.core_type = #tpu.core_type<tc>, window_params = [{transform_indices = @transform_0, window_bounds = array<i64: 128, 144>}, {pipeline_mode = #tpu.pipeline_mode<synchronous>, transform_indices = @transform_1, window_bounds = array<i64: 144, 32>}, {pipeline_mode = #tpu.pipeline_mode<synchronous>, transform_indices = @transform_2, window_bounds = array<i64: 1, 32>}, {transform_indices = @transform_3, window_bounds = array<i64: 128, 32>}]} {
    %c0 = arith.constant 0 : index
    %c0_0 = arith.constant 0 : index
    %0 = vector.load %arg1[%c0, %c0_0] : memref<128x144xbf16, #tpu.memory_space<vmem>>, vector<128x144xbf16>
    %c0_1 = arith.constant 0 : index
    %c0_2 = arith.constant 0 : index
    %1 = vector.load %arg2[%c0_1, %c0_2] : memref<144x32xbf16, #tpu.memory_space<vmem>>, vector<144x32xbf16>
    %cst = arith.constant dense<0.000000e+00> : vector<128x32xf32>
    %2 = tpu.matmul %0, %1, %cst {dimension_numbers = #tpu.dot_dimension_numbers<[1], [0], [0], [1], [0, 0, 1, 1], [], []>} : vector<128x144xbf16>, vector<144x32xbf16>, vector<128x32xf32> -> vector<128x32xf32>
    %c0_3 = arith.constant 0 : index
    %c0_4 = arith.constant 0 : index
    %3 = vector.load %arg3[%c0_3, %c0_4] : memref<1x32xf32, #tpu.memory_space<vmem>>, vector<1x32xf32>
    %4 = vector.broadcast %3 : vector<1x32xf32> to vector<128x32xf32>
    %5 = arith.addf %2, %4 : vector<128x32xf32>
    %cst_5 = arith.constant 0.000000e+00 : f32
    %6 = vector.broadcast %cst_5 : f32 to vector<128x32xf32>
    %7 = arith.maximumf %5, %6 : vector<128x32xf32>
    %8 = arith.truncf %7 : vector<128x32xf32> to vector<128x32xbf16>
    %c0_6 = arith.constant 0 : index
    %c0_7 = arith.constant 0 : index
    %9 = vector.load %arg4[%c0_6, %c0_7] : memref<128x32xbf16, #tpu.memory_space<vmem>>, vector<128x32xbf16>
    tpu.vector_store %arg4[%c0_6, %c0_7], %8 {strides = array<i32>} : memref<128x32xbf16, #tpu.memory_space<vmem>>, vector<128x32xbf16>,
    return
  }
  func.func @transform_0(%arg0: i32) -> (i32, i32) {
    %c0_i32 = arith.constant 0 : i32
    %c0_i32_0 = arith.constant 0 : i32
    return %arg0, %c0_i32 : i32, i32
  }
  func.func @transform_1(%arg0: i32) -> (i32, i32) {
    %c0_i32 = arith.constant 0 : i32
    %c0_i32_0 = arith.constant 0 : i32
    %c0_i32_1 = arith.constant 0 : i32
    return %c0_i32, %c0_i32_0 : i32, i32
  }
  func.func @transform_2(%arg0: i32) -> (i32, i32) {
    %c0_i32 = arith.constant 0 : i32
    %c0_i32_0 = arith.constant 0 : i32
    %c0_i32_1 = arith.constant 0 : i32
    return %c0_i32, %c0_i32_0 : i32, i32
  }
  func.func @transform_3(%arg0: i32) -> (i32, i32) {
    %c0_i32 = arith.constant 0 : i32
    %c0_i32_0 = arith.constant 0 : i32
    return %arg0, %c0_i32 : i32, i32
  }
}

module attributes {stable_mosaic.version = 11 : i64} {
  func.func @_gemm_bias_act_kernel(%arg0: i32, %arg1: memref<128x16xbf16, #tpu.memory_space<vmem>>, %arg2: memref<16x32xbf16, #tpu.memory_space<vmem>>, %arg3: memref<1x32xf32, #tpu.memory_space<vmem>>, %arg4: memref<128x32xbf16, #tpu.memory_space<vmem>>) attributes {dimension_semantics = [#tpu.dimension_semantics<parallel>], iteration_bounds = array<i64: 1>, scalar_prefetch = 0 : i64, scratch_operands = 0 : i64, tpu.core_type = #tpu.core_type<tc>, window_params = [{transform_indices = @transform_0, window_bounds = array<i64: 128, 16>}, {pipeline_mode = #tpu.pipeline_mode<synchronous>, transform_indices = @transform_1, window_bounds = array<i64: 16, 32>}, {pipeline_mode = #tpu.pipeline_mode<synchronous>, transform_indices = @transform_2, window_bounds = array<i64: 1, 32>}, {transform_indices = @transform_3, window_bounds = array<i64: 128, 32>}]} {
    %c0 = arith.constant 0 : index
    %c0_0 = arith.constant 0 : index
    %0 = vector.load %arg1[%c0, %c0_0] : memref<128x16xbf16, #tpu.memory_space<vmem>>, vector<128x16xbf16>
    %c0_1 = arith.constant 0 : index
    %c0_2 = arith.constant 0 : index
    %1 = vector.load %arg2[%c0_1, %c0_2] : memref<16x32xbf16, #tpu.memory_space<vmem>>, vector<16x32xbf16>
    %cst = arith.constant dense<0.000000e+00> : vector<128x32xf32>
    %2 = tpu.matmul %0, %1, %cst {dimension_numbers = #tpu.dot_dimension_numbers<[1], [0], [0], [1], [0, 0, 1, 1], [], []>} : vector<128x16xbf16>, vector<16x32xbf16>, vector<128x32xf32> -> vector<128x32xf32>
    %c0_3 = arith.constant 0 : index
    %c0_4 = arith.constant 0 : index
    %3 = vector.load %arg3[%c0_3, %c0_4] : memref<1x32xf32, #tpu.memory_space<vmem>>, vector<1x32xf32>
    %4 = vector.broadcast %3 : vector<1x32xf32> to vector<128x32xf32>
    %5 = arith.addf %2, %4 : vector<128x32xf32>
    %6 = arith.truncf %5 : vector<128x32xf32> to vector<128x32xbf16>
    %c0_5 = arith.constant 0 : index
    %c0_6 = arith.constant 0 : index
    %7 = vector.load %arg4[%c0_5, %c0_6] : memref<128x32xbf16, #tpu.memory_space<vmem>>, vector<128x32xbf16>
    tpu.vector_store %arg4[%c0_5, %c0_6], %6 {strides = array<i32>} : memref<128x32xbf16, #tpu.memory_space<vmem>>, vector<128x32xbf16>,
    return
  }
  func.func @transform_0(%arg0: i32) -> (i32, i32) {
    %c0_i32 = arith.constant 0 : i32
    %c0_i32_0 = arith.constant 0 : i32
    return %arg0, %c0_i32 : i32, i32
  }
  func.func @transform_1(%arg0: i32) -> (i32, i32) {
    %c0_i32 = arith.constant 0 : i32
    %c0_i32_0 = arith.constant 0 : i32
    %c0_i32_1 = arith.constant 0 : i32
    return %c0_i32, %c0_i32_0 : i32, i32
  }
  func.func @transform_2(%arg0: i32) -> (i32, i32) {
    %c0_i32 = arith.constant 0 : i32
    %c0_i32_0 = arith.constant 0 : i32
    %c0_i32_1 = arith.constant 0 : i32
    return %c0_i32, %c0_i32_0 : i32, i32
  }
  func.func @transform_3(%arg0: i32) -> (i32, i32) {
    %c0_i32 = arith.constant 0 : i32
    %c0_i32_0 = arith.constant 0 : i32
    return %arg0, %c0_i32 : i32, i32
  }
}

module attributes {stable_mosaic.version = 11 : i64} {
  func.func @_conv_se_res_kernel(%arg0: i32, %arg1: memref<1x64x288xbf16, #tpu.memory_space<vmem>>, %arg2: memref<288x32xbf16, #tpu.memory_space<vmem>>, %arg3: memref<1x32xf32, #tpu.memory_space<vmem>>, %arg4: memref<1x64x32xbf16, #tpu.memory_space<vmem>>, %arg5: memref<32x8xf32, #tpu.memory_space<vmem>>, %arg6: memref<1x8xf32, #tpu.memory_space<vmem>>, %arg7: memref<8x32xf32, #tpu.memory_space<vmem>>, %arg8: memref<1x32xf32, #tpu.memory_space<vmem>>, %arg9: memref<1x64x32xbf16, #tpu.memory_space<vmem>>) attributes {dimension_semantics = [#tpu.dimension_semantics<parallel>], iteration_bounds = array<i64: 2>, scalar_prefetch = 0 : i64, scratch_operands = 0 : i64, tpu.core_type = #tpu.core_type<tc>, window_params = [{transform_indices = @transform_0, window_bounds = array<i64: 1, 64, 288>}, {pipeline_mode = #tpu.pipeline_mode<synchronous>, transform_indices = @transform_1, window_bounds = array<i64: 288, 32>}, {pipeline_mode = #tpu.pipeline_mode<synchronous>, transform_indices = @transform_2, window_bounds = array<i64: 1, 32>}, {transform_indices = @transform_3, window_bounds = array<i64: 1, 64, 32>}, {pipeline_mode = #tpu.pipeline_mode<synchronous>, transform_indices = @transform_4, window_bounds = array<i64: 32, 8>}, {pipeline_mode = #tpu.pipeline_mode<synchronous>, transform_indices = @transform_5, window_bounds = array<i64: 1, 8>}, {pipeline_mode = #tpu.pipeline_mode<synchronous>, transform_indices = @transform_6, window_bounds = array<i64: 8, 32>}, {pipeline_mode = #tpu.pipeline_mode<synchronous>, transform_indices = @transform_7, window_bounds = array<i64: 1, 32>}, {transform_indices = @transform_8, window_bounds = array<i64: 1, 64, 32>}]} {
    %c0 = arith.constant 0 : index
    %c0_0 = arith.constant 0 : index
    %c0_1 = arith.constant 0 : index
    %0 = vector.load %arg1[%c0, %c0_0, %c0_1] : memref<1x64x288xbf16, #tpu.memory_space<vmem>>, vector<1x64x288xbf16>
    %1 = vector.shape_cast %0 : vector<1x64x288xbf16> to vector<64x288xbf16>
    %c0_2 = arith.constant 0 : index
    %c0_3 = arith.constant 0 : index
    %2 = vector.load %arg2[%c0_2, %c0_3] : memref<288x32xbf16, #tpu.memory_space<vmem>>, vector<288x32xbf16>
    %cst = arith.constant dense<0.000000e+00> : vector<64x32xf32>
    %3 = tpu.matmul %1, %2, %cst {dimension_numbers = #tpu.dot_dimension_numbers<[1], [0], [0], [1], [0, 0, 1, 1], [], []>} : vector<64x288xbf16>, vector<288x32xbf16>, vector<64x32xf32> -> vector<64x32xf32>
    %c0_4 = arith.constant 0 : index
    %c0_5 = arith.constant 0 : index
    %4 = vector.load %arg3[%c0_4, %c0_5] : memref<1x32xf32, #tpu.memory_space<vmem>>, vector<1x32xf32>
    %5 = vector.broadcast %4 : vector<1x32xf32> to vector<64x32xf32>
    %6 = arith.addf %3, %5 : vector<64x32xf32>
    %cst_6 = arith.constant dense<0.000000e+00> : vector<32xf32>
    %7 = vector.multi_reduction <add>, %6, %cst_6 [0] : vector<64x32xf32> to vector<32xf32>
    %8 = vector.shape_cast %7 : vector<32xf32> to vector<1x32xf32>
    %cst_7 = arith.constant 1.562500e-02 : f32
    %9 = vector.broadcast %cst_7 : f32 to vector<1x32xf32>
    %10 = arith.mulf %8, %9 : vector<1x32xf32>
    %c0_8 = arith.constant 0 : index
    %c0_9 = arith.constant 0 : index
    %11 = vector.load %arg5[%c0_8, %c0_9] : memref<32x8xf32, #tpu.memory_space<vmem>>, vector<32x8xf32>
    %cst_10 = arith.constant dense<0.000000e+00> : vector<1x8xf32>
    %12 = tpu.matmul %10, %11, %cst_10 {dimension_numbers = #tpu.dot_dimension_numbers<[1], [0], [0], [1], [0, 0, 1, 1], [], []>} : vector<1x32xf32>, vector<32x8xf32>, vector<1x8xf32> -> vector<1x8xf32>
    %c0_11 = arith.constant 0 : index
    %c0_12 = arith.constant 0 : index
    %13 = vector.load %arg6[%c0_11, %c0_12] : memref<1x8xf32, #tpu.memory_space<vmem>>, vector<1x8xf32>
    %14 = arith.addf %12, %13 : vector<1x8xf32>
    %cst_13 = arith.constant 0.000000e+00 : f32
    %15 = vector.broadcast %cst_13 : f32 to vector<1x8xf32>
    %16 = arith.maximumf %14, %15 : vector<1x8xf32>
    %c0_14 = arith.constant 0 : index
    %c0_15 = arith.constant 0 : index
    %17 = vector.load %arg7[%c0_14, %c0_15] : memref<8x32xf32, #tpu.memory_space<vmem>>, vector<8x32xf32>
    %cst_16 = arith.constant dense<0.000000e+00> : vector<1x32xf32>
    %18 = tpu.matmul %16, %17, %cst_16 {dimension_numbers = #tpu.dot_dimension_numbers<[1], [0], [0], [1], [0, 0, 1, 1], [], []>} : vector<1x8xf32>, vector<8x32xf32>, vector<1x32xf32> -> vector<1x32xf32>
    %c0_17 = arith.constant 0 : index
    %c0_18 = arith.constant 0 : index
    %19 = vector.load %arg8[%c0_17, %c0_18] : memref<1x32xf32, #tpu.memory_space<vmem>>, vector<1x32xf32>
    %20 = arith.addf %18, %19 : vector<1x32xf32>
    %cst_19 = arith.constant 0.000000e+00 : f32
    %21 = vector.broadcast %cst_19 : f32 to vector<1x32xf32>
    %22 = arith.subf %21, %20 : vector<1x32xf32>
    %23 = math.exp %22 : vector<1x32xf32>
    %cst_20 = arith.constant 1.000000e+00 : f32
    %24 = vector.broadcast %cst_20 : f32 to vector<1x32xf32>
    %25 = arith.addf %24, %23 : vector<1x32xf32>
    %cst_21 = arith.constant 1.000000e+00 : f32
    %26 = vector.broadcast %cst_21 : f32 to vector<1x32xf32>
    %27 = arith.divf %26, %25 : vector<1x32xf32>
    %28 = vector.broadcast %27 : vector<1x32xf32> to vector<64x32xf32>
    %29 = arith.mulf %6, %28 : vector<64x32xf32>
    %c0_22 = arith.constant 0 : index
    %c0_23 = arith.constant 0 : index
    %c0_24 = arith.constant 0 : index
    %30 = vector.load %arg4[%c0_22, %c0_23, %c0_24] : memref<1x64x32xbf16, #tpu.memory_space<vmem>>, vector<1x64x32xbf16>
    %31 = vector.shape_cast %30 : vector<1x64x32xbf16> to vector<64x32xbf16>
    %32 = arith.extf %31 : vector<64x32xbf16> to vector<64x32xf32>
    %33 = arith.addf %29, %32 : vector<64x32xf32>
    %cst_25 = arith.constant 0.000000e+00 : f32
    %34 = vector.broadcast %cst_25 : f32 to vector<64x32xf32>
    %35 = arith.maximumf %33, %34 : vector<64x32xf32>
    %36 = arith.truncf %35 : vector<64x32xf32> to vector<64x32xbf16>
    %c0_26 = arith.constant 0 : index
    %c0_27 = arith.constant 0 : index
    %c0_28 = arith.constant 0 : index
    %37 = vector.load %arg9[%c0_26, %c0_27, %c0_28] : memref<1x64x32xbf16, #tpu.memory_space<vmem>>, vector<1x64x32xbf16>
    %38 = vector.shape_cast %37 : vector<1x64x32xbf16> to vector<64x32xbf16>
    %39 = vector.shape_cast %36 : vector<64x32xbf16> to vector<1x64x32xbf16>
    tpu.vector_store %arg9[%c0_26, %c0_27, %c0_28], %39 {strides = array<i32>} : memref<1x64x32xbf16, #tpu.memory_space<vmem>>, vector<1x64x32xbf16>,
    return
  }
  func.func @transform_0(%arg0: i32) -> (i32, i32, i32) {
    %c0_i32 = arith.constant 0 : i32
    %c0_i32_0 = arith.constant 0 : i32
    %c0_i32_1 = arith.constant 0 : i32
    return %arg0, %c0_i32, %c0_i32_0 : i32, i32, i32
  }
  func.func @transform_1(%arg0: i32) -> (i32, i32) {
    %c0_i32 = arith.constant 0 : i32
    %c0_i32_0 = arith.constant 0 : i32
    %c0_i32_1 = arith.constant 0 : i32
    return %c0_i32, %c0_i32_0 : i32, i32
  }
  func.func @transform_2(%arg0: i32) -> (i32, i32) {
    %c0_i32 = arith.constant 0 : i32
    %c0_i32_0 = arith.constant 0 : i32
    %c0_i32_1 = arith.constant 0 : i32
    return %c0_i32, %c0_i32_0 : i32, i32
  }
  func.func @transform_3(%arg0: i32) -> (i32, i32, i32) {
    %c0_i32 = arith.constant 0 : i32
    %c0_i32_0 = arith.constant 0 : i32
    %c0_i32_1 = arith.constant 0 : i32
    return %arg0, %c0_i32, %c0_i32_0 : i32, i32, i32
  }
  func.func @transform_4(%arg0: i32) -> (i32, i32) {
    %c0_i32 = arith.constant 0 : i32
    %c0_i32_0 = arith.constant 0 : i32
    %c0_i32_1 = arith.constant 0 : i32
    return %c0_i32, %c0_i32_0 : i32, i32
  }
  func.func @transform_5(%arg0: i32) -> (i32, i32) {
    %c0_i32 = arith.constant 0 : i32
    %c0_i32_0 = arith.constant 0 : i32
    %c0_i32_1 = arith.constant 0 : i32
    return %c0_i32, %c0_i32_0 : i32, i32
  }
  func.func @transform_6(%arg0: i32) -> (i32, i32) {
    %c0_i32 = arith.constant 0 : i32
    %c0_i32_0 = arith.constant 0 : i32
    %c0_i32_1 = arith.constant 0 : i32
    return %c0_i32, %c0_i32_0 : i32, i32
  }
  func.func @transform_7(%arg0: i32) -> (i32, i32) {
    %c0_i32 = arith.constant 0 : i32
    %c0_i32_0 = arith.constant 0 : i32
    %c0_i32_1 = arith.constant 0 : i32
    return %c0_i32, %c0_i32_0 : i32, i32
  }
  func.func @transform_8(%arg0: i32) -> (i32, i32, i32) {
    %c0_i32 = arith.constant 0 : i32
    %c0_i32_0 = arith.constant 0 : i32
    %c0_i32_1 = arith.constant 0 : i32
    return %arg0, %c0_i32, %c0_i32_0 : i32, i32, i32
  }
}

module attributes {stable_mosaic.version = 11 : i64} {
  func.func @_gemm_bias_act_kernel(%arg0: i32, %arg1: memref<32x288xbf16, #tpu.memory_space<vmem>>, %arg2: memref<288x64xbf16, #tpu.memory_space<vmem>>, %arg3: memref<1x64xf32, #tpu.memory_space<vmem>>, %arg4: memref<32x64xbf16, #tpu.memory_space<vmem>>) attributes {dimension_semantics = [#tpu.dimension_semantics<parallel>], iteration_bounds = array<i64: 1>, scalar_prefetch = 0 : i64, scratch_operands = 0 : i64, tpu.core_type = #tpu.core_type<tc>, window_params = [{transform_indices = @transform_0, window_bounds = array<i64: 32, 288>}, {pipeline_mode = #tpu.pipeline_mode<synchronous>, transform_indices = @transform_1, window_bounds = array<i64: 288, 64>}, {pipeline_mode = #tpu.pipeline_mode<synchronous>, transform_indices = @transform_2, window_bounds = array<i64: 1, 64>}, {transform_indices = @transform_3, window_bounds = array<i64: 32, 64>}]} {
    %c0 = arith.constant 0 : index
    %c0_0 = arith.constant 0 : index
    %0 = vector.load %arg1[%c0, %c0_0] : memref<32x288xbf16, #tpu.memory_space<vmem>>, vector<32x288xbf16>
    %c0_1 = arith.constant 0 : index
    %c0_2 = arith.constant 0 : index
    %1 = vector.load %arg2[%c0_1, %c0_2] : memref<288x64xbf16, #tpu.memory_space<vmem>>, vector<288x64xbf16>
    %cst = arith.constant dense<0.000000e+00> : vector<32x64xf32>
    %2 = tpu.matmul %0, %1, %cst {dimension_numbers = #tpu.dot_dimension_numbers<[1], [0], [0], [1], [0, 0, 1, 1], [], []>} : vector<32x288xbf16>, vector<288x64xbf16>, vector<32x64xf32> -> vector<32x64xf32>
    %c0_3 = arith.constant 0 : index
    %c0_4 = arith.constant 0 : index
    %3 = vector.load %arg3[%c0_3, %c0_4] : memref<1x64xf32, #tpu.memory_space<vmem>>, vector<1x64xf32>
    %4 = vector.broadcast %3 : vector<1x64xf32> to vector<32x64xf32>
    %5 = arith.addf %2, %4 : vector<32x64xf32>
    %cst_5 = arith.constant 0.000000e+00 : f32
    %6 = vector.broadcast %cst_5 : f32 to vector<32x64xf32>
    %7 = arith.maximumf %5, %6 : vector<32x64xf32>
    %8 = arith.truncf %7 : vector<32x64xf32> to vector<32x64xbf16>
    %c0_6 = arith.constant 0 : index
    %c0_7 = arith.constant 0 : index
    %9 = vector.load %arg4[%c0_6, %c0_7] : memref<32x64xbf16, #tpu.memory_space<vmem>>, vector<32x64xbf16>
    tpu.vector_store %arg4[%c0_6, %c0_7], %8 {strides = array<i32>} : memref<32x64xbf16, #tpu.memory_space<vmem>>, vector<32x64xbf16>,
    return
  }
  func.func @transform_0(%arg0: i32) -> (i32, i32) {
    %c0_i32 = arith.constant 0 : i32
    %c0_i32_0 = arith.constant 0 : i32
    return %arg0, %c0_i32 : i32, i32
  }
  func.func @transform_1(%arg0: i32) -> (i32, i32) {
    %c0_i32 = arith.constant 0 : i32
    %c0_i32_0 = arith.constant 0 : i32
    %c0_i32_1 = arith.constant 0 : i32
    return %c0_i32, %c0_i32_0 : i32, i32
  }
  func.func @transform_2(%arg0: i32) -> (i32, i32) {
    %c0_i32 = arith.constant 0 : i32
    %c0_i32_0 = arith.constant 0 : i32
    %c0_i32_1 = arith.constant 0 : i32
    return %c0_i32, %c0_i32_0 : i32, i32
  }
  func.func @transform_3(%arg0: i32) -> (i32, i32) {
    %c0_i32 = arith.constant 0 : i32
    %c0_i32_0 = arith.constant 0 : i32
    return %arg0, %c0_i32 : i32, i32
  }
}

module attributes {stable_mosaic.version = 11 : i64} {
  func.func @_gemm_bias_act_kernel(%arg0: i32, %arg1: memref<32x32xbf16, #tpu.memory_space<vmem>>, %arg2: memref<32x64xbf16, #tpu.memory_space<vmem>>, %arg3: memref<1x64xf32, #tpu.memory_space<vmem>>, %arg4: memref<32x64xbf16, #tpu.memory_space<vmem>>) attributes {dimension_semantics = [#tpu.dimension_semantics<parallel>], iteration_bounds = array<i64: 1>, scalar_prefetch = 0 : i64, scratch_operands = 0 : i64, tpu.core_type = #tpu.core_type<tc>, window_params = [{transform_indices = @transform_0, window_bounds = array<i64: 32, 32>}, {pipeline_mode = #tpu.pipeline_mode<synchronous>, transform_indices = @transform_1, window_bounds = array<i64: 32, 64>}, {pipeline_mode = #tpu.pipeline_mode<synchronous>, transform_indices = @transform_2, window_bounds = array<i64: 1, 64>}, {transform_indices = @transform_3, window_bounds = array<i64: 32, 64>}]} {
    %c0 = arith.constant 0 : index
    %c0_0 = arith.constant 0 : index
    %0 = vector.load %arg1[%c0, %c0_0] : memref<32x32xbf16, #tpu.memory_space<vmem>>, vector<32x32xbf16>
    %c0_1 = arith.constant 0 : index
    %c0_2 = arith.constant 0 : index
    %1 = vector.load %arg2[%c0_1, %c0_2] : memref<32x64xbf16, #tpu.memory_space<vmem>>, vector<32x64xbf16>
    %cst = arith.constant dense<0.000000e+00> : vector<32x64xf32>
    %2 = tpu.matmul %0, %1, %cst {dimension_numbers = #tpu.dot_dimension_numbers<[1], [0], [0], [1], [0, 0, 1, 1], [], []>} : vector<32x32xbf16>, vector<32x64xbf16>, vector<32x64xf32> -> vector<32x64xf32>
    %c0_3 = arith.constant 0 : index
    %c0_4 = arith.constant 0 : index
    %3 = vector.load %arg3[%c0_3, %c0_4] : memref<1x64xf32, #tpu.memory_space<vmem>>, vector<1x64xf32>
    %4 = vector.broadcast %3 : vector<1x64xf32> to vector<32x64xf32>
    %5 = arith.addf %2, %4 : vector<32x64xf32>
    %6 = arith.truncf %5 : vector<32x64xf32> to vector<32x64xbf16>
    %c0_5 = arith.constant 0 : index
    %c0_6 = arith.constant 0 : index
    %7 = vector.load %arg4[%c0_5, %c0_6] : memref<32x64xbf16, #tpu.memory_space<vmem>>, vector<32x64xbf16>
    tpu.vector_store %arg4[%c0_5, %c0_6], %6 {strides = array<i32>} : memref<32x64xbf16, #tpu.memory_space<vmem>>, vector<32x64xbf16>,
    return
  }
  func.func @transform_0(%arg0: i32) -> (i32, i32) {
    %c0_i32 = arith.constant 0 : i32
    %c0_i32_0 = arith.constant 0 : i32
    return %arg0, %c0_i32 : i32, i32
  }
  func.func @transform_1(%arg0: i32) -> (i32, i32) {
    %c0_i32 = arith.constant 0 : i32
    %c0_i32_0 = arith.constant 0 : i32
    %c0_i32_1 = arith.constant 0 : i32
    return %c0_i32, %c0_i32_0 : i32, i32
  }
  func.func @transform_2(%arg0: i32) -> (i32, i32) {
    %c0_i32 = arith.constant 0 : i32
    %c0_i32_0 = arith.constant 0 : i32
    %c0_i32_1 = arith.constant 0 : i32
    return %c0_i32, %c0_i32_0 : i32, i32
  }
  func.func @transform_3(%arg0: i32) -> (i32, i32) {
    %c0_i32 = arith.constant 0 : i32
    %c0_i32_0 = arith.constant 0 : i32
    return %arg0, %c0_i32 : i32, i32
  }
}

module attributes {stable_mosaic.version = 11 : i64} {
  func.func @_head_kernel(%arg0: i32, %arg1: memref<2x16x64xbf16, #tpu.memory_space<vmem>>, %arg2: memref<64x10xf32, #tpu.memory_space<vmem>>, %arg3: memref<1x10xf32, #tpu.memory_space<vmem>>, %arg4: memref<2x10xf32, #tpu.memory_space<vmem>>) attributes {dimension_semantics = [#tpu.dimension_semantics<arbitrary>], iteration_bounds = array<i64: 1>, scalar_prefetch = 0 : i64, scratch_operands = 0 : i64, tpu.core_type = #tpu.core_type<tc>, window_params = [{pipeline_mode = #tpu.pipeline_mode<synchronous>, transform_indices = @transform_0, window_bounds = array<i64: 2, 16, 64>}, {pipeline_mode = #tpu.pipeline_mode<synchronous>, transform_indices = @transform_1, window_bounds = array<i64: 64, 10>}, {pipeline_mode = #tpu.pipeline_mode<synchronous>, transform_indices = @transform_2, window_bounds = array<i64: 1, 10>}, {pipeline_mode = #tpu.pipeline_mode<synchronous>, transform_indices = @transform_3, window_bounds = array<i64: 2, 10>}]} {
    %c0 = arith.constant 0 : index
    %c0_0 = arith.constant 0 : index
    %c0_1 = arith.constant 0 : index
    %0 = vector.load %arg1[%c0, %c0_0, %c0_1] : memref<2x16x64xbf16, #tpu.memory_space<vmem>>, vector<2x16x64xbf16>
    %1 = arith.extf %0 : vector<2x16x64xbf16> to vector<2x16x64xf32>
    %cst = arith.constant dense<0.000000e+00> : vector<2x64xf32>
    %2 = vector.multi_reduction <add>, %1, %cst [1] : vector<2x16x64xf32> to vector<2x64xf32>
    %cst_2 = arith.constant 6.250000e-02 : f32
    %3 = vector.broadcast %cst_2 : f32 to vector<2x64xf32>
    %4 = arith.mulf %2, %3 : vector<2x64xf32>
    %c0_3 = arith.constant 0 : index
    %c0_4 = arith.constant 0 : index
    %5 = vector.load %arg2[%c0_3, %c0_4] : memref<64x10xf32, #tpu.memory_space<vmem>>, vector<64x10xf32>
    %cst_5 = arith.constant dense<0.000000e+00> : vector<2x10xf32>
    %6 = tpu.matmul %4, %5, %cst_5 {dimension_numbers = #tpu.dot_dimension_numbers<[1], [0], [0], [1], [0, 0, 1, 1], [], []>} : vector<2x64xf32>, vector<64x10xf32>, vector<2x10xf32> -> vector<2x10xf32>
    %c0_6 = arith.constant 0 : index
    %c0_7 = arith.constant 0 : index
    %7 = vector.load %arg3[%c0_6, %c0_7] : memref<1x10xf32, #tpu.memory_space<vmem>>, vector<1x10xf32>
    %8 = vector.broadcast %7 : vector<1x10xf32> to vector<2x10xf32>
    %9 = arith.addf %6, %8 : vector<2x10xf32>
    %c0_8 = arith.constant 0 : index
    %c0_9 = arith.constant 0 : index
    %10 = vector.load %arg4[%c0_8, %c0_9] : memref<2x10xf32, #tpu.memory_space<vmem>>, vector<2x10xf32>
    tpu.vector_store %arg4[%c0_8, %c0_9], %9 {strides = array<i32>} : memref<2x10xf32, #tpu.memory_space<vmem>>, vector<2x10xf32>,
    return
  }
  func.func @transform_0(%arg0: i32) -> (i32, i32, i32) {
    %c0_i32 = arith.constant 0 : i32
    %c0_i32_0 = arith.constant 0 : i32
    %c0_i32_1 = arith.constant 0 : i32
    %c0_i32_2 = arith.constant 0 : i32
    return %c0_i32, %c0_i32_0, %c0_i32_1 : i32, i32, i32
  }
  func.func @transform_1(%arg0: i32) -> (i32, i32) {
    %c0_i32 = arith.constant 0 : i32
    %c0_i32_0 = arith.constant 0 : i32
    %c0_i32_1 = arith.constant 0 : i32
    return %c0_i32, %c0_i32_0 : i32, i32
  }
  func.func @transform_2(%arg0: i32) -> (i32, i32) {
    %c0_i32 = arith.constant 0 : i32
    %c0_i32_0 = arith.constant 0 : i32
    %c0_i32_1 = arith.constant 0 : i32
    return %c0_i32, %c0_i32_0 : i32, i32
  }
  func.func @transform_3(%arg0: i32) -> (i32, i32) {
    %c0_i32 = arith.constant 0 : i32
    %c0_i32_0 = arith.constant 0 : i32
    %c0_i32_1 = arith.constant 0 : i32
    return %c0_i32, %c0_i32_0 : i32, i32
  }
}

module attributes {stable_mosaic.version = 11 : i64} {
  func.func @_conv_se_res_kernel(%arg0: i32, %arg1: memref<1x16x576xbf16, #tpu.memory_space<vmem>>, %arg2: memref<576x64xbf16, #tpu.memory_space<vmem>>, %arg3: memref<1x64xf32, #tpu.memory_space<vmem>>, %arg4: memref<1x16x64xbf16, #tpu.memory_space<vmem>>, %arg5: memref<64x16xf32, #tpu.memory_space<vmem>>, %arg6: memref<1x16xf32, #tpu.memory_space<vmem>>, %arg7: memref<16x64xf32, #tpu.memory_space<vmem>>, %arg8: memref<1x64xf32, #tpu.memory_space<vmem>>, %arg9: memref<1x16x64xbf16, #tpu.memory_space<vmem>>) attributes {dimension_semantics = [#tpu.dimension_semantics<parallel>], iteration_bounds = array<i64: 2>, scalar_prefetch = 0 : i64, scratch_operands = 0 : i64, tpu.core_type = #tpu.core_type<tc>, window_params = [{transform_indices = @transform_0, window_bounds = array<i64: 1, 16, 576>}, {pipeline_mode = #tpu.pipeline_mode<synchronous>, transform_indices = @transform_1, window_bounds = array<i64: 576, 64>}, {pipeline_mode = #tpu.pipeline_mode<synchronous>, transform_indices = @transform_2, window_bounds = array<i64: 1, 64>}, {transform_indices = @transform_3, window_bounds = array<i64: 1, 16, 64>}, {pipeline_mode = #tpu.pipeline_mode<synchronous>, transform_indices = @transform_4, window_bounds = array<i64: 64, 16>}, {pipeline_mode = #tpu.pipeline_mode<synchronous>, transform_indices = @transform_5, window_bounds = array<i64: 1, 16>}, {pipeline_mode = #tpu.pipeline_mode<synchronous>, transform_indices = @transform_6, window_bounds = array<i64: 16, 64>}, {pipeline_mode = #tpu.pipeline_mode<synchronous>, transform_indices = @transform_7, window_bounds = array<i64: 1, 64>}, {transform_indices = @transform_8, window_bounds = array<i64: 1, 16, 64>}]} {
    %c0 = arith.constant 0 : index
    %c0_0 = arith.constant 0 : index
    %c0_1 = arith.constant 0 : index
    %0 = vector.load %arg1[%c0, %c0_0, %c0_1] : memref<1x16x576xbf16, #tpu.memory_space<vmem>>, vector<1x16x576xbf16>
    %1 = vector.shape_cast %0 : vector<1x16x576xbf16> to vector<16x576xbf16>
    %c0_2 = arith.constant 0 : index
    %c0_3 = arith.constant 0 : index
    %2 = vector.load %arg2[%c0_2, %c0_3] : memref<576x64xbf16, #tpu.memory_space<vmem>>, vector<576x64xbf16>
    %cst = arith.constant dense<0.000000e+00> : vector<16x64xf32>
    %3 = tpu.matmul %1, %2, %cst {dimension_numbers = #tpu.dot_dimension_numbers<[1], [0], [0], [1], [0, 0, 1, 1], [], []>} : vector<16x576xbf16>, vector<576x64xbf16>, vector<16x64xf32> -> vector<16x64xf32>
    %c0_4 = arith.constant 0 : index
    %c0_5 = arith.constant 0 : index
    %4 = vector.load %arg3[%c0_4, %c0_5] : memref<1x64xf32, #tpu.memory_space<vmem>>, vector<1x64xf32>
    %5 = vector.broadcast %4 : vector<1x64xf32> to vector<16x64xf32>
    %6 = arith.addf %3, %5 : vector<16x64xf32>
    %cst_6 = arith.constant dense<0.000000e+00> : vector<64xf32>
    %7 = vector.multi_reduction <add>, %6, %cst_6 [0] : vector<16x64xf32> to vector<64xf32>
    %8 = vector.shape_cast %7 : vector<64xf32> to vector<1x64xf32>
    %cst_7 = arith.constant 6.250000e-02 : f32
    %9 = vector.broadcast %cst_7 : f32 to vector<1x64xf32>
    %10 = arith.mulf %8, %9 : vector<1x64xf32>
    %c0_8 = arith.constant 0 : index
    %c0_9 = arith.constant 0 : index
    %11 = vector.load %arg5[%c0_8, %c0_9] : memref<64x16xf32, #tpu.memory_space<vmem>>, vector<64x16xf32>
    %cst_10 = arith.constant dense<0.000000e+00> : vector<1x16xf32>
    %12 = tpu.matmul %10, %11, %cst_10 {dimension_numbers = #tpu.dot_dimension_numbers<[1], [0], [0], [1], [0, 0, 1, 1], [], []>} : vector<1x64xf32>, vector<64x16xf32>, vector<1x16xf32> -> vector<1x16xf32>
    %c0_11 = arith.constant 0 : index
    %c0_12 = arith.constant 0 : index
    %13 = vector.load %arg6[%c0_11, %c0_12] : memref<1x16xf32, #tpu.memory_space<vmem>>, vector<1x16xf32>
    %14 = arith.addf %12, %13 : vector<1x16xf32>
    %cst_13 = arith.constant 0.000000e+00 : f32
    %15 = vector.broadcast %cst_13 : f32 to vector<1x16xf32>
    %16 = arith.maximumf %14, %15 : vector<1x16xf32>
    %c0_14 = arith.constant 0 : index
    %c0_15 = arith.constant 0 : index
    %17 = vector.load %arg7[%c0_14, %c0_15] : memref<16x64xf32, #tpu.memory_space<vmem>>, vector<16x64xf32>
    %cst_16 = arith.constant dense<0.000000e+00> : vector<1x64xf32>
    %18 = tpu.matmul %16, %17, %cst_16 {dimension_numbers = #tpu.dot_dimension_numbers<[1], [0], [0], [1], [0, 0, 1, 1], [], []>} : vector<1x16xf32>, vector<16x64xf32>, vector<1x64xf32> -> vector<1x64xf32>
    %c0_17 = arith.constant 0 : index
    %c0_18 = arith.constant 0 : index
    %19 = vector.load %arg8[%c0_17, %c0_18] : memref<1x64xf32, #tpu.memory_space<vmem>>, vector<1x64xf32>
    %20 = arith.addf %18, %19 : vector<1x64xf32>
    %cst_19 = arith.constant 0.000000e+00 : f32
    %21 = vector.broadcast %cst_19 : f32 to vector<1x64xf32>
    %22 = arith.subf %21, %20 : vector<1x64xf32>
    %23 = math.exp %22 : vector<1x64xf32>
    %cst_20 = arith.constant 1.000000e+00 : f32
    %24 = vector.broadcast %cst_20 : f32 to vector<1x64xf32>
    %25 = arith.addf %24, %23 : vector<1x64xf32>
    %cst_21 = arith.constant 1.000000e+00 : f32
    %26 = vector.broadcast %cst_21 : f32 to vector<1x64xf32>
    %27 = arith.divf %26, %25 : vector<1x64xf32>
    %28 = vector.broadcast %27 : vector<1x64xf32> to vector<16x64xf32>
    %29 = arith.mulf %6, %28 : vector<16x64xf32>
    %c0_22 = arith.constant 0 : index
    %c0_23 = arith.constant 0 : index
    %c0_24 = arith.constant 0 : index
    %30 = vector.load %arg4[%c0_22, %c0_23, %c0_24] : memref<1x16x64xbf16, #tpu.memory_space<vmem>>, vector<1x16x64xbf16>
    %31 = vector.shape_cast %30 : vector<1x16x64xbf16> to vector<16x64xbf16>
    %32 = arith.extf %31 : vector<16x64xbf16> to vector<16x64xf32>
    %33 = arith.addf %29, %32 : vector<16x64xf32>
    %cst_25 = arith.constant 0.000000e+00 : f32
    %34 = vector.broadcast %cst_25 : f32 to vector<16x64xf32>
    %35 = arith.maximumf %33, %34 : vector<16x64xf32>
    %36 = arith.truncf %35 : vector<16x64xf32> to vector<16x64xbf16>
    %c0_26 = arith.constant 0 : index
    %c0_27 = arith.constant 0 : index
    %c0_28 = arith.constant 0 : index
    %37 = vector.load %arg9[%c0_26, %c0_27, %c0_28] : memref<1x16x64xbf16, #tpu.memory_space<vmem>>, vector<1x16x64xbf16>
    %38 = vector.shape_cast %37 : vector<1x16x64xbf16> to vector<16x64xbf16>
    %39 = vector.shape_cast %36 : vector<16x64xbf16> to vector<1x16x64xbf16>
    tpu.vector_store %arg9[%c0_26, %c0_27, %c0_28], %39 {strides = array<i32>} : memref<1x16x64xbf16, #tpu.memory_space<vmem>>, vector<1x16x64xbf16>,
    return
  }
  func.func @transform_0(%arg0: i32) -> (i32, i32, i32) {
    %c0_i32 = arith.constant 0 : i32
    %c0_i32_0 = arith.constant 0 : i32
    %c0_i32_1 = arith.constant 0 : i32
    return %arg0, %c0_i32, %c0_i32_0 : i32, i32, i32
  }
  func.func @transform_1(%arg0: i32) -> (i32, i32) {
    %c0_i32 = arith.constant 0 : i32
    %c0_i32_0 = arith.constant 0 : i32
    %c0_i32_1 = arith.constant 0 : i32
    return %c0_i32, %c0_i32_0 : i32, i32
  }
  func.func @transform_2(%arg0: i32) -> (i32, i32) {
    %c0_i32 = arith.constant 0 : i32
    %c0_i32_0 = arith.constant 0 : i32
    %c0_i32_1 = arith.constant 0 : i32
    return %c0_i32, %c0_i32_0 : i32, i32
  }
  func.func @transform_3(%arg0: i32) -> (i32, i32, i32) {
    %c0_i32 = arith.constant 0 : i32
    %c0_i32_0 = arith.constant 0 : i32
    %c0_i32_1 = arith.constant 0 : i32
    return %arg0, %c0_i32, %c0_i32_0 : i32, i32, i32
  }
  func.func @transform_4(%arg0: i32) -> (i32, i32) {
    %c0_i32 = arith.constant 0 : i32
    %c0_i32_0 = arith.constant 0 : i32
    %c0_i32_1 = arith.constant 0 : i32
    return %c0_i32, %c0_i32_0 : i32, i32
  }
  func.func @transform_5(%arg0: i32) -> (i32, i32) {
    %c0_i32 = arith.constant 0 : i32
    %c0_i32_0 = arith.constant 0 : i32
    %c0_i32_1 = arith.constant 0 : i32
    return %c0_i32, %c0_i32_0 : i32, i32
  }
  func.func @transform_6(%arg0: i32) -> (i32, i32) {
    %c0_i32 = arith.constant 0 : i32
    %c0_i32_0 = arith.constant 0 : i32
    %c0_i32_1 = arith.constant 0 : i32
    return %c0_i32, %c0_i32_0 : i32, i32
  }
  func.func @transform_7(%arg0: i32) -> (i32, i32) {
    %c0_i32 = arith.constant 0 : i32
    %c0_i32_0 = arith.constant 0 : i32
    %c0_i32_1 = arith.constant 0 : i32
    return %c0_i32, %c0_i32_0 : i32, i32
  }
  func.func @transform_8(%arg0: i32) -> (i32, i32, i32) {
    %c0_i32 = arith.constant 0 : i32
    %c0_i32_0 = arith.constant 0 : i32
    %c0_i32_1 = arith.constant 0 : i32
    return %arg0, %c0_i32, %c0_i32_0 : i32, i32, i32
  }
}

</mosaic_0001>

<bundles_post_ra>
// kernel: _lambda_.10
= control target key start
LH: loop header
LB: loop body
LE: loop exit
PB: predicated region body
PF: predicated region fallthrough
CT: control target
= control target key end

     0   :  { %vm358_vm0 = vcmask 1044480   ;;  %vm359_vm1 = vcmask 1045504   ;;  %vm261_vm2 = vcmask 220160   ;;  %v1379_v1 = vmov 65535   ;;  %s1859_s1 = inlined_call_operand.vmem [shape: bf16[27,16], index: 1, kind: input, shape index: {}]   ;;  %s1860_s0 = inlined_call_operand.vmem [shape: bf16[512,27], index: 0, kind: input, shape index: {}]   ;;  %s1861_s2 = inlined_call_operand.vmem [shape: f32[1,16], index: 2, kind: input, shape index: {}]   ;;  %s1862_s3 = inlined_call_operand.vmem [shape: bf16[512,16], index: 3, kind: output, shape index: {}]  }
   0x1   :  { %v1345_v0 = vld [vmem:[%s1859_s1] sm:$0xff]   ;;  %v360_v2 = vsel %vm358_vm0, 4294967295, %v1379_v1  ;;  %v1346_v3 = vld [vmem:[%s1859_s1 + $0x8] sm:$0x3f]   ;;  %v1351_v10 = vld [vmem:[%s1860_s0 + $0x10] sm:$0xff]   ;;  %vm974_vm3 = vcmask 125952  }
   0x2   :  { %1272 = vmatprep.subr.bf16.mxu0 %v1345_v0  ;;  %1340 = vmatprep.subr.bf16.mxu1 %v1345_v0  ;;  %v361_v4 = vsel %vm359_vm1, %v360_v2, 0  ;;  %v1347_v5 = vld [vmem:[%s1860_s0] sm:$0xff]   ;;  %v1349_v8 = vld [vmem:[%s1860_s0 + $0x8] sm:$0xff]   ;;  %v1352_v11 = vld [vmem:[%s1860_s0 + $0x90] sm:$0xff]  }
   0x3   :  { %1273 = vmatpush3.bf16.msra.mxu0 %v1345_v0  ;;  %1342 = vmatpush3.bf16.msra.mxu1 %v1345_v0  ;;  %v363_v6 = vand.u32 %v1346_v3, %v361_v4  ;;  %v1348_v7 = vld [vmem:[%s1860_s0 + $0x80] sm:$0xff]   ;;  %v1350_v9 = vld [vmem:[%s1860_s0 + $0x88] sm:$0xff]   ;;  %v1353_v12 = vld [vmem:[%s1860_s0 + $0x18] sm:$0xff]  }
   0x4   :  { %1276 = vmatprep.mubr.msk.bf16.mxu0 %vm261_vm2, %v1347_v5  ;;  %1308 = vmatprep.mubr.msk.bf16.mxu1 %vm261_vm2, %v1348_v7  ;;  %v1354_v13 = vld [vmem:[%s1860_s0 + $0x98] sm:$0xff]   ;;  %v1355_v14 = vld [vmem:[%s1860_s0 + $0x20] sm:$0xff]   ;;  %v1357_v16 = vld [vmem:[%s1860_s0 + $0x28] sm:$0xff]  }
   0x5   :  { %1274 = vmatprep.subr.bf16.mxu0 %v363_v6  ;;  %1341 = vmatprep.subr.bf16.mxu1 %v363_v6  ;;  %v1356_v15 = vld [vmem:[%s1860_s0 + $0xa0] sm:$0xff]   ;;  %v1358_v17 = vld [vmem:[%s1860_s0 + $0xa8] sm:$0xff]   ;;  %v1359_v18 = vld [vmem:[%s1860_s0 + $0x30] sm:$0xff]  }
   0x6   :  { %v1360_v19 = vld [vmem:[%s1860_s0 + $0xb0] sm:$0xff]   ;;  %v1361_v20 = vld [vmem:[%s1860_s0 + $0x38] sm:$0xff]   ;;  %v1363_v22 = vld [vmem:[%s1860_s0 + $0x40] sm:$0xff]  }
   0x7   :  { %1275 = vmatpush3.bf16.msra.mxu0 %v363_v6  ;;  %1343 = vmatpush3.bf16.msra.mxu1 %v363_v6  ;;  %v1362_v21 = vld [vmem:[%s1860_s0 + $0xb8] sm:$0xff]   ;;  %v1364_v23 = vld [vmem:[%s1860_s0 + $0xc0] sm:$0xff]   ;;  %v1365_v24 = vld [vmem:[%s1860_s0 + $0x48] sm:$0xff]  }
   0x8   :  { %v1366_v25 = vld [vmem:[%s1860_s0 + $0xc8] sm:$0xff]   ;;  %v1367_v26 = vld [vmem:[%s1860_s0 + $0x50] sm:$0xff]   ;;  %v1369_v28 = vld [vmem:[%s1860_s0 + $0x58] sm:$0xff]  }
   0x9   :  { %v1368_v27 = vld [vmem:[%s1860_s0 + $0xd0] sm:$0xff]   ;;  %v1370_v29 = vld [vmem:[%s1860_s0 + $0xd8] sm:$0xff]   ;;  %v1371_v30 = vld [vmem:[%s1860_s0 + $0x60] sm:$0xff]  }
   0xa   :  { %1277 = vmatmul.mubr.msk.bf16.vlgmr.msra.gmra.mrb[0].mxu0 %vm261_vm2, %v1349_v8  ;;  %1309 = vmatmul.mubr.msk.bf16.vlgmr.msra.gmra.mrb[0].mxu1 %vm261_vm2, %v1350_v9  ;;  %v1372_v31 = vld [vmem:[%s1860_s0 + $0xe0] sm:$0xff]   ;;  %v1373_v32 = vld [vmem:[%s1860_s0 + $0x68] sm:$0xff]   ;;  %v1375_v34 = vld [vmem:[%s1860_s0 + $0x70] sm:$0xff]  }
   0xb   :  { %1280 = vmatprep.mubr.msk.bf16.mxu0 %vm261_vm2, %v1351_v10  ;;  %1312 = vmatprep.mubr.msk.bf16.mxu1 %vm261_vm2, %v1352_v11  ;;  %v1374_v33 = vld [vmem:[%s1860_s0 + $0xe8] sm:$0xff]   ;;  %v1376_v35 = vld [vmem:[%s1860_s0 + $0xf0] sm:$0xff]   ;;  %v1377_v36 = vld [vmem:[%s1860_s0 + $0x78] sm:$0xff]  }
   0xc   :  { %v1378_v37 = vld [vmem:[%s1860_s0 + $0xf8] sm:$0xff]   ;;  %v1537_v38 = vld [vmem:[%s1861_s2] ss:$0 sm:$0xff] }
  0x12   :  { %1281 = vmatmul.mubr.msk.bf16.gmra.mrb[4].mxu0 %vm261_vm2, %v1353_v12  ;;  %1313 = vmatmul.mubr.msk.bf16.gmra.mrb[4].mxu1 %vm261_vm2, %v1354_v13 }
  0x13   :  { %1284 = vmatprep.mubr.msk.bf16.mxu0 %vm261_vm2, %v1355_v14  ;;  %1316 = vmatprep.mubr.msk.bf16.mxu1 %vm261_vm2, %v1356_v15 }
  0x1a   :  { %1285 = vmatmul.mubr.msk.bf16.gmra.mrb[8].mxu0 %vm261_vm2, %v1357_v16  ;;  %1317 = vmatmul.mubr.msk.bf16.gmra.mrb[8].mxu1 %vm261_vm2, %v1358_v17 }
  0x1b   :  { %1288 = vmatprep.mubr.msk.bf16.mxu0 %vm261_vm2, %v1359_v18  ;;  %1320 = vmatprep.mubr.msk.bf16.mxu1 %vm261_vm2, %v1360_v19 }
  0x22   :  { %1289 = vmatmul.mubr.msk.bf16.gmra.mrb[12].mxu0 %vm261_vm2, %v1361_v20  ;;  %1321 = vmatmul.mubr.msk.bf16.gmra.mrb[12].mxu1 %vm261_vm2, %v1362_v21 }
  0x23   :  { %1292 = vmatprep.mubr.msk.bf16.mxu0 %vm261_vm2, %v1363_v22  ;;  %1324 = vmatprep.mubr.msk.bf16.mxu1 %vm261_vm2, %v1364_v23 }
  0x2a   :  { %1293 = vmatmul.mubr.msk.bf16.gmra.mrb[16].mxu0 %vm261_vm2, %v1365_v24  ;;  %1325 = vmatmul.mubr.msk.bf16.gmra.mrb[16].mxu1 %vm261_vm2, %v1366_v25 }
  0x2b   :  { %1296 = vmatprep.mubr.msk.bf16.mxu0 %vm261_vm2, %v1367_v26  ;;  %1328 = vmatprep.mubr.msk.bf16.mxu1 %vm261_vm2, %v1368_v27 }
  0x32   :  { %1297 = vmatmul.mubr.msk.bf16.gmra.mrb[20].mxu0 %vm261_vm2, %v1369_v28  ;;  %1329 = vmatmul.mubr.msk.bf16.gmra.mrb[20].mxu1 %vm261_vm2, %v1370_v29 }
  0x33   :  { %1300 = vmatprep.mubr.msk.bf16.mxu0 %vm261_vm2, %v1371_v30  ;;  %1332 = vmatprep.mubr.msk.bf16.mxu1 %vm261_vm2, %v1372_v31 }
  0x3a   :  { %1301 = vmatmul.mubr.msk.bf16.gmra.mrb[24].mxu0 %vm261_vm2, %v1373_v32  ;;  %1333 = vmatmul.mubr.msk.bf16.gmra.mrb[24].mxu1 %vm261_vm2, %v1374_v33 }
  0x3b   :  { %1304 = vmatprep.mubr.msk.bf16.mxu0 %vm261_vm2, %v1375_v34  ;;  %1336 = vmatprep.mubr.msk.bf16.mxu1 %vm261_vm2, %v1376_v35 }
  0x42   :  { %1305 = vmatmul.mubr.msk.bf16.gmra.mrb[28].mxu0 %vm261_vm2, %v1377_v36  ;;  %1337 = vmatmul.mubr.msk.bf16.gmra.mrb[28].mxu1 %vm261_vm2, %v1378_v37 }
  0xdd   :  { %v1278_v39 = vpop.f32.mrb[0].mxu0  ;;  %v1310_v40 = vpop.f32.mrb[0].mxu1 }
  0xde   :  { %v408_v41 = vadd.f32 %v1278_v39, %v1537_v38  ;;  %v536_v42 = vadd.f32 %v1310_v40, %v1537_v38  ;;  %v399_v43 = vpop.f32.mrb[1].mxu0  ;;  %v527_v44 = vpop.f32.mrb[1].mxu1 }
  0xdf   :  { %v400_v45 = vadd.f32 %v1537_v38, %v399_v43  ;;  %v528_v46 = vadd.f32 %v1537_v38, %v527_v44  ;;  %v1279_v47 = vpop.f32.mrb[2].mxu0  ;;  %v1311_v48 = vpop.f32.mrb[2].mxu1 }
  0xe0   :  { %v656_v49 = vmax.f32 %v408_v41, 0.0  ;;  %v688_v50 = vmax.f32 %v536_v42, 0.0  ;;  %v411_v51 = vadd.f32 %v1279_v47, %v1537_v38  ;;  %v539_v52 = vadd.f32 %v1311_v48, %v1537_v38  ;;  %v402_v53 = vpop.f32.mrb[3].mxu0  ;;  %v530_v54 = vpop.f32.mrb[3].mxu1 }
  0xe1   :  { %v654_v55 = vmax.f32 %v400_v45, 0.0  ;;  %v686_v56 = vmax.f32 %v528_v46, 0.0  ;;  %v403_v57 = vadd.f32 %v1537_v38, %v402_v53  ;;  %v531_v58 = vadd.f32 %v1537_v38, %v530_v54 }
  0xe2   :  { %v1176_v59 = vpack.c.bf16 %v656_v49, %v656_v49  ;;  %v1208_v60 = vpack.c.bf16 %v688_v50, %v688_v50  ;;  %v657_v61 = vmax.f32 %v411_v51, 0.0  ;;  %v689_v62 = vmax.f32 %v539_v52, 0.0 }
  0xe3   :  { %v1174_v63 = vpack.c.bf16 %v654_v55, %v654_v55  ;;  %v1206_v0 = vpack.c.bf16 %v686_v56, %v686_v56  ;;  %v655_v1 = vmax.f32 %v403_v57, 0.0  ;;  %v687_v2 = vmax.f32 %v531_v58, 0.0 }
  0xe4   :  { %977 = vst.msk [vmem:[%s1862_s3 + $0x8] sm:$0xf] %vm974_vm3, %v1176_v59  ;;  %1009 = vst.msk [vmem:[%s1862_s3 + $0x88] sm:$0xf] %vm974_vm3, %v1208_v60  ;;  %v1177_v3 = vpack.c.bf16 %v657_v61, %v657_v61  ;;  %v1209_v4 = vpack.c.bf16 %v689_v62, %v689_v62 }
  0xe5   :  { %975 = vst.msk [vmem:[%s1862_s3] sm:$0xf] %vm974_vm3, %v1174_v63  ;;  %1007 = vst.msk [vmem:[%s1862_s3 + $0x80] sm:$0xf] %vm974_vm3, %v1206_v0  ;;  %v1175_v5 = vpack.c.bf16 %v655_v1, %v655_v1  ;;  %v1207_v6 = vpack.c.bf16 %v687_v2, %v687_v2  ;;  %v1282_v7 = vpop.f32.mrb[4].mxu0  ;;  %v1314_v8 = vpop.f32.mrb[4].mxu1 }
  0xe6   :  { %978 = vst.msk [vmem:[%s1862_s3 + $0xc] sm:$0xf] %vm974_vm3, %v1177_v3  ;;  %1010 = vst.msk [vmem:[%s1862_s3 + $0x8c] sm:$0xf] %vm974_vm3, %v1209_v4  ;;  %v424_v9 = vadd.f32 %v1282_v7, %v1537_v38  ;;  %v552_v10 = vadd.f32 %v1314_v8, %v1537_v38  ;;  %v415_v11 = vpop.f32.mrb[5].mxu0  ;;  %v543_v12 = vpop.f32.mrb[5].mxu1 }
  0xe7   :  { %976 = vst.msk [vmem:[%s1862_s3 + $0x4] sm:$0xf] %vm974_vm3, %v1175_v5  ;;  %1008 = vst.msk [vmem:[%s1862_s3 + $0x84] sm:$0xf] %vm974_vm3, %v1207_v6  ;;  %v416_v13 = vadd.f32 %v1537_v38, %v415_v11  ;;  %v544_v14 = vadd.f32 %v1537_v38, %v543_v12  ;;  %v1283_v15 = vpop.f32.mrb[6].mxu0  ;;  %v1315_v16 = vpop.f32.mrb[6].mxu1 }
  0xe8   :  { %v660_v17 = vmax.f32 %v424_v9, 0.0  ;;  %v692_v18 = vmax.f32 %v552_v10, 0.0  ;;  %v427_v19 = vadd.f32 %v1283_v15, %v1537_v38  ;;  %v555_v20 = vadd.f32 %v1315_v16, %v1537_v38  ;;  %v418_v21 = vpop.f32.mrb[7].mxu0  ;;  %v546_v22 = vpop.f32.mrb[7].mxu1 }
  0xe9   :  { %v658_v23 = vmax.f32 %v416_v13, 0.0  ;;  %v690_v24 = vmax.f32 %v544_v14, 0.0  ;;  %v419_v25 = vadd.f32 %v1537_v38, %v418_v21  ;;  %v547_v26 = vadd.f32 %v1537_v38, %v546_v22 }
  0xea   :  { %v1180_v27 = vpack.c.bf16 %v660_v17, %v660_v17  ;;  %v1212_v28 = vpack.c.bf16 %v692_v18, %v692_v18  ;;  %v661_v29 = vmax.f32 %v427_v19, 0.0  ;;  %v693_v30 = vmax.f32 %v555_v20, 0.0 }
  0xeb   :  { %v1178_v31 = vpack.c.bf16 %v658_v23, %v658_v23  ;;  %v1210_v32 = vpack.c.bf16 %v690_v24, %v690_v24  ;;  %v659_v33 = vmax.f32 %v419_v25, 0.0  ;;  %v691_v34 = vmax.f32 %v547_v26, 0.0 }
  0xec   :  { %981 = vst.msk [vmem:[%s1862_s3 + $0x18] sm:$0xf] %vm974_vm3, %v1180_v27  ;;  %1013 = vst.msk [vmem:[%s1862_s3 + $0x98] sm:$0xf] %vm974_vm3, %v1212_v28  ;;  %v1181_v35 = vpack.c.bf16 %v661_v29, %v661_v29  ;;  %v1213_v36 = vpack.c.bf16 %v693_v30, %v693_v30 }
  0xed   :  { %979 = vst.msk [vmem:[%s1862_s3 + $0x10] sm:$0xf] %vm974_vm3, %v1178_v31  ;;  %1011 = vst.msk [vmem:[%s1862_s3 + $0x90] sm:$0xf] %vm974_vm3, %v1210_v32  ;;  %v1179_v37 = vpack.c.bf16 %v659_v33, %v659_v33  ;;  %v1211_v39 = vpack.c.bf16 %v691_v34, %v691_v34  ;;  %v1286_v40 = vpop.f32.mrb[8].mxu0  ;;  %v1318_v41 = vpop.f32.mrb[8].mxu1 }
  0xee   :  { %982 = vst.msk [vmem:[%s1862_s3 + $0x1c] sm:$0xf] %vm974_vm3, %v1181_v35  ;;  %1014 = vst.msk [vmem:[%s1862_s3 + $0x9c] sm:$0xf] %vm974_vm3, %v1213_v36  ;;  %v440_v42 = vadd.f32 %v1286_v40, %v1537_v38  ;;  %v568_v43 = vadd.f32 %v1318_v41, %v1537_v38  ;;  %v431_v44 = vpop.f32.mrb[9].mxu0  ;;  %v559_v45 = vpop.f32.mrb[9].mxu1 }
  0xef   :  { %980 = vst.msk [vmem:[%s1862_s3 + $0x14] sm:$0xf] %vm974_vm3, %v1179_v37  ;;  %1012 = vst.msk [vmem:[%s1862_s3 + $0x94] sm:$0xf] %vm974_vm3, %v1211_v39  ;;  %v432_v46 = vadd.f32 %v1537_v38, %v431_v44  ;;  %v560_v47 = vadd.f32 %v1537_v38, %v559_v45  ;;  %v1287_v48 = vpop.f32.mrb[10].mxu0  ;;  %v1319_v49 = vpop.f32.mrb[10].mxu1 }
  0xf0   :  { %v664_v50 = vmax.f32 %v440_v42, 0.0  ;;  %v696_v51 = vmax.f32 %v568_v43, 0.0  ;;  %v443_v52 = vadd.f32 %v1287_v48, %v1537_v38  ;;  %v571_v53 = vadd.f32 %v1319_v49, %v1537_v38  ;;  %v434_v54 = vpop.f32.mrb[11].mxu0  ;;  %v562_v55 = vpop.f32.mrb[11].mxu1 }
  0xf1   :  { %v662_v56 = vmax.f32 %v432_v46, 0.0  ;;  %v694_v57 = vmax.f32 %v560_v47, 0.0  ;;  %v435_v58 = vadd.f32 %v1537_v38, %v434_v54  ;;  %v563_v59 = vadd.f32 %v1537_v38, %v562_v55 }
  0xf2   :  { %v1184_v60 = vpack.c.bf16 %v664_v50, %v664_v50  ;;  %v1216_v61 = vpack.c.bf16 %v696_v51, %v696_v51  ;;  %v665_v62 = vmax.f32 %v443_v52, 0.0  ;;  %v697_v63 = vmax.f32 %v571_v53, 0.0 }
  0xf3   :  { %v1182_v0 = vpack.c.bf16 %v662_v56, %v662_v56  ;;  %v1214_v1 = vpack.c.bf16 %v694_v57, %v694_v57  ;;  %v663_v2 = vmax.f32 %v435_v58, 0.0  ;;  %v695_v3 = vmax.f32 %v563_v59, 0.0 }
  0xf4   :  { %985 = vst.msk [vmem:[%s1862_s3 + $0x28] sm:$0xf] %vm974_vm3, %v1184_v60  ;;  %1017 = vst.msk [vmem:[%s1862_s3 + $0xa8] sm:$0xf] %vm974_vm3, %v1216_v61  ;;  %v1185_v4 = vpack.c.bf16 %v665_v62, %v665_v62  ;;  %v1217_v5 = vpack.c.bf16 %v697_v63, %v697_v63 }
  0xf5   :  { %983 = vst.msk [vmem:[%s1862_s3 + $0x20] sm:$0xf] %vm974_vm3, %v1182_v0  ;;  %1015 = vst.msk [vmem:[%s1862_s3 + $0xa0] sm:$0xf] %vm974_vm3, %v1214_v1  ;;  %v1183_v6 = vpack.c.bf16 %v663_v2, %v663_v2  ;;  %v1215_v7 = vpack.c.bf16 %v695_v3, %v695_v3  ;;  %v1290_v8 = vpop.f32.mrb[12].mxu0  ;;  %v1322_v9 = vpop.f32.mrb[12].mxu1 }
  0xf6   :  { %986 = vst.msk [vmem:[%s1862_s3 + $0x2c] sm:$0xf] %vm974_vm3, %v1185_v4  ;;  %1018 = vst.msk [vmem:[%s1862_s3 + $0xac] sm:$0xf] %vm974_vm3, %v1217_v5  ;;  %v456_v10 = vadd.f32 %v1290_v8, %v1537_v38  ;;  %v584_v11 = vadd.f32 %v1322_v9, %v1537_v38  ;;  %v447_v12 = vpop.f32.mrb[13].mxu0  ;;  %v575_v13 = vpop.f32.mrb[13].mxu1 }
  0xf7   :  { %984 = vst.msk [vmem:[%s1862_s3 + $0x24] sm:$0xf] %vm974_vm3, %v1183_v6  ;;  %1016 = vst.msk [vmem:[%s1862_s3 + $0xa4] sm:$0xf] %vm974_vm3, %v1215_v7  ;;  %v448_v14 = vadd.f32 %v1537_v38, %v447_v12  ;;  %v576_v15 = vadd.f32 %v1537_v38, %v575_v13  ;;  %v1291_v16 = vpop.f32.mrb[14].mxu0  ;;  %v1323_v17 = vpop.f32.mrb[14].mxu1 }
  0xf8   :  { %v668_v18 = vmax.f32 %v456_v10, 0.0  ;;  %v700_v19 = vmax.f32 %v584_v11, 0.0  ;;  %v459_v20 = vadd.f32 %v1291_v16, %v1537_v38  ;;  %v587_v21 = vadd.f32 %v1323_v17, %v1537_v38  ;;  %v450_v22 = vpop.f32.mrb[15].mxu0  ;;  %v578_v23 = vpop.f32.mrb[15].mxu1 }
  0xf9   :  { %v666_v24 = vmax.f32 %v448_v14, 0.0  ;;  %v698_v25 = vmax.f32 %v576_v15, 0.0  ;;  %v451_v26 = vadd.f32 %v1537_v38, %v450_v22  ;;  %v579_v27 = vadd.f32 %v1537_v38, %v578_v23 }
  0xfa   :  { %v1188_v28 = vpack.c.bf16 %v668_v18, %v668_v18  ;;  %v1220_v29 = vpack.c.bf16 %v700_v19, %v700_v19  ;;  %v669_v30 = vmax.f32 %v459_v20, 0.0  ;;  %v701_v31 = vmax.f32 %v587_v21, 0.0 }
  0xfb   :  { %v1186_v32 = vpack.c.bf16 %v666_v24, %v666_v24  ;;  %v1218_v33 = vpack.c.bf16 %v698_v25, %v698_v25  ;;  %v667_v34 = vmax.f32 %v451_v26, 0.0  ;;  %v699_v35 = vmax.f32 %v579_v27, 0.0 }
  0xfc   :  { %989 = vst.msk [vmem:[%s1862_s3 + $0x38] sm:$0xf] %vm974_vm3, %v1188_v28  ;;  %1021 = vst.msk [vmem:[%s1862_s3 + $0xb8] sm:$0xf] %vm974_vm3, %v1220_v29  ;;  %v1189_v36 = vpack.c.bf16 %v669_v30, %v669_v30  ;;  %v1221_v37 = vpack.c.bf16 %v701_v31, %v701_v31 }
  0xfd   :  { %987 = vst.msk [vmem:[%s1862_s3 + $0x30] sm:$0xf] %vm974_vm3, %v1186_v32  ;;  %1019 = vst.msk [vmem:[%s1862_s3 + $0xb0] sm:$0xf] %vm974_vm3, %v1218_v33  ;;  %v1187_v39 = vpack.c.bf16 %v667_v34, %v667_v34  ;;  %v1219_v40 = vpack.c.bf16 %v699_v35, %v699_v35  ;;  %v1294_v41 = vpop.f32.mrb[16].mxu0  ;;  %v1326_v42 = vpop.f32.mrb[16].mxu1 }
  0xfe   :  { %990 = vst.msk [vmem:[%s1862_s3 + $0x3c] sm:$0xf] %vm974_vm3, %v1189_v36  ;;  %1022 = vst.msk [vmem:[%s1862_s3 + $0xbc] sm:$0xf] %vm974_vm3, %v1221_v37  ;;  %v472_v43 = vadd.f32 %v1294_v41, %v1537_v38  ;;  %v600_v44 = vadd.f32 %v1326_v42, %v1537_v38  ;;  %v463_v45 = vpop.f32.mrb[17].mxu0  ;;  %v591_v46 = vpop.f32.mrb[17].mxu1 }
  0xff   :  { %988 = vst.msk [vmem:[%s1862_s3 + $0x34] sm:$0xf] %vm974_vm3, %v1187_v39  ;;  %1020 = vst.msk [vmem:[%s1862_s3 + $0xb4] sm:$0xf] %vm974_vm3, %v1219_v40  ;;  %v464_v47 = vadd.f32 %v1537_v38, %v463_v45  ;;  %v592_v48 = vadd.f32 %v1537_v38, %v591_v46  ;;  %v1295_v49 = vpop.f32.mrb[18].mxu0  ;;  %v1327_v50 = vpop.f32.mrb[18].mxu1 }
 0x100   :  { %v672_v51 = vmax.f32 %v472_v43, 0.0  ;;  %v704_v52 = vmax.f32 %v600_v44, 0.0  ;;  %v475_v53 = vadd.f32 %v1295_v49, %v1537_v38  ;;  %v603_v54 = vadd.f32 %v1327_v50, %v1537_v38  ;;  %v466_v55 = vpop.f32.mrb[19].mxu0  ;;  %v594_v56 = vpop.f32.mrb[19].mxu1 }
 0x101   :  { %v670_v57 = vmax.f32 %v464_v47, 0.0  ;;  %v702_v58 = vmax.f32 %v592_v48, 0.0  ;;  %v467_v59 = vadd.f32 %v1537_v38, %v466_v55  ;;  %v595_v60 = vadd.f32 %v1537_v38, %v594_v56 }
 0x102   :  { %v1192_v61 = vpack.c.bf16 %v672_v51, %v672_v51  ;;  %v1224_v62 = vpack.c.bf16 %v704_v52, %v704_v52  ;;  %v673_v63 = vmax.f32 %v475_v53, 0.0  ;;  %v705_v0 = vmax.f32 %v603_v54, 0.0 }
 0x103   :  { %v1190_v1 = vpack.c.bf16 %v670_v57, %v670_v57  ;;  %v1222_v2 = vpack.c.bf16 %v702_v58, %v702_v58  ;;  %v671_v3 = vmax.f32 %v467_v59, 0.0  ;;  %v703_v4 = vmax.f32 %v595_v60, 0.0 }
 0x104   :  { %993 = vst.msk [vmem:[%s1862_s3 + $0x48] sm:$0xf] %vm974_vm3, %v1192_v61  ;;  %1025 = vst.msk [vmem:[%s1862_s3 + $0xc8] sm:$0xf] %vm974_vm3, %v1224_v62  ;;  %v1193_v5 = vpack.c.bf16 %v673_v63, %v673_v63  ;;  %v1225_v6 = vpack.c.bf16 %v705_v0, %v705_v0 }
 0x105   :  { %991 = vst.msk [vmem:[%s1862_s3 + $0x40] sm:$0xf] %vm974_vm3, %v1190_v1  ;;  %1023 = vst.msk [vmem:[%s1862_s3 + $0xc0] sm:$0xf] %vm974_vm3, %v1222_v2  ;;  %v1191_v7 = vpack.c.bf16 %v671_v3, %v671_v3  ;;  %v1223_v8 = vpack.c.bf16 %v703_v4, %v703_v4  ;;  %v1298_v9 = vpop.f32.mrb[20].mxu0  ;;  %v1330_v10 = vpop.f32.mrb[20].mxu1 }
 0x106   :  { %994 = vst.msk [vmem:[%s1862_s3 + $0x4c] sm:$0xf] %vm974_vm3, %v1193_v5  ;;  %1026 = vst.msk [vmem:[%s1862_s3 + $0xcc] sm:$0xf] %vm974_vm3, %v1225_v6  ;;  %v488_v11 = vadd.f32 %v1298_v9, %v1537_v38  ;;  %v616_v12 = vadd.f32 %v1330_v10, %v1537_v38  ;;  %v479_v13 = vpop.f32.mrb[21].mxu0  ;;  %v607_v14 = vpop.f32.mrb[21].mxu1 }
 0x107   :  { %992 = vst.msk [vmem:[%s1862_s3 + $0x44] sm:$0xf] %vm974_vm3, %v1191_v7  ;;  %1024 = vst.msk [vmem:[%s1862_s3 + $0xc4] sm:$0xf] %vm974_vm3, %v1223_v8  ;;  %v480_v15 = vadd.f32 %v1537_v38, %v479_v13  ;;  %v608_v16 = vadd.f32 %v1537_v38, %v607_v14  ;;  %v1299_v17 = vpop.f32.mrb[22].mxu0  ;;  %v1331_v18 = vpop.f32.mrb[22].mxu1 }
 0x108   :  { %v676_v19 = vmax.f32 %v488_v11, 0.0  ;;  %v708_v20 = vmax.f32 %v616_v12, 0.0  ;;  %v491_v21 = vadd.f32 %v1299_v17, %v1537_v38  ;;  %v619_v22 = vadd.f32 %v1331_v18, %v1537_v38  ;;  %v482_v23 = vpop.f32.mrb[23].mxu0  ;;  %v610_v24 = vpop.f32.mrb[23].mxu1 }
 0x109   :  { %v674_v25 = vmax.f32 %v480_v15, 0.0  ;;  %v706_v26 = vmax.f32 %v608_v16, 0.0  ;;  %v483_v27 = vadd.f32 %v1537_v38, %v482_v23  ;;  %v611_v28 = vadd.f32 %v1537_v38, %v610_v24 }
 0x10a   :  { %v1196_v29 = vpack.c.bf16 %v676_v19, %v676_v19  ;;  %v1228_v30 = vpack.c.bf16 %v708_v20, %v708_v20  ;;  %v677_v31 = vmax.f32 %v491_v21, 0.0  ;;  %v709_v32 = vmax.f32 %v619_v22, 0.0 }
 0x10b   :  { %v1194_v33 = vpack.c.bf16 %v674_v25, %v674_v25  ;;  %v1226_v34 = vpack.c.bf16 %v706_v26, %v706_v26  ;;  %v675_v35 = vmax.f32 %v483_v27, 0.0  ;;  %v707_v36 = vmax.f32 %v611_v28, 0.0 }
 0x10c   :  { %997 = vst.msk [vmem:[%s1862_s3 + $0x58] sm:$0xf] %vm974_vm3, %v1196_v29  ;;  %1029 = vst.msk [vmem:[%s1862_s3 + $0xd8] sm:$0xf] %vm974_vm3, %v1228_v30  ;;  %v1197_v37 = vpack.c.bf16 %v677_v31, %v677_v31  ;;  %v1229_v39 = vpack.c.bf16 %v709_v32, %v709_v32 }
 0x10d   :  { %995 = vst.msk [vmem:[%s1862_s3 + $0x50] sm:$0xf] %vm974_vm3, %v1194_v33  ;;  %1027 = vst.msk [vmem:[%s1862_s3 + $0xd0] sm:$0xf] %vm974_vm3, %v1226_v34  ;;  %v1195_v40 = vpack.c.bf16 %v675_v35, %v675_v35  ;;  %v1227_v41 = vpack.c.bf16 %v707_v36, %v707_v36  ;;  %v1302_v42 = vpop.f32.mrb[24].mxu0  ;;  %v1334_v43 = vpop.f32.mrb[24].mxu1 }
 0x10e   :  { %998 = vst.msk [vmem:[%s1862_s3 + $0x5c] sm:$0xf] %vm974_vm3, %v1197_v37  ;;  %1030 = vst.msk [vmem:[%s1862_s3 + $0xdc] sm:$0xf] %vm974_vm3, %v1229_v39  ;;  %v504_v44 = vadd.f32 %v1302_v42, %v1537_v38  ;;  %v632_v45 = vadd.f32 %v1334_v43, %v1537_v38  ;;  %v495_v46 = vpop.f32.mrb[25].mxu0  ;;  %v623_v47 = vpop.f32.mrb[25].mxu1 }
 0x10f   :  { %996 = vst.msk [vmem:[%s1862_s3 + $0x54] sm:$0xf] %vm974_vm3, %v1195_v40  ;;  %1028 = vst.msk [vmem:[%s1862_s3 + $0xd4] sm:$0xf] %vm974_vm3, %v1227_v41  ;;  %v496_v48 = vadd.f32 %v1537_v38, %v495_v46  ;;  %v624_v49 = vadd.f32 %v1537_v38, %v623_v47  ;;  %v1303_v50 = vpop.f32.mrb[26].mxu0  ;;  %v1335_v51 = vpop.f32.mrb[26].mxu1 }
 0x110   :  { %v680_v52 = vmax.f32 %v504_v44, 0.0  ;;  %v712_v53 = vmax.f32 %v632_v45, 0.0  ;;  %v507_v54 = vadd.f32 %v1303_v50, %v1537_v38  ;;  %v635_v55 = vadd.f32 %v1335_v51, %v1537_v38  ;;  %v498_v56 = vpop.f32.mrb[27].mxu0  ;;  %v626_v57 = vpop.f32.mrb[27].mxu1 }
 0x111   :  { %v678_v58 = vmax.f32 %v496_v48, 0.0  ;;  %v710_v59 = vmax.f32 %v624_v49, 0.0  ;;  %v499_v60 = vadd.f32 %v1537_v38, %v498_v56  ;;  %v627_v61 = vadd.f32 %v1537_v38, %v626_v57 }
 0x112   :  { %v1200_v62 = vpack.c.bf16 %v680_v52, %v680_v52  ;;  %v1232_v63 = vpack.c.bf16 %v712_v53, %v712_v53  ;;  %v681_v0 = vmax.f32 %v507_v54, 0.0  ;;  %v713_v1 = vmax.f32 %v635_v55, 0.0 }
 0x113   :  { %v1198_v2 = vpack.c.bf16 %v678_v58, %v678_v58  ;;  %v1230_v3 = vpack.c.bf16 %v710_v59, %v710_v59  ;;  %v679_v4 = vmax.f32 %v499_v60, 0.0  ;;  %v711_v5 = vmax.f32 %v627_v61, 0.0 }
 0x114   :  { %1001 = vst.msk [vmem:[%s1862_s3 + $0x68] sm:$0xf] %vm974_vm3, %v1200_v62  ;;  %1033 = vst.msk [vmem:[%s1862_s3 + $0xe8] sm:$0xf] %vm974_vm3, %v1232_v63  ;;  %v1201_v6 = vpack.c.bf16 %v681_v0, %v681_v0  ;;  %v1233_v7 = vpack.c.bf16 %v713_v1, %v713_v1 }
 0x115   :  { %999 = vst.msk [vmem:[%s1862_s3 + $0x60] sm:$0xf] %vm974_vm3, %v1198_v2  ;;  %1031 = vst.msk [vmem:[%s1862_s3 + $0xe0] sm:$0xf] %vm974_vm3, %v1230_v3  ;;  %v1199_v8 = vpack.c.bf16 %v679_v4, %v679_v4  ;;  %v1231_v9 = vpack.c.bf16 %v711_v5, %v711_v5  ;;  %v1306_v10 = vpop.f32.mrb[28].mxu0  ;;  %v1338_v11 = vpop.f32.mrb[28].mxu1 }
 0x116   :  { %1002 = vst.msk [vmem:[%s1862_s3 + $0x6c] sm:$0xf] %vm974_vm3, %v1201_v6  ;;  %1034 = vst.msk [vmem:[%s1862_s3 + $0xec] sm:$0xf] %vm974_vm3, %v1233_v7  ;;  %v520_v12 = vadd.f32 %v1306_v10, %v1537_v38  ;;  %v648_v13 = vadd.f32 %v1338_v11, %v1537_v38  ;;  %v511_v14 = vpop.f32.mrb[29].mxu0  ;;  %v639_v15 = vpop.f32.mrb[29].mxu1 }
 0x117   :  { %1000 = vst.msk [vmem:[%s1862_s3 + $0x64] sm:$0xf] %vm974_vm3, %v1199_v8  ;;  %1032 = vst.msk [vmem:[%s1862_s3 + $0xe4] sm:$0xf] %vm974_vm3, %v1231_v9  ;;  %v512_v16 = vadd.f32 %v1537_v38, %v511_v14  ;;  %v640_v17 = vadd.f32 %v1537_v38, %v639_v15  ;;  %v1307_v18 = vpop.f32.mrb[30].mxu0  ;;  %v1339_v19 = vpop.f32.mrb[30].mxu1 }
 0x118   :  { %v684_v20 = vmax.f32 %v520_v12, 0.0  ;;  %v716_v21 = vmax.f32 %v648_v13, 0.0  ;;  %v523_v22 = vadd.f32 %v1307_v18, %v1537_v38  ;;  %v651_v23 = vadd.f32 %v1339_v19, %v1537_v38  ;;  %v514_v24 = vpop.f32.mrb[31].mxu0  ;;  %v642_v25 = vpop.f32.mrb[31].mxu1 }
 0x119   :  { %v682_v26 = vmax.f32 %v512_v16, 0.0  ;;  %v714_v27 = vmax.f32 %v640_v17, 0.0  ;;  %v515_v28 = vadd.f32 %v1537_v38, %v514_v24  ;;  %v643_v29 = vadd.f32 %v1537_v38, %v642_v25 }
 0x11a   :  { %v1204_v30 = vpack.c.bf16 %v684_v20, %v684_v20  ;;  %v1236_v31 = vpack.c.bf16 %v716_v21, %v716_v21  ;;  %v685_v32 = vmax.f32 %v523_v22, 0.0  ;;  %v717_v33 = vmax.f32 %v651_v23, 0.0 }
 0x11b   :  { %v1202_v34 = vpack.c.bf16 %v682_v26, %v682_v26  ;;  %v1234_v35 = vpack.c.bf16 %v714_v27, %v714_v27  ;;  %v683_v36 = vmax.f32 %v515_v28, 0.0  ;;  %v715_v37 = vmax.f32 %v643_v29, 0.0 }
 0x11c   :  { %1005 = vst.msk [vmem:[%s1862_s3 + $0x78] sm:$0xf] %vm974_vm3, %v1204_v30  ;;  %1037 = vst.msk [vmem:[%s1862_s3 + $0xf8] sm:$0xf] %vm974_vm3, %v1236_v31  ;;  %v1205_v39 = vpack.c.bf16 %v685_v32, %v685_v32  ;;  %v1237_v38 = vpack.c.bf16 %v717_v33, %v717_v33 }
 0x11d   :  { %1003 = vst.msk [vmem:[%s1862_s3 + $0x70] sm:$0xf] %vm974_vm3, %v1202_v34  ;;  %1035 = vst.msk [vmem:[%s1862_s3 + $0xf0] sm:$0xf] %vm974_vm3, %v1234_v35  ;;  %v1203_v40 = vpack.c.bf16 %v683_v36, %v683_v36  ;;  %v1235_v41 = vpack.c.bf16 %v715_v37, %v715_v37 }
 0x11e   :  { %1006 = vst.msk [vmem:[%s1862_s3 + $0x7c] sm:$0xf] %vm974_vm3, %v1205_v39  ;;  %1038 = vst.msk [vmem:[%s1862_s3 + $0xfc] sm:$0xf] %vm974_vm3, %v1237_v38 }
 0x11f   :  { %1004 = vst.msk [vmem:[%s1862_s3 + $0x74] sm:$0xf] %vm974_vm3, %v1203_v40  ;;  %1036 = vst.msk [vmem:[%s1862_s3 + $0xf4] sm:$0xf] %vm974_vm3, %v1235_v41 }

// kernel: _lambda_.11
= control target key start
LH: loop header
LB: loop body
LE: loop exit
PB: predicated region body
PF: predicated region fallthrough
CT: control target
= control target key end

     0   :  { %v1579_v0 = vmov 0   ;;  %vm446_vm0 = vcmask 130048   ;;  %vm1152_vm1 = vcmask 125952   ;;  %s2176_s1 = inlined_call_operand.vmem [shape: bf16[144,16], index: 1, kind: input, shape index: {}]   ;;  %s2177_s0 = inlined_call_operand.vmem [shape: bf16[512,144], index: 0, kind: input, shape index: {}]   ;;  %s2178_s2 = inlined_call_operand.vmem [shape: f32[1,16], index: 2, kind: input, shape index: {}]   ;;  %s2179_s3 = inlined_call_operand.vmem [shape: bf16[512,16], index: 3, kind: output, shape index: {}]  }
   0x1   :  { %543 = vmatprep.subr.bf16.mxu0 %v1579_v0  ;;  %1455 = vmatprep.subr.bf16.mxu1 %v1579_v0  ;;  %v1474_v1 = vld [vmem:[%s2176_s1] sm:$0xff]   ;;  %v1475_v2 = vld [vmem:[%s2176_s1 + $0x8] sm:$0xff]   ;;  %v1476_v3 = vld [vmem:[%s2176_s1 + $0x10] sm:$0xff]  }
   0x2   :  { %544 = vmatpush1.bf16.msra.mxu0 %v1474_v1  ;;  %1464 = vmatpush1.bf16.msra.mxu1 %v1474_v1  ;;  %v1477_v4 = vld [vmem:[%s2176_s1 + $0x18] sm:$0xff]   ;;  %v1485_v5 = vld [vmem:[%s2177_s0 + $0x4] ss:$8 sps:$4 sm:$0xff]   ;;  %v1480_v9 = vld [vmem:[%s2176_s1 + $0x30] sm:$0xff]  }
   0x3   :  { %545 = vmatprep.subr.bf16.mxu0 %v1579_v0  ;;  %1456 = vmatprep.subr.bf16.mxu1 %v1579_v0  ;;  %v1488_v6 = vld [vmem:[%s2177_s0 + $0x104] ss:$8 sps:$4 sm:$0xff]   ;;  %v1481_v10 = vld [vmem:[%s2176_s1 + $0x38] sm:$0xff]   ;;  %v1483_v12 = vld [vmem:[%s2177_s0] ss:$8 sps:$4 sm:$0xff]  }
   0x4   :  { %1295 = vmatprep.mubr.msk.bf16.mxu0 %vm446_vm0, %v1485_v5  ;;  %1311 = vmatprep.mubr.msk.bf16.mxu1 %vm446_vm0, %v1488_v6  ;;  %v1478_v7 = vld [vmem:[%s2176_s1 + $0x20] sm:$0xff]   ;;  %v1479_v8 = vld [vmem:[%s2176_s1 + $0x28] sm:$0xff]   ;;  %v1489_v14 = vld [vmem:[%s2177_s0 + $0x14] ss:$8 sps:$4 sm:$0xff]  }
   0x5   :  { %v1482_v11 = vld [vmem:[%s2176_s1 + $0x40] sm:$0xff]   ;;  %v1491_v15 = vld [vmem:[%s2177_s0 + $0x114] ss:$8 sps:$4 sm:$0xff]   ;;  %v1493_v16 = vld [vmem:[%s2177_s0 + $0x10] ss:$8 sps:$4 sm:$0xff]  }
   0x6   :  { %546 = vmatpush1.bf16.msra.mxu0 %v1475_v2  ;;  %1465 = vmatpush1.bf16.msra.mxu1 %v1475_v2  ;;  %v1486_v13 = vld [vmem:[%s2177_s0 + $0x100] ss:$8 sps:$4 sm:$0xff]   ;;  %v1494_v17 = vld [vmem:[%s2177_s0 + $0x110] ss:$8 sps:$4 sm:$0xff]   ;;  %v1495_v18 = vld [vmem:[%s2177_s0 + $0x24] ss:$8 sps:$4 sm:$0xff]  }
   0x7   :  { %547 = vmatprep.subr.bf16.mxu0 %v1579_v0  ;;  %1457 = vmatprep.subr.bf16.mxu1 %v1579_v0  ;;  %v1497_v19 = vld [vmem:[%s2177_s0 + $0x124] ss:$8 sps:$4 sm:$0xff]   ;;  %v1499_v20 = vld [vmem:[%s2177_s0 + $0x20] ss:$8 sps:$4 sm:$0xff]   ;;  %v1501_v22 = vld [vmem:[%s2177_s0 + $0x34] ss:$8 sps:$4 sm:$0xff]  }
   0x8   :  { %v1500_v21 = vld [vmem:[%s2177_s0 + $0x120] ss:$8 sps:$4 sm:$0xff]   ;;  %v1503_v23 = vld [vmem:[%s2177_s0 + $0x134] ss:$8 sps:$4 sm:$0xff]   ;;  %v1505_v24 = vld [vmem:[%s2177_s0 + $0x30] ss:$8 sps:$4 sm:$0xff]  }
   0x9   :  { %v1506_v25 = vld [vmem:[%s2177_s0 + $0x130] ss:$8 sps:$4 sm:$0xff]   ;;  %v1507_v26 = vld [vmem:[%s2177_s0 + $0x44] ss:$8 sps:$4 sm:$0xff]   ;;  %v1511_v28 = vld [vmem:[%s2177_s0 + $0x40] ss:$8 sps:$4 sm:$0xff]  }
   0xa   :  { %548 = vmatpush1.bf16.msra.mxu0 %v1476_v3  ;;  %1466 = vmatpush1.bf16.msra.mxu1 %v1476_v3  ;;  %v1509_v27 = vld [vmem:[%s2177_s0 + $0x144] ss:$8 sps:$4 sm:$0xff]   ;;  %v1512_v29 = vld [vmem:[%s2177_s0 + $0x140] ss:$8 sps:$4 sm:$0xff]   ;;  %v1513_v30 = vld [vmem:[%s2177_s0 + $0x54] ss:$8 sps:$4 sm:$0xff]  }
   0xb   :  { %549 = vmatprep.subr.bf16.mxu0 %v1579_v0  ;;  %1458 = vmatprep.subr.bf16.mxu1 %v1579_v0  ;;  %v1515_v31 = vld [vmem:[%s2177_s0 + $0x154] ss:$8 sps:$4 sm:$0xff]   ;;  %v1517_v32 = vld [vmem:[%s2177_s0 + $0x50] ss:$8 sps:$4 sm:$0xff]   ;;  %v1519_v34 = vld [vmem:[%s2177_s0 + $0x64] ss:$8 sps:$4 sm:$0xff]  }
   0xc   :  { %v1518_v33 = vld [vmem:[%s2177_s0 + $0x150] ss:$8 sps:$4 sm:$0xff]   ;;  %v1521_v35 = vld [vmem:[%s2177_s0 + $0x164] ss:$8 sps:$4 sm:$0xff]   ;;  %v1523_v36 = vld [vmem:[%s2177_s0 + $0x60] ss:$8 sps:$4 sm:$0xff]  }
   0xd   :  { %v1524_v37 = vld [vmem:[%s2177_s0 + $0x160] ss:$8 sps:$4 sm:$0xff]   ;;  %v1525_v38 = vld [vmem:[%s2177_s0 + $0x74] ss:$8 sps:$4 sm:$0xff]   ;;  %v1529_v40 = vld [vmem:[%s2177_s0 + $0x70] ss:$8 sps:$4 sm:$0xff]  }
   0xe   :  { %550 = vmatpush1.bf16.msra.mxu0 %v1477_v4  ;;  %1467 = vmatpush1.bf16.msra.mxu1 %v1477_v4  ;;  %v1527_v39 = vld [vmem:[%s2177_s0 + $0x174] ss:$8 sps:$4 sm:$0xff]   ;;  %v1530_v41 = vld [vmem:[%s2177_s0 + $0x170] ss:$8 sps:$4 sm:$0xff]   ;;  %v1531_v42 = vld [vmem:[%s2177_s0 + $0x84] ss:$8 sps:$4 sm:$0xff]  }
   0xf   :  { %551 = vmatprep.subr.bf16.mxu0 %v1579_v0  ;;  %1459 = vmatprep.subr.bf16.mxu1 %v1579_v0  ;;  %v1533_v43 = vld [vmem:[%s2177_s0 + $0x184] ss:$8 sps:$4 sm:$0xff]   ;;  %v1535_v44 = vld [vmem:[%s2177_s0 + $0x80] ss:$8 sps:$4 sm:$0xff]   ;;  %v1537_v46 = vld [vmem:[%s2177_s0 + $0x94] ss:$8 sps:$4 sm:$0xff]  }
  0x10   :  { %v1536_v45 = vld [vmem:[%s2177_s0 + $0x180] ss:$8 sps:$4 sm:$0xff]   ;;  %v1539_v47 = vld [vmem:[%s2177_s0 + $0x194] ss:$8 sps:$4 sm:$0xff]   ;;  %v1541_v48 = vld [vmem:[%s2177_s0 + $0x90] ss:$8 sps:$4 sm:$0xff]  }
  0x11   :  { %v1542_v49 = vld [vmem:[%s2177_s0 + $0x190] ss:$8 sps:$4 sm:$0xff]   ;;  %v1543_v50 = vld [vmem:[%s2177_s0 + $0xa4] ss:$8 sps:$4 sm:$0xff]   ;;  %v1547_v52 = vld [vmem:[%s2177_s0 + $0xa0] ss:$8 sps:$4 sm:$0xff]  }
  0x12   :  { %552 = vmatpush1.bf16.msra.mxu0 %v1478_v7  ;;  %1468 = vmatpush1.bf16.msra.mxu1 %v1478_v7  ;;  %v1545_v51 = vld [vmem:[%s2177_s0 + $0x1a4] ss:$8 sps:$4 sm:$0xff]   ;;  %v1548_v53 = vld [vmem:[%s2177_s0 + $0x1a0] ss:$8 sps:$4 sm:$0xff]   ;;  %v1549_v54 = vld [vmem:[%s2177_s0 + $0xb4] ss:$8 sps:$4 sm:$0xff]  }
  0x13   :  { %553 = vmatprep.subr.bf16.mxu0 %v1579_v0  ;;  %1460 = vmatprep.subr.bf16.mxu1 %v1579_v0  ;;  %v1551_v55 = vld [vmem:[%s2177_s0 + $0x1b4] ss:$8 sps:$4 sm:$0xff]   ;;  %v1553_v56 = vld [vmem:[%s2177_s0 + $0xb0] ss:$8 sps:$4 sm:$0xff]   ;;  %v1555_v58 = vld [vmem:[%s2177_s0 + $0xc4] ss:$8 sps:$4 sm:$0xff]  }
  0x14   :  { %v1554_v57 = vld [vmem:[%s2177_s0 + $0x1b0] ss:$8 sps:$4 sm:$0xff]   ;;  %v1557_v59 = vld [vmem:[%s2177_s0 + $0x1c4] ss:$8 sps:$4 sm:$0xff]   ;;  %v1559_v60 = vld [vmem:[%s2177_s0 + $0xc0] ss:$8 sps:$4 sm:$0xff]  }
  0x15   :  { %v1560_v61 = vld [vmem:[%s2177_s0 + $0x1c0] ss:$8 sps:$4 sm:$0xff]   ;;  %v1561_v62 = vld [vmem:[%s2177_s0 + $0xd4] ss:$8 sps:$4 sm:$0xff]   ;;  %v1566_v1 = vld [vmem:[%s2177_s0 + $0x1d0] ss:$8 sps:$4 sm:$0xff]  }
  0x16   :  { %554 = vmatpush1.bf16.msra.mxu0 %v1479_v8  ;;  %1469 = vmatpush1.bf16.msra.mxu1 %v1479_v8  ;;  %v1563_v63 = vld [vmem:[%s2177_s0 + $0x1d4] ss:$8 sps:$4 sm:$0xff]   ;;  %v1567_v2 = vld [vmem:[%s2177_s0 + $0xe4] ss:$8 sps:$4 sm:$0xff]   ;;  %v1571_v4 = vld [vmem:[%s2177_s0 + $0xe0] ss:$8 sps:$4 sm:$0xff]  }
  0x17   :  { %555 = vmatprep.subr.bf16.mxu0 %v1579_v0  ;;  %1461 = vmatprep.subr.bf16.mxu1 %v1579_v0  ;;  %v1569_v3 = vld [vmem:[%s2177_s0 + $0x1e4] ss:$8 sps:$4 sm:$0xff]   ;;  %v1572_v5 = vld [vmem:[%s2177_s0 + $0x1e0] ss:$8 sps:$4 sm:$0xff]   ;;  %v1573_v6 = vld [vmem:[%s2177_s0 + $0xf4] ss:$8 sps:$4 sm:$0xff]  }
  0x18   :  { %v1575_v7 = vld [vmem:[%s2177_s0 + $0x1f4] ss:$8 sps:$4 sm:$0xff]   ;;  %v1577_v8 = vld [vmem:[%s2177_s0 + $0xf0] ss:$8 sps:$4 sm:$0xff]  }
  0x1a   :  { %556 = vmatpush1.bf16.msra.mxu0 %v1480_v9  ;;  %1470 = vmatpush1.bf16.msra.mxu1 %v1480_v9  ;;  %v1578_v9 = vld [vmem:[%s2177_s0 + $0x1f0] ss:$8 sps:$4 sm:$0xff]  }
  0x1b   :  { %557 = vmatprep.subr.bf16.mxu0 %v1579_v0  ;;  %1462 = vmatprep.subr.bf16.mxu1 %v1579_v0 }
  0x1e   :  { %558 = vmatpush1.bf16.msra.mxu0 %v1481_v10  ;;  %1471 = vmatpush1.bf16.msra.mxu1 %v1481_v10  ;;  %v1854_v10 = vld [vmem:[%s2178_s2] ss:$0 sm:$0xff] }
  0x1f   :  { %559 = vmatprep.subr.bf16.mxu0 %v1579_v0  ;;  %1463 = vmatprep.subr.bf16.mxu1 %v1579_v0  ;;  %v1565_v0 = vld [vmem:[%s2177_s0 + $0xd0] ss:$8 sps:$4 sm:$0xff]  }
  0x22   :  { %560 = vmatpush1.bf16.msra.mxu0 %v1482_v11  ;;  %1472 = vmatpush1.bf16.msra.mxu1 %v1482_v11 }
  0x25   :  { %576 = vmatmul.mubr.bf16.vlgmr.msra.gmra.mrb[0].mxu0 %v1483_v12  ;;  %704 = vmatmul.mubr.bf16.vlgmr.msra.gmra.mrb[0].mxu1 %v1486_v13 }
  0x26   :  { %1296 = vmatprep.mubr.msk.bf16.mxu0 %vm446_vm0, %v1489_v14  ;;  %1312 = vmatprep.mubr.msk.bf16.mxu1 %vm446_vm0, %v1491_v15 }
  0x2d   :  { %584 = vmatmul.mubr.bf16.gmra.mrb[4].mxu0 %v1493_v16  ;;  %712 = vmatmul.mubr.bf16.gmra.mrb[4].mxu1 %v1494_v17 }
  0x2e   :  { %1297 = vmatprep.mubr.msk.bf16.mxu0 %vm446_vm0, %v1495_v18  ;;  %1313 = vmatprep.mubr.msk.bf16.mxu1 %vm446_vm0, %v1497_v19 }
  0x35   :  { %592 = vmatmul.mubr.bf16.gmra.mrb[8].mxu0 %v1499_v20  ;;  %720 = vmatmul.mubr.bf16.gmra.mrb[8].mxu1 %v1500_v21 }
  0x36   :  { %1298 = vmatprep.mubr.msk.bf16.mxu0 %vm446_vm0, %v1501_v22  ;;  %1314 = vmatprep.mubr.msk.bf16.mxu1 %vm446_vm0, %v1503_v23 }
  0x3d   :  { %600 = vmatmul.mubr.bf16.gmra.mrb[12].mxu0 %v1505_v24  ;;  %728 = vmatmul.mubr.bf16.gmra.mrb[12].mxu1 %v1506_v25 }
  0x3e   :  { %1299 = vmatprep.mubr.msk.bf16.mxu0 %vm446_vm0, %v1507_v26  ;;  %1315 = vmatprep.mubr.msk.bf16.mxu1 %vm446_vm0, %v1509_v27 }
  0x45   :  { %608 = vmatmul.mubr.bf16.gmra.mrb[16].mxu0 %v1511_v28  ;;  %736 = vmatmul.mubr.bf16.gmra.mrb[16].mxu1 %v1512_v29 }
  0x46   :  { %1300 = vmatprep.mubr.msk.bf16.mxu0 %vm446_vm0, %v1513_v30  ;;  %1316 = vmatprep.mubr.msk.bf16.mxu1 %vm446_vm0, %v1515_v31 }
  0x4d   :  { %616 = vmatmul.mubr.bf16.gmra.mrb[20].mxu0 %v1517_v32  ;;  %744 = vmatmul.mubr.bf16.gmra.mrb[20].mxu1 %v1518_v33 }
  0x4e   :  { %1301 = vmatprep.mubr.msk.bf16.mxu0 %vm446_vm0, %v1519_v34  ;;  %1317 = vmatprep.mubr.msk.bf16.mxu1 %vm446_vm0, %v1521_v35 }
  0x55   :  { %624 = vmatmul.mubr.bf16.gmra.mrb[24].mxu0 %v1523_v36  ;;  %752 = vmatmul.mubr.bf16.gmra.mrb[24].mxu1 %v1524_v37 }
  0x56   :  { %1302 = vmatprep.mubr.msk.bf16.mxu0 %vm446_vm0, %v1525_v38  ;;  %1318 = vmatprep.mubr.msk.bf16.mxu1 %vm446_vm0, %v1527_v39 }
  0x5d   :  { %632 = vmatmul.mubr.bf16.gmra.mrb[28].mxu0 %v1529_v40  ;;  %760 = vmatmul.mubr.bf16.gmra.mrb[28].mxu1 %v1530_v41 }
  0x5e   :  { %1303 = vmatprep.mubr.msk.bf16.mxu0 %vm446_vm0, %v1531_v42  ;;  %1319 = vmatprep.mubr.msk.bf16.mxu1 %vm446_vm0, %v1533_v43 }
  0x65   :  { %640 = vmatmul.mubr.bf16.gmra.mrb[32].mxu0 %v1535_v44  ;;  %768 = vmatmul.mubr.bf16.gmra.mrb[32].mxu1 %v1536_v45 }
  0x66   :  { %1304 = vmatprep.mubr.msk.bf16.mxu0 %vm446_vm0, %v1537_v46  ;;  %1320 = vmatprep.mubr.msk.bf16.mxu1 %vm446_vm0, %v1539_v47 }
  0x6d   :  { %648 = vmatmul.mubr.bf16.gmra.mrb[36].mxu0 %v1541_v48  ;;  %776 = vmatmul.mubr.bf16.gmra.mrb[36].mxu1 %v1542_v49 }
  0x6e   :  { %1305 = vmatprep.mubr.msk.bf16.mxu0 %vm446_vm0, %v1543_v50  ;;  %1321 = vmatprep.mubr.msk.bf16.mxu1 %vm446_vm0, %v1545_v51 }
  0x75   :  { %656 = vmatmul.mubr.bf16.gmra.mrb[40].mxu0 %v1547_v52  ;;  %784 = vmatmul.mubr.bf16.gmra.mrb[40].mxu1 %v1548_v53 }
  0x76   :  { %1306 = vmatprep.mubr.msk.bf16.mxu0 %vm446_vm0, %v1549_v54  ;;  %1322 = vmatprep.mubr.msk.bf16.mxu1 %vm446_vm0, %v1551_v55 }
  0x7d   :  { %664 = vmatmul.mubr.bf16.gmra.mrb[44].mxu0 %v1553_v56  ;;  %792 = vmatmul.mubr.bf16.gmra.mrb[44].mxu1 %v1554_v57 }
  0x7e   :  { %1307 = vmatprep.mubr.msk.bf16.mxu0 %vm446_vm0, %v1555_v58  ;;  %1323 = vmatprep.mubr.msk.bf16.mxu1 %vm446_vm0, %v1557_v59 }
  0x85   :  { %672 = vmatmul.mubr.bf16.gmra.mrb[48].mxu0 %v1559_v60  ;;  %800 = vmatmul.mubr.bf16.gmra.mrb[48].mxu1 %v1560_v61 }
  0x86   :  { %1308 = vmatprep.mubr.msk.bf16.mxu0 %vm446_vm0, %v1561_v62  ;;  %1324 = vmatprep.mubr.msk.bf16.mxu1 %vm446_vm0, %v1563_v63 }
  0x8d   :  { %680 = vmatmul.mubr.bf16.gmra.mrb[52].mxu0 %v1565_v0  ;;  %808 = vmatmul.mubr.bf16.gmra.mrb[52].mxu1 %v1566_v1 }
  0x8e   :  { %1309 = vmatprep.mubr.msk.bf16.mxu0 %vm446_vm0, %v1567_v2  ;;  %1325 = vmatprep.mubr.msk.bf16.mxu1 %vm446_vm0, %v1569_v3 }
  0x95   :  { %688 = vmatmul.mubr.bf16.gmra.mrb[56].mxu0 %v1571_v4  ;;  %816 = vmatmul.mubr.bf16.gmra.mrb[56].mxu1 %v1572_v5 }
  0x96   :  { %1310 = vmatprep.mubr.msk.bf16.mxu0 %vm446_vm0, %v1573_v6  ;;  %1326 = vmatprep.mubr.msk.bf16.mxu1 %vm446_vm0, %v1575_v7 }
  0x9d   :  { %696 = vmatmul.mubr.bf16.gmra.mrb[60].mxu0 %v1577_v8  ;;  %824 = vmatmul.mubr.bf16.gmra.mrb[60].mxu1 %v1578_v9 }
  0xf8   :  { %v577_v11 = vpop.f32.mrb[0].mxu0  ;;  %v705_v12 = vpop.f32.mrb[0].mxu1 }
  0xf9   :  { %v578_v13 = vadd.f32 %v1854_v10, %v577_v11  ;;  %v706_v14 = vadd.f32 %v1854_v10, %v705_v12  ;;  %v579_v15 = vpop.f32.mrb[1].mxu0  ;;  %v707_v16 = vpop.f32.mrb[1].mxu1 }
  0xfa   :  { %v580_v17 = vpop.f32.mrb[2].mxu0  ;;  %v708_v18 = vpop.f32.mrb[2].mxu1 }
  0xfb   :  { %v832_v19 = vmax.f32 %v578_v13, 0.0  ;;  %v864_v20 = vmax.f32 %v706_v14, 0.0  ;;  %v581_v21 = vadd.f32 %v1854_v10, %v580_v17  ;;  %v709_v22 = vadd.f32 %v1854_v10, %v708_v18  ;;  %v582_v23 = vpop.f32.mrb[3].mxu0  ;;  %v710_v24 = vpop.f32.mrb[3].mxu1 }
  0xfd   :  { %v1391_v25 = vpack.c.bf16 %v832_v19, %v832_v19  ;;  %v1423_v26 = vpack.c.bf16 %v864_v20, %v864_v20  ;;  %v833_v27 = vmax.f32 %v581_v21, 0.0  ;;  %v865_v28 = vmax.f32 %v709_v22, 0.0 }
  0xff   :  { %1153 = vst.msk [vmem:[%s2179_s3] sm:$0xf] %vm1152_vm1, %v1391_v25  ;;  %1185 = vst.msk [vmem:[%s2179_s3 + $0x80] sm:$0xf] %vm1152_vm1, %v1423_v26  ;;  %v1392_v29 = vpack.c.bf16 %v833_v27, %v833_v27  ;;  %v1424_v30 = vpack.c.bf16 %v865_v28, %v865_v28 }
 0x100   :  { %v585_v31 = vpop.f32.mrb[4].mxu0  ;;  %v713_v32 = vpop.f32.mrb[4].mxu1 }
 0x101   :  { %1154 = vst.msk [vmem:[%s2179_s3 + $0x4] sm:$0xf] %vm1152_vm1, %v1392_v29  ;;  %1186 = vst.msk [vmem:[%s2179_s3 + $0x84] sm:$0xf] %vm1152_vm1, %v1424_v30  ;;  %v586_v33 = vadd.f32 %v1854_v10, %v585_v31  ;;  %v714_v34 = vadd.f32 %v1854_v10, %v713_v32  ;;  %v587_v35 = vpop.f32.mrb[5].mxu0  ;;  %v715_v36 = vpop.f32.mrb[5].mxu1 }
 0x102   :  { %v588_v37 = vpop.f32.mrb[6].mxu0  ;;  %v716_v38 = vpop.f32.mrb[6].mxu1 }
 0x103   :  { %v834_v39 = vmax.f32 %v586_v33, 0.0  ;;  %v866_v40 = vmax.f32 %v714_v34, 0.0  ;;  %v589_v41 = vadd.f32 %v1854_v10, %v588_v37  ;;  %v717_v42 = vadd.f32 %v1854_v10, %v716_v38  ;;  %v590_v43 = vpop.f32.mrb[7].mxu0  ;;  %v718_v44 = vpop.f32.mrb[7].mxu1 }
 0x105   :  { %v1393_v45 = vpack.c.bf16 %v834_v39, %v834_v39  ;;  %v1425_v46 = vpack.c.bf16 %v866_v40, %v866_v40  ;;  %v835_v47 = vmax.f32 %v589_v41, 0.0  ;;  %v867_v48 = vmax.f32 %v717_v42, 0.0 }
 0x107   :  { %1155 = vst.msk [vmem:[%s2179_s3 + $0x8] sm:$0xf] %vm1152_vm1, %v1393_v45  ;;  %1187 = vst.msk [vmem:[%s2179_s3 + $0x88] sm:$0xf] %vm1152_vm1, %v1425_v46  ;;  %v1394_v49 = vpack.c.bf16 %v835_v47, %v835_v47  ;;  %v1426_v50 = vpack.c.bf16 %v867_v48, %v867_v48 }
 0x108   :  { %v593_v51 = vpop.f32.mrb[8].mxu0  ;;  %v721_v52 = vpop.f32.mrb[8].mxu1 }
 0x109   :  { %1156 = vst.msk [vmem:[%s2179_s3 + $0xc] sm:$0xf] %vm1152_vm1, %v1394_v49  ;;  %1188 = vst.msk [vmem:[%s2179_s3 + $0x8c] sm:$0xf] %vm1152_vm1, %v1426_v50  ;;  %v594_v53 = vadd.f32 %v1854_v10, %v593_v51  ;;  %v722_v54 = vadd.f32 %v1854_v10, %v721_v52  ;;  %v595_v55 = vpop.f32.mrb[9].mxu0  ;;  %v723_v56 = vpop.f32.mrb[9].mxu1 }
 0x10a   :  { %v596_v57 = vpop.f32.mrb[10].mxu0  ;;  %v724_v58 = vpop.f32.mrb[10].mxu1 }
 0x10b   :  { %v836_v59 = vmax.f32 %v594_v53, 0.0  ;;  %v868_v60 = vmax.f32 %v722_v54, 0.0  ;;  %v597_v61 = vadd.f32 %v1854_v10, %v596_v57  ;;  %v725_v62 = vadd.f32 %v1854_v10, %v724_v58  ;;  %v598_v63 = vpop.f32.mrb[11].mxu0  ;;  %v726_v0 = vpop.f32.mrb[11].mxu1 }
 0x10d   :  { %v1395_v1 = vpack.c.bf16 %v836_v59, %v836_v59  ;;  %v1427_v2 = vpack.c.bf16 %v868_v60, %v868_v60  ;;  %v837_v3 = vmax.f32 %v597_v61, 0.0  ;;  %v869_v4 = vmax.f32 %v725_v62, 0.0 }
 0x10f   :  { %1157 = vst.msk [vmem:[%s2179_s3 + $0x10] sm:$0xf] %vm1152_vm1, %v1395_v1  ;;  %1189 = vst.msk [vmem:[%s2179_s3 + $0x90] sm:$0xf] %vm1152_vm1, %v1427_v2  ;;  %v1396_v5 = vpack.c.bf16 %v837_v3, %v837_v3  ;;  %v1428_v6 = vpack.c.bf16 %v869_v4, %v869_v4 }
 0x110   :  { %v601_v7 = vpop.f32.mrb[12].mxu0  ;;  %v729_v8 = vpop.f32.mrb[12].mxu1 }
 0x111   :  { %1158 = vst.msk [vmem:[%s2179_s3 + $0x14] sm:$0xf] %vm1152_vm1, %v1396_v5  ;;  %1190 = vst.msk [vmem:[%s2179_s3 + $0x94] sm:$0xf] %vm1152_vm1, %v1428_v6  ;;  %v602_v9 = vadd.f32 %v1854_v10, %v601_v7  ;;  %v730_v11 = vadd.f32 %v1854_v10, %v729_v8  ;;  %v603_v12 = vpop.f32.mrb[13].mxu0  ;;  %v731_v13 = vpop.f32.mrb[13].mxu1 }
 0x112   :  { %v604_v14 = vpop.f32.mrb[14].mxu0  ;;  %v732_v15 = vpop.f32.mrb[14].mxu1 }
 0x113   :  { %v838_v16 = vmax.f32 %v602_v9, 0.0  ;;  %v870_v17 = vmax.f32 %v730_v11, 0.0  ;;  %v605_v18 = vadd.f32 %v1854_v10, %v604_v14  ;;  %v733_v19 = vadd.f32 %v1854_v10, %v732_v15  ;;  %v606_v20 = vpop.f32.mrb[15].mxu0  ;;  %v734_v21 = vpop.f32.mrb[15].mxu1 }
 0x115   :  { %v1397_v22 = vpack.c.bf16 %v838_v16, %v838_v16  ;;  %v1429_v23 = vpack.c.bf16 %v870_v17, %v870_v17  ;;  %v839_v24 = vmax.f32 %v605_v18, 0.0  ;;  %v871_v25 = vmax.f32 %v733_v19, 0.0 }
 0x117   :  { %1159 = vst.msk [vmem:[%s2179_s3 + $0x18] sm:$0xf] %vm1152_vm1, %v1397_v22  ;;  %1191 = vst.msk [vmem:[%s2179_s3 + $0x98] sm:$0xf] %vm1152_vm1, %v1429_v23  ;;  %v1398_v26 = vpack.c.bf16 %v839_v24, %v839_v24  ;;  %v1430_v27 = vpack.c.bf16 %v871_v25, %v871_v25 }
 0x118   :  { %v609_v28 = vpop.f32.mrb[16].mxu0  ;;  %v737_v29 = vpop.f32.mrb[16].mxu1 }
 0x119   :  { %1160 = vst.msk [vmem:[%s2179_s3 + $0x1c] sm:$0xf] %vm1152_vm1, %v1398_v26  ;;  %1192 = vst.msk [vmem:[%s2179_s3 + $0x9c] sm:$0xf] %vm1152_vm1, %v1430_v27  ;;  %v610_v30 = vadd.f32 %v1854_v10, %v609_v28  ;;  %v738_v31 = vadd.f32 %v1854_v10, %v737_v29  ;;  %v611_v32 = vpop.f32.mrb[17].mxu0  ;;  %v739_v33 = vpop.f32.mrb[17].mxu1 }
 0x11a   :  { %v612_v34 = vpop.f32.mrb[18].mxu0  ;;  %v740_v35 = vpop.f32.mrb[18].mxu1 }
 0x11b   :  { %v840_v36 = vmax.f32 %v610_v30, 0.0  ;;  %v872_v37 = vmax.f32 %v738_v31, 0.0  ;;  %v613_v38 = vadd.f32 %v1854_v10, %v612_v34  ;;  %v741_v39 = vadd.f32 %v1854_v10, %v740_v35  ;;  %v614_v40 = vpop.f32.mrb[19].mxu0  ;;  %v742_v41 = vpop.f32.mrb[19].mxu1 }
 0x11d   :  { %v1399_v42 = vpack.c.bf16 %v840_v36, %v840_v36  ;;  %v1431_v43 = vpack.c.bf16 %v872_v37, %v872_v37  ;;  %v841_v44 = vmax.f32 %v613_v38, 0.0  ;;  %v873_v45 = vmax.f32 %v741_v39, 0.0 }
 0x11f   :  { %1161 = vst.msk [vmem:[%s2179_s3 + $0x20] sm:$0xf] %vm1152_vm1, %v1399_v42  ;;  %1193 = vst.msk [vmem:[%s2179_s3 + $0xa0] sm:$0xf] %vm1152_vm1, %v1431_v43  ;;  %v1400_v46 = vpack.c.bf16 %v841_v44, %v841_v44  ;;  %v1432_v47 = vpack.c.bf16 %v873_v45, %v873_v45 }
 0x120   :  { %v617_v48 = vpop.f32.mrb[20].mxu0  ;;  %v745_v49 = vpop.f32.mrb[20].mxu1 }
 0x121   :  { %1162 = vst.msk [vmem:[%s2179_s3 + $0x24] sm:$0xf] %vm1152_vm1, %v1400_v46  ;;  %1194 = vst.msk [vmem:[%s2179_s3 + $0xa4] sm:$0xf] %vm1152_vm1, %v1432_v47  ;;  %v618_v50 = vadd.f32 %v1854_v10, %v617_v48  ;;  %v746_v51 = vadd.f32 %v1854_v10, %v745_v49  ;;  %v619_v52 = vpop.f32.mrb[21].mxu0  ;;  %v747_v53 = vpop.f32.mrb[21].mxu1 }
 0x122   :  { %v620_v54 = vpop.f32.mrb[22].mxu0  ;;  %v748_v55 = vpop.f32.mrb[22].mxu1 }
 0x123   :  { %v842_v56 = vmax.f32 %v618_v50, 0.0  ;;  %v874_v57 = vmax.f32 %v746_v51, 0.0  ;;  %v621_v58 = vadd.f32 %v1854_v10, %v620_v54  ;;  %v749_v59 = vadd.f32 %v1854_v10, %v748_v55  ;;  %v622_v60 = vpop.f32.mrb[23].mxu0  ;;  %v750_v61 = vpop.f32.mrb[23].mxu1 }
 0x125   :  { %v1401_v62 = vpack.c.bf16 %v842_v56, %v842_v56  ;;  %v1433_v63 = vpack.c.bf16 %v874_v57, %v874_v57  ;;  %v843_v0 = vmax.f32 %v621_v58, 0.0  ;;  %v875_v1 = vmax.f32 %v749_v59, 0.0 }
 0x127   :  { %1163 = vst.msk [vmem:[%s2179_s3 + $0x28] sm:$0xf] %vm1152_vm1, %v1401_v62  ;;  %1195 = vst.msk [vmem:[%s2179_s3 + $0xa8] sm:$0xf] %vm1152_vm1, %v1433_v63  ;;  %v1402_v2 = vpack.c.bf16 %v843_v0, %v843_v0  ;;  %v1434_v3 = vpack.c.bf16 %v875_v1, %v875_v1 }
 0x128   :  { %v625_v4 = vpop.f32.mrb[24].mxu0  ;;  %v753_v5 = vpop.f32.mrb[24].mxu1 }
 0x129   :  { %1164 = vst.msk [vmem:[%s2179_s3 + $0x2c] sm:$0xf] %vm1152_vm1, %v1402_v2  ;;  %1196 = vst.msk [vmem:[%s2179_s3 + $0xac] sm:$0xf] %vm1152_vm1, %v1434_v3  ;;  %v626_v6 = vadd.f32 %v1854_v10, %v625_v4  ;;  %v754_v7 = vadd.f32 %v1854_v10, %v753_v5  ;;  %v627_v8 = vpop.f32.mrb[25].mxu0  ;;  %v755_v9 = vpop.f32.mrb[25].mxu1 }
 0x12a   :  { %v628_v11 = vpop.f32.mrb[26].mxu0  ;;  %v756_v12 = vpop.f32.mrb[26].mxu1 }
 0x12b   :  { %v844_v13 = vmax.f32 %v626_v6, 0.0  ;;  %v876_v14 = vmax.f32 %v754_v7, 0.0  ;;  %v629_v15 = vadd.f32 %v1854_v10, %v628_v11  ;;  %v757_v16 = vadd.f32 %v1854_v10, %v756_v12  ;;  %v630_v17 = vpop.f32.mrb[27].mxu0  ;;  %v758_v18 = vpop.f32.mrb[27].mxu1 }
 0x12d   :  { %v1403_v19 = vpack.c.bf16 %v844_v13, %v844_v13  ;;  %v1435_v20 = vpack.c.bf16 %v876_v14, %v876_v14  ;;  %v845_v21 = vmax.f32 %v629_v15, 0.0  ;;  %v877_v22 = vmax.f32 %v757_v16, 0.0 }
 0x12f   :  { %1165 = vst.msk [vmem:[%s2179_s3 + $0x30] sm:$0xf] %vm1152_vm1, %v1403_v19  ;;  %1197 = vst.msk [vmem:[%s2179_s3 + $0xb0] sm:$0xf] %vm1152_vm1, %v1435_v20  ;;  %v1404_v23 = vpack.c.bf16 %v845_v21, %v845_v21  ;;  %v1436_v24 = vpack.c.bf16 %v877_v22, %v877_v22 }
 0x130   :  { %v633_v25 = vpop.f32.mrb[28].mxu0  ;;  %v761_v26 = vpop.f32.mrb[28].mxu1 }
 0x131   :  { %1166 = vst.msk [vmem:[%s2179_s3 + $0x34] sm:$0xf] %vm1152_vm1, %v1404_v23  ;;  %1198 = vst.msk [vmem:[%s2179_s3 + $0xb4] sm:$0xf] %vm1152_vm1, %v1436_v24  ;;  %v634_v27 = vadd.f32 %v1854_v10, %v633_v25  ;;  %v762_v28 = vadd.f32 %v1854_v10, %v761_v26  ;;  %v635_v29 = vpop.f32.mrb[29].mxu0  ;;  %v763_v30 = vpop.f32.mrb[29].mxu1 }
 0x132   :  { %v636_v31 = vpop.f32.mrb[30].mxu0  ;;  %v764_v32 = vpop.f32.mrb[30].mxu1 }
 0x133   :  { %v846_v33 = vmax.f32 %v634_v27, 0.0  ;;  %v878_v34 = vmax.f32 %v762_v28, 0.0  ;;  %v637_v35 = vadd.f32 %v1854_v10, %v636_v31  ;;  %v765_v36 = vadd.f32 %v1854_v10, %v764_v32  ;;  %v638_v37 = vpop.f32.mrb[31].mxu0  ;;  %v766_v38 = vpop.f32.mrb[31].mxu1 }
 0x135   :  { %v1405_v39 = vpack.c.bf16 %v846_v33, %v846_v33  ;;  %v1437_v40 = vpack.c.bf16 %v878_v34, %v878_v34  ;;  %v847_v41 = vmax.f32 %v637_v35, 0.0  ;;  %v879_v42 = vmax.f32 %v765_v36, 0.0 }
 0x137   :  { %1167 = vst.msk [vmem:[%s2179_s3 + $0x38] sm:$0xf] %vm1152_vm1, %v1405_v39  ;;  %1199 = vst.msk [vmem:[%s2179_s3 + $0xb8] sm:$0xf] %vm1152_vm1, %v1437_v40  ;;  %v1406_v43 = vpack.c.bf16 %v847_v41, %v847_v41  ;;  %v1438_v44 = vpack.c.bf16 %v879_v42, %v879_v42 }
 0x138   :  { %v641_v45 = vpop.f32.mrb[32].mxu0  ;;  %v769_v46 = vpop.f32.mrb[32].mxu1 }
 0x139   :  { %1168 = vst.msk [vmem:[%s2179_s3 + $0x3c] sm:$0xf] %vm1152_vm1, %v1406_v43  ;;  %1200 = vst.msk [vmem:[%s2179_s3 + $0xbc] sm:$0xf] %vm1152_vm1, %v1438_v44  ;;  %v642_v47 = vadd.f32 %v1854_v10, %v641_v45  ;;  %v770_v48 = vadd.f32 %v1854_v10, %v769_v46  ;;  %v643_v49 = vpop.f32.mrb[33].mxu0  ;;  %v771_v50 = vpop.f32.mrb[33].mxu1 }
 0x13a   :  { %v644_v51 = vpop.f32.mrb[34].mxu0  ;;  %v772_v52 = vpop.f32.mrb[34].mxu1 }
 0x13b   :  { %v848_v53 = vmax.f32 %v642_v47, 0.0  ;;  %v880_v54 = vmax.f32 %v770_v48, 0.0  ;;  %v645_v55 = vadd.f32 %v1854_v10, %v644_v51  ;;  %v773_v56 = vadd.f32 %v1854_v10, %v772_v52  ;;  %v646_v57 = vpop.f32.mrb[35].mxu0  ;;  %v774_v58 = vpop.f32.mrb[35].mxu1 }
 0x13d   :  { %v1407_v59 = vpack.c.bf16 %v848_v53, %v848_v53  ;;  %v1439_v60 = vpack.c.bf16 %v880_v54, %v880_v54  ;;  %v849_v61 = vmax.f32 %v645_v55, 0.0  ;;  %v881_v62 = vmax.f32 %v773_v56, 0.0 }
 0x13f   :  { %1169 = vst.msk [vmem:[%s2179_s3 + $0x40] sm:$0xf] %vm1152_vm1, %v1407_v59  ;;  %1201 = vst.msk [vmem:[%s2179_s3 + $0xc0] sm:$0xf] %vm1152_vm1, %v1439_v60  ;;  %v1408_v63 = vpack.c.bf16 %v849_v61, %v849_v61  ;;  %v1440_v0 = vpack.c.bf16 %v881_v62, %v881_v62 }
 0x140   :  { %v649_v1 = vpop.f32.mrb[36].mxu0  ;;  %v777_v2 = vpop.f32.mrb[36].mxu1 }
 0x141   :  { %1170 = vst.msk [vmem:[%s2179_s3 + $0x44] sm:$0xf] %vm1152_vm1, %v1408_v63  ;;  %1202 = vst.msk [vmem:[%s2179_s3 + $0xc4] sm:$0xf] %vm1152_vm1, %v1440_v0  ;;  %v650_v3 = vadd.f32 %v1854_v10, %v649_v1  ;;  %v778_v4 = vadd.f32 %v1854_v10, %v777_v2  ;;  %v651_v5 = vpop.f32.mrb[37].mxu0  ;;  %v779_v6 = vpop.f32.mrb[37].mxu1 }
 0x142   :  { %v652_v7 = vpop.f32.mrb[38].mxu0  ;;  %v780_v8 = vpop.f32.mrb[38].mxu1 }
 0x143   :  { %v850_v9 = vmax.f32 %v650_v3, 0.0  ;;  %v882_v11 = vmax.f32 %v778_v4, 0.0  ;;  %v653_v12 = vadd.f32 %v1854_v10, %v652_v7  ;;  %v781_v13 = vadd.f32 %v1854_v10, %v780_v8  ;;  %v654_v14 = vpop.f32.mrb[39].mxu0  ;;  %v782_v15 = vpop.f32.mrb[39].mxu1 }
 0x145   :  { %v1409_v16 = vpack.c.bf16 %v850_v9, %v850_v9  ;;  %v1441_v17 = vpack.c.bf16 %v882_v11, %v882_v11  ;;  %v851_v18 = vmax.f32 %v653_v12, 0.0  ;;  %v883_v19 = vmax.f32 %v781_v13, 0.0 }
 0x147   :  { %1171 = vst.msk [vmem:[%s2179_s3 + $0x48] sm:$0xf] %vm1152_vm1, %v1409_v16  ;;  %1203 = vst.msk [vmem:[%s2179_s3 + $0xc8] sm:$0xf] %vm1152_vm1, %v1441_v17  ;;  %v1410_v20 = vpack.c.bf16 %v851_v18, %v851_v18  ;;  %v1442_v21 = vpack.c.bf16 %v883_v19, %v883_v19 }
 0x148   :  { %v657_v22 = vpop.f32.mrb[40].mxu0  ;;  %v785_v23 = vpop.f32.mrb[40].mxu1 }
 0x149   :  { %1172 = vst.msk [vmem:[%s2179_s3 + $0x4c] sm:$0xf] %vm1152_vm1, %v1410_v20  ;;  %1204 = vst.msk [vmem:[%s2179_s3 + $0xcc] sm:$0xf] %vm1152_vm1, %v1442_v21  ;;  %v658_v24 = vadd.f32 %v1854_v10, %v657_v22  ;;  %v786_v25 = vadd.f32 %v1854_v10, %v785_v23  ;;  %v659_v26 = vpop.f32.mrb[41].mxu0  ;;  %v787_v27 = vpop.f32.mrb[41].mxu1 }
 0x14a   :  { %v660_v28 = vpop.f32.mrb[42].mxu0  ;;  %v788_v29 = vpop.f32.mrb[42].mxu1 }
 0x14b   :  { %v852_v30 = vmax.f32 %v658_v24, 0.0  ;;  %v884_v31 = vmax.f32 %v786_v25, 0.0  ;;  %v661_v32 = vadd.f32 %v1854_v10, %v660_v28  ;;  %v789_v33 = vadd.f32 %v1854_v10, %v788_v29  ;;  %v662_v34 = vpop.f32.mrb[43].mxu0  ;;  %v790_v35 = vpop.f32.mrb[43].mxu1 }
 0x14d   :  { %v1411_v36 = vpack.c.bf16 %v852_v30, %v852_v30  ;;  %v1443_v37 = vpack.c.bf16 %v884_v31, %v884_v31  ;;  %v853_v38 = vmax.f32 %v661_v32, 0.0  ;;  %v885_v39 = vmax.f32 %v789_v33, 0.0 }
 0x14f   :  { %1173 = vst.msk [vmem:[%s2179_s3 + $0x50] sm:$0xf] %vm1152_vm1, %v1411_v36  ;;  %1205 = vst.msk [vmem:[%s2179_s3 + $0xd0] sm:$0xf] %vm1152_vm1, %v1443_v37  ;;  %v1412_v40 = vpack.c.bf16 %v853_v38, %v853_v38  ;;  %v1444_v41 = vpack.c.bf16 %v885_v39, %v885_v39 }
 0x150   :  { %v665_v42 = vpop.f32.mrb[44].mxu0  ;;  %v793_v43 = vpop.f32.mrb[44].mxu1 }
 0x151   :  { %1174 = vst.msk [vmem:[%s2179_s3 + $0x54] sm:$0xf] %vm1152_vm1, %v1412_v40  ;;  %1206 = vst.msk [vmem:[%s2179_s3 + $0xd4] sm:$0xf] %vm1152_vm1, %v1444_v41  ;;  %v666_v44 = vadd.f32 %v1854_v10, %v665_v42  ;;  %v794_v45 = vadd.f32 %v1854_v10, %v793_v43  ;;  %v667_v46 = vpop.f32.mrb[45].mxu0  ;;  %v795_v47 = vpop.f32.mrb[45].mxu1 }
 0x152   :  { %v668_v48 = vpop.f32.mrb[46].mxu0  ;;  %v796_v49 = vpop.f32.mrb[46].mxu1 }
 0x153   :  { %v854_v50 = vmax.f32 %v666_v44, 0.0  ;;  %v886_v51 = vmax.f32 %v794_v45, 0.0  ;;  %v669_v52 = vadd.f32 %v1854_v10, %v668_v48  ;;  %v797_v53 = vadd.f32 %v1854_v10, %v796_v49  ;;  %v670_v54 = vpop.f32.mrb[47].mxu0  ;;  %v798_v55 = vpop.f32.mrb[47].mxu1 }
 0x155   :  { %v1413_v56 = vpack.c.bf16 %v854_v50, %v854_v50  ;;  %v1445_v57 = vpack.c.bf16 %v886_v51, %v886_v51  ;;  %v855_v58 = vmax.f32 %v669_v52, 0.0  ;;  %v887_v59 = vmax.f32 %v797_v53, 0.0 }
 0x157   :  { %1175 = vst.msk [vmem:[%s2179_s3 + $0x58] sm:$0xf] %vm1152_vm1, %v1413_v56  ;;  %1207 = vst.msk [vmem:[%s2179_s3 + $0xd8] sm:$0xf] %vm1152_vm1, %v1445_v57  ;;  %v1414_v60 = vpack.c.bf16 %v855_v58, %v855_v58  ;;  %v1446_v61 = vpack.c.bf16 %v887_v59, %v887_v59 }
 0x158   :  { %v673_v62 = vpop.f32.mrb[48].mxu0  ;;  %v801_v63 = vpop.f32.mrb[48].mxu1 }
 0x159   :  { %1176 = vst.msk [vmem:[%s2179_s3 + $0x5c] sm:$0xf] %vm1152_vm1, %v1414_v60  ;;  %1208 = vst.msk [vmem:[%s2179_s3 + $0xdc] sm:$0xf] %vm1152_vm1, %v1446_v61  ;;  %v674_v0 = vadd.f32 %v1854_v10, %v673_v62  ;;  %v802_v1 = vadd.f32 %v1854_v10, %v801_v63  ;;  %v675_v2 = vpop.f32.mrb[49].mxu0  ;;  %v803_v3 = vpop.f32.mrb[49].mxu1 }
 0x15a   :  { %v676_v4 = vpop.f32.mrb[50].mxu0  ;;  %v804_v5 = vpop.f32.mrb[50].mxu1 }
 0x15b   :  { %v856_v6 = vmax.f32 %v674_v0, 0.0  ;;  %v888_v7 = vmax.f32 %v802_v1, 0.0  ;;  %v677_v8 = vadd.f32 %v1854_v10, %v676_v4  ;;  %v805_v9 = vadd.f32 %v1854_v10, %v804_v5  ;;  %v678_v11 = vpop.f32.mrb[51].mxu0  ;;  %v806_v12 = vpop.f32.mrb[51].mxu1 }
 0x15d   :  { %v1415_v13 = vpack.c.bf16 %v856_v6, %v856_v6  ;;  %v1447_v14 = vpack.c.bf16 %v888_v7, %v888_v7  ;;  %v857_v15 = vmax.f32 %v677_v8, 0.0  ;;  %v889_v16 = vmax.f32 %v805_v9, 0.0 }
 0x15f   :  { %1177 = vst.msk [vmem:[%s2179_s3 + $0x60] sm:$0xf] %vm1152_vm1, %v1415_v13  ;;  %1209 = vst.msk [vmem:[%s2179_s3 + $0xe0] sm:$0xf] %vm1152_vm1, %v1447_v14  ;;  %v1416_v17 = vpack.c.bf16 %v857_v15, %v857_v15  ;;  %v1448_v18 = vpack.c.bf16 %v889_v16, %v889_v16 }
 0x160   :  { %v681_v19 = vpop.f32.mrb[52].mxu0  ;;  %v809_v20 = vpop.f32.mrb[52].mxu1 }
 0x161   :  { %1178 = vst.msk [vmem:[%s2179_s3 + $0x64] sm:$0xf] %vm1152_vm1, %v1416_v17  ;;  %1210 = vst.msk [vmem:[%s2179_s3 + $0xe4] sm:$0xf] %vm1152_vm1, %v1448_v18  ;;  %v682_v21 = vadd.f32 %v1854_v10, %v681_v19  ;;  %v810_v22 = vadd.f32 %v1854_v10, %v809_v20  ;;  %v683_v23 = vpop.f32.mrb[53].mxu0  ;;  %v811_v24 = vpop.f32.mrb[53].mxu1 }
 0x162   :  { %v684_v25 = vpop.f32.mrb[54].mxu0  ;;  %v812_v26 = vpop.f32.mrb[54].mxu1 }
 0x163   :  { %v858_v27 = vmax.f32 %v682_v21, 0.0  ;;  %v890_v28 = vmax.f32 %v810_v22, 0.0  ;;  %v685_v29 = vadd.f32 %v1854_v10, %v684_v25  ;;  %v813_v30 = vadd.f32 %v1854_v10, %v812_v26  ;;  %v686_v31 = vpop.f32.mrb[55].mxu0  ;;  %v814_v32 = vpop.f32.mrb[55].mxu1 }
 0x165   :  { %v1417_v33 = vpack.c.bf16 %v858_v27, %v858_v27  ;;  %v1449_v34 = vpack.c.bf16 %v890_v28, %v890_v28  ;;  %v859_v35 = vmax.f32 %v685_v29, 0.0  ;;  %v891_v36 = vmax.f32 %v813_v30, 0.0 }
 0x167   :  { %1179 = vst.msk [vmem:[%s2179_s3 + $0x68] sm:$0xf] %vm1152_vm1, %v1417_v33  ;;  %1211 = vst.msk [vmem:[%s2179_s3 + $0xe8] sm:$0xf] %vm1152_vm1, %v1449_v34  ;;  %v1418_v37 = vpack.c.bf16 %v859_v35, %v859_v35  ;;  %v1450_v38 = vpack.c.bf16 %v891_v36, %v891_v36 }
 0x168   :  { %v689_v39 = vpop.f32.mrb[56].mxu0  ;;  %v817_v40 = vpop.f32.mrb[56].mxu1 }
 0x169   :  { %1180 = vst.msk [vmem:[%s2179_s3 + $0x6c] sm:$0xf] %vm1152_vm1, %v1418_v37  ;;  %1212 = vst.msk [vmem:[%s2179_s3 + $0xec] sm:$0xf] %vm1152_vm1, %v1450_v38  ;;  %v690_v41 = vadd.f32 %v1854_v10, %v689_v39  ;;  %v818_v42 = vadd.f32 %v1854_v10, %v817_v40  ;;  %v691_v43 = vpop.f32.mrb[57].mxu0  ;;  %v819_v44 = vpop.f32.mrb[57].mxu1 }
 0x16a   :  { %v692_v45 = vpop.f32.mrb[58].mxu0  ;;  %v820_v46 = vpop.f32.mrb[58].mxu1 }
 0x16b   :  { %v860_v47 = vmax.f32 %v690_v41, 0.0  ;;  %v892_v48 = vmax.f32 %v818_v42, 0.0  ;;  %v693_v49 = vadd.f32 %v1854_v10, %v692_v45  ;;  %v821_v50 = vadd.f32 %v1854_v10, %v820_v46  ;;  %v694_v51 = vpop.f32.mrb[59].mxu0  ;;  %v822_v52 = vpop.f32.mrb[59].mxu1 }
 0x16d   :  { %v1419_v53 = vpack.c.bf16 %v860_v47, %v860_v47  ;;  %v1451_v54 = vpack.c.bf16 %v892_v48, %v892_v48  ;;  %v861_v55 = vmax.f32 %v693_v49, 0.0  ;;  %v893_v56 = vmax.f32 %v821_v50, 0.0 }
 0x16f   :  { %1181 = vst.msk [vmem:[%s2179_s3 + $0x70] sm:$0xf] %vm1152_vm1, %v1419_v53  ;;  %1213 = vst.msk [vmem:[%s2179_s3 + $0xf0] sm:$0xf] %vm1152_vm1, %v1451_v54  ;;  %v1420_v57 = vpack.c.bf16 %v861_v55, %v861_v55  ;;  %v1452_v58 = vpack.c.bf16 %v893_v56, %v893_v56 }
 0x170   :  { %v697_v59 = vpop.f32.mrb[60].mxu0  ;;  %v825_v60 = vpop.f32.mrb[60].mxu1 }
 0x171   :  { %1182 = vst.msk [vmem:[%s2179_s3 + $0x74] sm:$0xf] %vm1152_vm1, %v1420_v57  ;;  %1214 = vst.msk [vmem:[%s2179_s3 + $0xf4] sm:$0xf] %vm1152_vm1, %v1452_v58  ;;  %v698_v61 = vadd.f32 %v1854_v10, %v697_v59  ;;  %v826_v62 = vadd.f32 %v1854_v10, %v825_v60  ;;  %v699_v63 = vpop.f32.mrb[61].mxu0  ;;  %v827_v0 = vpop.f32.mrb[61].mxu1 }
 0x172   :  { %v700_v1 = vpop.f32.mrb[62].mxu0  ;;  %v828_v2 = vpop.f32.mrb[62].mxu1 }
 0x173   :  { %v862_v3 = vmax.f32 %v698_v61, 0.0  ;;  %v894_v4 = vmax.f32 %v826_v62, 0.0  ;;  %v701_v5 = vadd.f32 %v1854_v10, %v700_v1  ;;  %v829_v6 = vadd.f32 %v1854_v10, %v828_v2  ;;  %v702_v7 = vpop.f32.mrb[63].mxu0  ;;  %v830_v8 = vpop.f32.mrb[63].mxu1 }
 0x175   :  { %v1421_v9 = vpack.c.bf16 %v862_v3, %v862_v3  ;;  %v1453_v11 = vpack.c.bf16 %v894_v4, %v894_v4  ;;  %v863_v12 = vmax.f32 %v701_v5, 0.0  ;;  %v895_v13 = vmax.f32 %v829_v6, 0.0 }
 0x177   :  { %1183 = vst.msk [vmem:[%s2179_s3 + $0x78] sm:$0xf] %vm1152_vm1, %v1421_v9  ;;  %1215 = vst.msk [vmem:[%s2179_s3 + $0xf8] sm:$0xf] %vm1152_vm1, %v1453_v11  ;;  %v1422_v14 = vpack.c.bf16 %v863_v12, %v863_v12  ;;  %v1454_v15 = vpack.c.bf16 %v895_v13, %v895_v13 }
 0x179   :  { %1184 = vst.msk [vmem:[%s2179_s3 + $0x7c] sm:$0xf] %vm1152_vm1, %v1422_v14  ;;  %1216 = vst.msk [vmem:[%s2179_s3 + $0xfc] sm:$0xf] %vm1152_vm1, %v1454_v15 }

// kernel: _lambda_.12
= control target key start
LH: loop header
LB: loop body
LE: loop exit
PB: predicated region body
PF: predicated region fallthrough
CT: control target
= control target key end

     0   :  { %s1805_s27 = smov 0   ;;  %s2478_s0 = inlined_call_operand.vmem [shape: bf16[2,256,144], index: 0, kind: input, shape index: {}]   ;;  %s2479_s1 = inlined_call_operand.vmem [shape: bf16[144,16], index: 1, kind: input, shape index: {}]   ;;  %s2480_s2 = inlined_call_operand.vmem [shape: f32[1,16], index: 2, kind: input, shape index: {}]   ;;  %s2481_s3 = inlined_call_operand.vmem [shape: bf16[2,256,16], index: 3, kind: input, shape index: {}]   ;;  %s2482_s4 = inlined_call_operand.vmem [shape: f32[16,4], index: 4, kind: input, shape index: {}]   ;;  %s2483_s5 = inlined_call_operand.vmem [shape: f32[1,4], index: 5, kind: input, shape index: {}]   ;;  %s2484_s6 = inlined_call_operand.vmem [shape: f32[4,16], index: 6, kind: input, shape index: {}]   ;;  %s2485_s7 = inlined_call_operand.vmem [shape: f32[1,16], index: 7, kind: input, shape index: {}]   ;;  %s2486_s8 = inlined_call_operand.vmem [shape: bf16[2,256,16], index: 8, kind: output, shape index: {}]  }
   0x1 LB: > { %s1417_s28 = sadd.s32 4294967295, %s1754_s27   ;;  %p1421_p0 = scmp.ge.s32.totalorder %s1754_s27, 1  ;;  %s1754_s27 = sphi %s1805_s27, %s18_s27  }
   0x2   : > { %p272_p1 = scmp.lt.s32.totalorder %s1754_s27, 3 }
   0x4   : > { %p273_p2 = pnand %p1421_p0, %p272_p1 }
   0x5   : > { %v1687_v0 = vld [vmem:[%s2479_s1] sm:$0xff] (!%p273_p2)   ;;  %v1756_v1 = vmov (!%p273_p2), 0   ;;  %p311_p3 = scmp.lt.s32.totalorder (!%p273_p2), %s1417_s28, 1  ;;  %v1688_v2 = vld [vmem:[%s2479_s1 + $0x8] sm:$0xff] (!%p273_p2)   ;;  %v1689_v3 = vld [vmem:[%s2479_s1 + $0x10] sm:$0xff] (!%p273_p2)   ;;  %vm582_vm0 = vcmask (!%p273_p2), 130048  }
   0x6   : > { %276 = sbr.rel (%p273_p2) target bundleno = 876 (0x36c), region = 52  ;;  %631 = vmatprep.subr.bf16.mxu0 (!%p273_p2), %v1756_v1  ;;  %1657 = vmatprep.subr.bf16.mxu1 (!%p273_p2), %v1756_v1  ;;  %v1690_v4 = vld [vmem:[%s2479_s1 + $0x18] sm:$0xff] (!%p273_p2)   ;;  %v1691_v6 = vld [vmem:[%s2479_s1 + $0x20] sm:$0xff] (!%p273_p2)   ;;  %v1692_v7 = vld [vmem:[%s2479_s1 + $0x28] sm:$0xff] (!%p273_p2)   ;;  %v1757_v42 = vmov (!%p273_p2), 0.0|0.0   ;;  %vm1758_vm1 = vmmov (!%p273_p2), 0  }
   0x7   : > { %632 = vmatpush1.bf16.msra.mxu0 (!%p273_p2), %v1687_v0  ;;  %1666 = vmatpush1.bf16.msra.mxu1 (!%p273_p2), %v1687_v0  ;;  %v1693_v8 = vld [vmem:[%s2479_s1 + $0x30] sm:$0xff] (!%p273_p2)   ;;  %v1694_v10 = vld [vmem:[%s2479_s1 + $0x38] sm:$0xff] (!%p273_p2)   ;;  %v1695_v11 = vld [vmem:[%s2479_s1 + $0x40] sm:$0xff] (!%p273_p2)   ;;  %v1759_v46 = vmov (!%p273_p2), 0.0   ;;  %vm945_vm2 = vcmask (!%p273_p2), 1043456   ;;  %vm941_vm3 = vcmask (!%p273_p2), 31744  }
   0x8   : > { %633 = vmatprep.subr.bf16.mxu0 (!%p273_p2), %v1756_v1  ;;  %1658 = vmatprep.subr.bf16.mxu1 (!%p273_p2), %v1756_v1  ;;  %v862_v43 = vld [vmem:[%s2482_s4] sm:$0xff] (!%p273_p2)  ;;  %v863_v44 = vld [vmem:[%s2482_s4 + $0x8] sm:$0xff] (!%p273_p2)  ;;  %vm1317_vm4 = vcmask (!%p273_p2), 125952  }
   0x9   : > { %v1655_v45 = vpack.c.bf16 (!%p273_p2), %v863_v44, %v862_v43  ;;  %v1916_v63 = vld [vmem:[%s2480_s2] ss:$0 sm:$0xff] (!%p273_p2) }
   0xb   : > { %634 = vmatpush1.bf16.msra.mxu0 (!%p273_p2), %v1688_v2  ;;  %1667 = vmatpush1.bf16.msra.mxu1 (!%p273_p2), %v1688_v2 }
   0xc   : > { %635 = vmatprep.subr.bf16.mxu0 (!%p273_p2), %v1756_v1  ;;  %1659 = vmatprep.subr.bf16.mxu1 (!%p273_p2), %v1756_v1 }
   0xd   : > { %s2515_s28 = smov (!%p311_p3, %s1417_s28), 1 }
   0xe   : > { %s1523_s11 = sshll.u32 %s2515_s28, 8  ;;  %s1524_s21 = sshll.u32 %s2515_s28, 7 }
   0xf   : > { %s1828_s16 = scalar_lea.vmem %s2478_s0, %s1523_s11  ;;  %636 = vmatpush1.bf16.msra.mxu0 %v1689_v3  ;;  %1668 = vmatpush1.bf16.msra.mxu1 %v1689_v3  ;;  %s2130_s24 = scalar_lea.vmem %s2481_s3, %s1524_s21 }
  0x10   : > { %v1698_v5 = vld [vmem:[%s1828_s16 + $0x4] ss:$8 sps:$4 sm:$0xff]   ;;  %637 = vmatprep.subr.bf16.mxu0 %v1756_v1  ;;  %1660 = vmatprep.subr.bf16.mxu1 %v1756_v1  ;;  %v1716_v9 = vld [vmem:[%s1828_s16 + $0x94] ss:$8 sps:$4 sm:$0xff]   ;;  %v1696_v12 = vld [vmem:[%s1828_s16] ss:$8 sps:$4 sm:$0xff]   ;;  %s2405_s29 = scalar_lea.vmem %s2486_s8, %s1524_s21 }
  0x11   : > { %1470 = vmatprep.mubr.msk.bf16.mxu0 %vm582_vm0, %v1698_v5  ;;  %1479 = vmatprep.mubr.msk.bf16.mxu1 %vm582_vm0, %v1716_v9  ;;  %v1699_v13 = vld [vmem:[%s1828_s16 + $0x14] ss:$8 sps:$4 sm:$0xff]   ;;  %v1714_v14 = vld [vmem:[%s1828_s16 + $0x90] ss:$8 sps:$4 sm:$0xff]   ;;  %v1720_v15 = vld [vmem:[%s1828_s16 + $0xa4] ss:$8 sps:$4 sm:$0xff]  }
  0x12   : > { %v1701_v16 = vld [vmem:[%s1828_s16 + $0x10] ss:$8 sps:$4 sm:$0xff]   ;;  %v1722_v17 = vld [vmem:[%s1828_s16 + $0xa0] ss:$8 sps:$4 sm:$0xff]   ;;  %v1702_v18 = vld [vmem:[%s1828_s16 + $0x24] ss:$8 sps:$4 sm:$0xff]  }
  0x13   : > { %638 = vmatpush1.bf16.msra.mxu0 %v1690_v4  ;;  %1669 = vmatpush1.bf16.msra.mxu1 %v1690_v4  ;;  %v1726_v19 = vld [vmem:[%s1828_s16 + $0xb4] ss:$8 sps:$4 sm:$0xff]   ;;  %v1704_v20 = vld [vmem:[%s1828_s16 + $0x20] ss:$8 sps:$4 sm:$0xff]   ;;  %v1728_v21 = vld [vmem:[%s1828_s16 + $0xb0] ss:$8 sps:$4 sm:$0xff]  }
  0x14   : > { %639 = vmatprep.subr.bf16.mxu0 %v1756_v1  ;;  %1661 = vmatprep.subr.bf16.mxu1 %v1756_v1  ;;  %v1705_v22 = vld [vmem:[%s1828_s16 + $0x34] ss:$8 sps:$4 sm:$0xff]   ;;  %v1732_v23 = vld [vmem:[%s1828_s16 + $0xc4] ss:$8 sps:$4 sm:$0xff]   ;;  %v1707_v24 = vld [vmem:[%s1828_s16 + $0x30] ss:$8 sps:$4 sm:$0xff]  }
  0x15   : > { %v1734_v25 = vld [vmem:[%s1828_s16 + $0xc0] ss:$8 sps:$4 sm:$0xff]   ;;  %v1708_v26 = vld [vmem:[%s1828_s16 + $0x44] ss:$8 sps:$4 sm:$0xff]   ;;  %v1735_v27 = vld [vmem:[%s1828_s16 + $0xd4] ss:$8 sps:$4 sm:$0xff]  }
  0x16   : > { %v1710_v28 = vld [vmem:[%s1828_s16 + $0x40] ss:$8 sps:$4 sm:$0xff]   ;;  %v1737_v29 = vld [vmem:[%s1828_s16 + $0xd0] ss:$8 sps:$4 sm:$0xff]   ;;  %v1711_v30 = vld [vmem:[%s1828_s16 + $0x54] ss:$8 sps:$4 sm:$0xff]  }
  0x17   : > { %640 = vmatpush1.bf16.msra.mxu0 %v1691_v6  ;;  %1670 = vmatpush1.bf16.msra.mxu1 %v1691_v6  ;;  %v1738_v31 = vld [vmem:[%s1828_s16 + $0xe4] ss:$8 sps:$4 sm:$0xff]   ;;  %v1713_v32 = vld [vmem:[%s1828_s16 + $0x50] ss:$8 sps:$4 sm:$0xff]   ;;  %v1740_v33 = vld [vmem:[%s1828_s16 + $0xe0] ss:$8 sps:$4 sm:$0xff]  }
  0x18   : > { %641 = vmatprep.subr.bf16.mxu0 %v1756_v1  ;;  %1662 = vmatprep.subr.bf16.mxu1 %v1756_v1  ;;  %v1717_v34 = vld [vmem:[%s1828_s16 + $0x64] ss:$8 sps:$4 sm:$0xff]   ;;  %v1741_v35 = vld [vmem:[%s1828_s16 + $0xf4] ss:$8 sps:$4 sm:$0xff]   ;;  %v1719_v36 = vld [vmem:[%s1828_s16 + $0x60] ss:$8 sps:$4 sm:$0xff]  }
  0x19   : > { %v1743_v37 = vld [vmem:[%s1828_s16 + $0xf0] ss:$8 sps:$4 sm:$0xff]   ;;  %v1723_v38 = vld [vmem:[%s1828_s16 + $0x74] ss:$8 sps:$4 sm:$0xff]   ;;  %v1729_v40 = vld [vmem:[%s1828_s16 + $0x84] ss:$8 sps:$4 sm:$0xff]  }
  0x1a   : > { %v1725_v39 = vld [vmem:[%s1828_s16 + $0x70] ss:$8 sps:$4 sm:$0xff]   ;;  %v1731_v41 = vld [vmem:[%s1828_s16 + $0x80] ss:$8 sps:$4 sm:$0xff]  }
  0x1b   : > { %642 = vmatpush1.bf16.msra.mxu0 %v1692_v7  ;;  %1671 = vmatpush1.bf16.msra.mxu1 %v1692_v7 }
  0x1c   : > { %643 = vmatprep.subr.bf16.mxu0 %v1756_v1  ;;  %1663 = vmatprep.subr.bf16.mxu1 %v1756_v1 }
  0x1f   : > { %644 = vmatpush1.bf16.msra.mxu0 %v1693_v8  ;;  %1672 = vmatpush1.bf16.msra.mxu1 %v1693_v8 }
  0x20   : > { %645 = vmatprep.subr.bf16.mxu0 %v1756_v1  ;;  %1664 = vmatprep.subr.bf16.mxu1 %v1756_v1 }
  0x23   : > { %646 = vmatpush1.bf16.msra.mxu0 %v1694_v10  ;;  %1673 = vmatpush1.bf16.msra.mxu1 %v1694_v10 }
  0x24   : > { %647 = vmatprep.subr.bf16.mxu0 %v1756_v1  ;;  %1665 = vmatprep.subr.bf16.mxu1 %v1756_v1 }
  0x27   : > { %648 = vmatpush1.bf16.msra.mxu0 %v1695_v11  ;;  %1674 = vmatpush1.bf16.msra.mxu1 %v1695_v11 }
  0x28   : > { %1654 = vmatprep.subr.bf16.mxu1 %v1757_v42 }
  0x2a   : > { %664 = vmatmul.mubr.bf16.vlgmr.msra.gmra.mrb[0].mxu0 %v1696_v12  ;;  %736 = vmatmul.mubr.bf16.vlgmr.msra.gmra.mrb[0].mxu1 %v1714_v14 }
  0x2b   : > { %1471 = vmatprep.mubr.msk.bf16.mxu0 %vm582_vm0, %v1699_v13  ;;  %1480 = vmatprep.mubr.msk.bf16.mxu1 %vm582_vm0, %v1720_v15 }
  0x2c   : > { %1656 = vmatpush3.bf16.msra.mxu1 %v1655_v45 }
  0x2d   : > { %1649 = vmatprep.subr.mxu1 %v1759_v46 }
  0x32   : > { %672 = vmatmul.mubr.bf16.gmra.mrb[4].mxu0 %v1701_v16  ;;  %744 = vmatmul.mubr.bf16.gmra.mrb[4].mxu1 %v1722_v17 }
  0x33   : > { %1472 = vmatprep.mubr.msk.bf16.mxu0 %vm582_vm0, %v1702_v18  ;;  %1481 = vmatprep.mubr.msk.bf16.mxu1 %vm582_vm0, %v1726_v19 }
  0x3a   : > { %680 = vmatmul.mubr.bf16.gmra.mrb[8].mxu0 %v1704_v20  ;;  %752 = vmatmul.mubr.bf16.gmra.mrb[8].mxu1 %v1728_v21 }
  0x3b   : > { %1473 = vmatprep.mubr.msk.bf16.mxu0 %vm582_vm0, %v1705_v22  ;;  %1482 = vmatprep.mubr.msk.bf16.mxu1 %vm582_vm0, %v1732_v23 }
  0x42   : > { %688 = vmatmul.mubr.bf16.gmra.mrb[12].mxu0 %v1707_v24  ;;  %760 = vmatmul.mubr.bf16.gmra.mrb[12].mxu1 %v1734_v25 }
  0x43   : > { %1474 = vmatprep.mubr.msk.bf16.mxu0 %vm582_vm0, %v1708_v26  ;;  %1483 = vmatprep.mubr.msk.bf16.mxu1 %vm582_vm0, %v1735_v27 }
  0x4a   : > { %696 = vmatmul.mubr.bf16.gmra.mrb[16].mxu0 %v1710_v28  ;;  %768 = vmatmul.mubr.bf16.gmra.mrb[16].mxu1 %v1737_v29 }
  0x4b   : > { %1475 = vmatprep.mubr.msk.bf16.mxu0 %vm582_vm0, %v1711_v30  ;;  %1484 = vmatprep.mubr.msk.bf16.mxu1 %vm582_vm0, %v1738_v31 }
  0x52   : > { %704 = vmatmul.mubr.bf16.gmra.mrb[20].mxu0 %v1713_v32  ;;  %776 = vmatmul.mubr.bf16.gmra.mrb[20].mxu1 %v1740_v33 }
  0x53   : > { %1476 = vmatprep.mubr.msk.bf16.mxu0 %vm582_vm0, %v1717_v34  ;;  %1485 = vmatprep.mubr.msk.bf16.mxu1 %vm582_vm0, %v1741_v35 }
  0x5a   : > { %712 = vmatmul.mubr.bf16.gmra.mrb[24].mxu0 %v1719_v36  ;;  %784 = vmatmul.mubr.bf16.gmra.mrb[24].mxu1 %v1743_v37 }
  0x5b   : > { %1477 = vmatprep.mubr.msk.bf16.mxu0 %vm582_vm0, %v1723_v38  ;;  %1646 = vmatprep.mubr.msk.f32.mxu1 %vm1758_vm1, %v1759_v46 }
  0x62   : > { %720 = vmatmul.mubr.bf16.gmra.mrb[28].mxu0 %v1725_v39 }
  0x63   : > { %1478 = vmatprep.mubr.msk.bf16.mxu0 %vm582_vm0, %v1729_v40 }
  0x6a   : > { %728 = vmatmul.mubr.bf16.gmra.mrb[32].mxu0 %v1731_v41 }
  0xfd   : > { %v665_v47 = vpop.f32.mrb[0].mxu0  ;;  %v1905_v48 = vpop.f32.mrb[0].mxu1 }
  0xfe   : > { %v667_v49 = vpop.f32.mrb[1].mxu0  ;;  %v739_v50 = vpop.f32.mrb[1].mxu1  ;;  %v1926_v7 = vadd.f32 %v1916_v63, %v665_v47 }
  0xff   : > { %v668_v51 = vpop.f32.mrb[2].mxu0  ;;  %v1907_v52 = vpop.f32.mrb[2].mxu1 }
 0x100   : > { %v670_v53 = vpop.f32.mrb[3].mxu0  ;;  %v742_v54 = vpop.f32.mrb[3].mxu1  ;;  %v1921_v2 = vadd.f32 %v1916_v63, %v668_v51  ;;  %v792_v12 = vsel %vm582_vm0, %v1926_v7, 0.0 }
 0x102   : > { %v793_v11 = vsel %vm582_vm0, %v1921_v2, 0.0 }
 0x103   : > { %v794_v15 = vadd.f32 %v793_v11, %v792_v12 }
 0x105   : > { %v673_v55 = vpop.f32.mrb[4].mxu0  ;;  %v1909_v56 = vpop.f32.mrb[4].mxu1 }
 0x106   : > { %v675_v57 = vpop.f32.mrb[5].mxu0  ;;  %v747_v58 = vpop.f32.mrb[5].mxu1  ;;  %v1929_v8 = vadd.f32 %v1916_v63, %v673_v55 }
 0x107   : > { %v676_v59 = vpop.f32.mrb[6].mxu0  ;;  %v1911_v60 = vpop.f32.mrb[6].mxu1 }
 0x108   : > { %v678_v61 = vpop.f32.mrb[7].mxu0  ;;  %v750_v62 = vpop.f32.mrb[7].mxu1  ;;  %v795_v13 = vsel %vm582_vm0, %v1929_v8, 0.0  ;;  %v1938_v14 = vadd.f32 %v1916_v63, %v676_v59 }
 0x109   : > { %v796_v21 = vadd.f32 %v795_v13, %v794_v15 }
 0x10a   : > { %v797_v24 = vsel %vm582_vm0, %v1938_v14, 0.0 }
 0x10b   : > { %v798_v29 = vadd.f32 %v797_v24, %v796_v21 }
 0x10d   : > { %v681_v0 = vpop.f32.mrb[8].mxu0  ;;  %v1918_v1 = vpop.f32.mrb[8].mxu1 }
 0x10e   : > { %v683_v3 = vpop.f32.mrb[9].mxu0  ;;  %v755_v4 = vpop.f32.mrb[9].mxu1  ;;  %v1943_v18 = vadd.f32 %v1916_v63, %v681_v0 }
 0x10f   : > { %v684_v5 = vpop.f32.mrb[10].mxu0  ;;  %v1923_v6 = vpop.f32.mrb[10].mxu1 }
 0x110   : > { %v686_v9 = vpop.f32.mrb[11].mxu0  ;;  %v758_v10 = vpop.f32.mrb[11].mxu1  ;;  %v799_v27 = vsel %vm582_vm0, %v1943_v18, 0.0  ;;  %v1952_v28 = vadd.f32 %v1916_v63, %v684_v5 }
 0x111   : > { %v800_v31 = vadd.f32 %v799_v27, %v798_v29 }
 0x112   : > { %v801_v34 = vsel %vm582_vm0, %v1952_v28, 0.0 }
 0x113   : > { %v802_v43 = vadd.f32 %v801_v34, %v800_v31 }
 0x115   : > { %v689_v16 = vpop.f32.mrb[12].mxu0  ;;  %v1940_v17 = vpop.f32.mrb[12].mxu1 }
 0x116   : > { %v691_v19 = vpop.f32.mrb[13].mxu0  ;;  %v763_v20 = vpop.f32.mrb[13].mxu1  ;;  %v1955_v30 = vadd.f32 %v1916_v63, %v689_v16 }
 0x117   : > { %v692_v22 = vpop.f32.mrb[14].mxu0  ;;  %v1945_v23 = vpop.f32.mrb[14].mxu1 }
 0x118   : > { %v694_v25 = vpop.f32.mrb[15].mxu0  ;;  %v766_v26 = vpop.f32.mrb[15].mxu1  ;;  %v803_v39 = vsel %vm582_vm0, %v1955_v30, 0.0  ;;  %v1966_v40 = vadd.f32 %v1916_v63, %v692_v22 }
 0x119   : > { %v804_v45 = vadd.f32 %v803_v39, %v802_v43 }
 0x11a   : > { %v805_v47 = vsel %vm582_vm0, %v1966_v40, 0.0 }
 0x11b   : > { %v806_v57 = vadd.f32 %v805_v47, %v804_v45 }
 0x11d   : > { %v697_v32 = vpop.f32.mrb[16].mxu0  ;;  %v1957_v33 = vpop.f32.mrb[16].mxu1 }
 0x11e   : > { %v699_v35 = vpop.f32.mrb[17].mxu0  ;;  %v771_v36 = vpop.f32.mrb[17].mxu1  ;;  %v1969_v44 = vadd.f32 %v1916_v63, %v697_v32 }
 0x11f   : > { %v700_v37 = vpop.f32.mrb[18].mxu0  ;;  %v1961_v38 = vpop.f32.mrb[18].mxu1 }
 0x120   : > { %v702_v41 = vpop.f32.mrb[19].mxu0  ;;  %v774_v42 = vpop.f32.mrb[19].mxu1  ;;  %v807_v51 = vsel %vm582_vm0, %v1969_v44, 0.0  ;;  %v1978_v53 = vadd.f32 %v1916_v63, %v700_v37 }
 0x121   : > { %v808_v3 = vadd.f32 %v807_v51, %v806_v57 }
 0x122   : > { %v809_v4 = vsel %vm582_vm0, %v1978_v53, 0.0 }
 0x123   : > { %v810_v10 = vadd.f32 %v809_v4, %v808_v3 }
 0x125   : > { %v705_v49 = vpop.f32.mrb[20].mxu0  ;;  %v1973_v50 = vpop.f32.mrb[20].mxu1 }
 0x126   : > { %v707_v54 = vpop.f32.mrb[21].mxu0  ;;  %v779_v55 = vpop.f32.mrb[21].mxu1  ;;  %v1983_v61 = vadd.f32 %v1916_v63, %v705_v49 }
 0x127   : > { %v708_v58 = vpop.f32.mrb[22].mxu0  ;;  %v1980_v59 = vpop.f32.mrb[22].mxu1 }
 0x128   : > { %v710_v62 = vpop.f32.mrb[23].mxu0  ;;  %v782_v0 = vpop.f32.mrb[23].mxu1  ;;  %v811_v5 = vsel %vm582_vm0, %v1983_v61, 0.0  ;;  %v1990_v9 = vadd.f32 %v1916_v63, %v708_v58  ;;  %v2023_v58 = vadd.f32 %v1916_v63, %v1905_v48 }
 0x129   : > { %v812_v19 = vadd.f32 %v811_v5, %v810_v10  ;;  %v2032_v5 = vadd.f32 %v1916_v63, %v1907_v52 }
 0x12a   : > { %v813_v22 = vsel %vm582_vm0, %v1990_v9, 0.0  ;;  %v827_v48 = vsel %vm582_vm0, %v2023_v58, 0.0 }
 0x12b   : > { %v814_v29 = vadd.f32 %v813_v22, %v812_v19  ;;  %v829_v19 = vsel %vm582_vm0, %v2032_v5, 0.0 }
 0x12d   : > { %v713_v11 = vpop.f32.mrb[24].mxu0  ;;  %v1992_v12 = vpop.f32.mrb[24].mxu1 }
 0x12e   : > { %v1995_v13 = vadd.f32 %v1916_v63, %v713_v11  ;;  %v715_v15 = vpop.f32.mrb[25].mxu0  ;;  %v787_v16 = vpop.f32.mrb[25].mxu1 }
 0x12f   : > { %v716_v20 = vpop.f32.mrb[26].mxu0  ;;  %v1997_v21 = vpop.f32.mrb[26].mxu1  ;;  %v2040_v15 = vadd.f32 %v1916_v63, %v1909_v56 }
 0x130   : > { %v718_v24 = vpop.f32.mrb[27].mxu0  ;;  %v790_v25 = vpop.f32.mrb[27].mxu1  ;;  %v815_v26 = vsel %vm582_vm0, %v1995_v13, 0.0  ;;  %v2004_v27 = vadd.f32 %v1916_v63, %v716_v20  ;;  %v2046_v20 = vadd.f32 %v1916_v63, %v1911_v60 }
 0x131   : > { %v816_v31 = vadd.f32 %v815_v26, %v814_v29  ;;  %v831_v22 = vsel %vm582_vm0, %v2040_v15, 0.0  ;;  %v2052_v24 = vadd.f32 %v1916_v63, %v1918_v1  ;;  %v2058_v26 = vadd.f32 %v1916_v63, %v1923_v6 }
 0x132   : > { %v817_v34 = vsel %vm582_vm0, %v2004_v27, 0.0  ;;  %v833_v56 = vsel %vm582_vm0, %v2046_v20, 0.0 }
 0x133   : > { %v818_v43 = vadd.f32 %v817_v34, %v816_v31  ;;  %v835_v60 = vsel %vm582_vm0, %v2052_v24, 0.0  ;;  %v2064_v31 = vadd.f32 %v1916_v63, %v1940_v17  ;;  %v837_v1 = vsel %vm582_vm0, %v2058_v26, 0.0 }
 0x134   : > { %v2070_v34 = vadd.f32 %v1916_v63, %v1945_v23 }
 0x135   : > { %v721_v32 = vpop.f32.mrb[28].mxu0  ;;  %v839_v6 = vsel %vm582_vm0, %v2064_v31, 0.0 }
 0x136   : > { %v2009_v35 = vadd.f32 %v1916_v63, %v721_v32  ;;  %v723_v36 = vpop.f32.mrb[29].mxu0  ;;  %v841_v17 = vsel %vm582_vm0, %v2070_v34, 0.0 }
 0x137   : > { %v724_v37 = vpop.f32.mrb[30].mxu0 }
 0x138   : > { %v819_v39 = vsel %vm582_vm0, %v2009_v35, 0.0  ;;  %v2014_v41 = vadd.f32 %v1916_v63, %v724_v37  ;;  %v726_v42 = vpop.f32.mrb[31].mxu0  ;;  %v2076_v37 = vadd.f32 %v1916_v63, %v1957_v33 }
 0x139   : > { %v820_v45 = vadd.f32 %v819_v39, %v818_v43  ;;  %v2082_v42 = vadd.f32 %v1916_v63, %v1961_v38  ;;  %v2098_v38 = vadd.f32 %v1916_v63, %v1992_v12 }
 0x13a   : > { %v821_v47 = vsel %vm582_vm0, %v2014_v41, 0.0  ;;  %v843_v23 = vsel %vm582_vm0, %v2076_v37, 0.0 }
 0x13b   : > { %v822_v55 = vadd.f32 %v821_v47, %v820_v45  ;;  %v2088_v45 = vadd.f32 %v1916_v63, %v1973_v50  ;;  %v845_v33 = vsel %vm582_vm0, %v2082_v42, 0.0 }
 0x13d   : > { %v729_v49 = vpop.f32.mrb[32].mxu0 }
 0x13e   : > { %v2019_v51 = vadd.f32 %v1916_v63, %v729_v49  ;;  %v731_v54 = vpop.f32.mrb[33].mxu0  ;;  %v2094_v49 = vadd.f32 %v1916_v63, %v1980_v59 }
 0x13f   : > { %v732_v57 = vpop.f32.mrb[34].mxu0 }
 0x140   : > { %v823_v62 = vsel %vm582_vm0, %v2019_v51, 0.0  ;;  %v2028_v0 = vadd.f32 %v1916_v63, %v732_v57  ;;  %v734_v3 = vpop.f32.mrb[35].mxu0  ;;  %v849_v50 = vsel %vm582_vm0, %v2094_v49, 0.0 }
 0x141   : > { %v824_v4 = vadd.f32 %v823_v62, %v822_v55  ;;  %v847_v55 = vsel %vm582_vm0, %v2088_v45, 0.0  ;;  %v851_v62 = vsel %vm582_vm0, %v2098_v38, 0.0  ;;  %v2108_v3 = vadd.f32 %v1916_v63, %v1997_v21  ;;  %v939_v63 = vld [vmem:[%s2484_s6] sm:$0xf] }
 0x142   : > { %v825_v10 = vsel %vm582_vm0, %v2028_v0, 0.0  ;;  %v864_v21 = vld [vmem:[%s2483_s5] sm:$0x1] }
 0x143   : > { %v826_v11 = vadd.f32 %v825_v10, %v824_v4  ;;  %v853_v12 = vsel %vm582_vm0, %v2108_v3, 0.0 }
 0x145   : > { %v828_v16 = vadd.f32 %v827_v48, %v826_v11 }
 0x147   : > { %v830_v52 = vadd.f32 %v829_v19, %v828_v16 }
 0x149   : > { %v832_v25 = vadd.f32 %v831_v22, %v830_v52 }
 0x14b   : > { %v834_v29 = vadd.f32 %v833_v56, %v832_v25 }
 0x14d   : > { %v836_v32 = vadd.f32 %v835_v60, %v834_v29 }
 0x14f   : > { %v838_v36 = vadd.f32 %v837_v1, %v836_v32 }
 0x151   : > { %v840_v39 = vadd.f32 %v839_v6, %v838_v36 }
 0x153   : > { %v842_v43 = vadd.f32 %v841_v17, %v840_v39 }
 0x155   : > { %v844_v47 = vadd.f32 %v843_v23, %v842_v43 }
 0x157   : > { %v846_v54 = vadd.f32 %v845_v33, %v844_v47  ;;  %v1025_v47 = vlaneseq  ;;  %v2133_v33 = vld [vmem:[%s2130_s24] sm:$0xff]  }
 0x159   : > { %v848_v57 = vadd.f32 %v847_v55, %v846_v54  ;;  %v2136_v54 = vld [vmem:[%s2130_s24 + $0x8] sm:$0xff]   ;;  %v2139_v55 = vld [vmem:[%s2130_s24 + $0x10] sm:$0xff]  }
 0x15b   : > { %v850_v59 = vadd.f32 %v849_v50, %v848_v57  ;;  %v2142_v57 = vld [vmem:[%s2130_s24 + $0x18] sm:$0xff]   ;;  %v2145_v50 = vld [vmem:[%s2130_s24 + $0x20] sm:$0xff]  }
 0x15d   : > { %v852_v4 = vadd.f32 %v851_v62, %v850_v59  ;;  %v1026_v62 = vshrl.u32 %v1025_v47, 7  ;;  %v1560_v59 = vunpack.c.l.bf16 %v2133_v33 }
 0x15f   : > { %v854_v10 = vadd.f32 %v853_v12, %v852_v4  ;;  %v1561_v4 = vunpack.c.h.bf16 %v2133_v33  ;;  %v2150_v12 = vld [vmem:[%s2130_s24 + $0x28] sm:$0xff]  }
 0x161   : > { %v855_v11 = vrot.slane %v854_v10, 4 }
 0x163   : > { %v856_v48 = vadd.f32 %v855_v11, %v854_v10  ;;  %v2153_v10 = vld [vmem:[%s2130_s24 + $0x30] sm:$0xff]   ;;  %v1564_v11 = vunpack.c.l.bf16 %v2136_v54 }
 0x165   : > { %v857_v16 = vrot.slane %v856_v48, 2 }
 0x167   : > { %v858_v19 = vadd.f32 %v857_v16, %v856_v48 }
 0x169   : > { %v859_v52 = vrot.slane %v858_v19, 1 }
 0x16b   : > { %v860_v22 = vadd.f32 %v859_v52, %v858_v19  ;;  %v2160_v52 = vld [vmem:[%s2130_s24 + $0x38] sm:$0xff]  }
 0x16d   : > { %v861_v25 = vmul.f32 0.00390625, %v860_v22  ;;  %v2163_v22 = vld [vmem:[%s2130_s24 + $0x40] sm:$0xff]  }
 0x16f   : > { %1647 = vmatmul.mubr.msk.f32.vlgmr.msra.gmra.mrb[28].mxu1 %vm582_vm0, %v861_v25 }
 0x170   : > { %1651 = vmatprep.mubr.msk.f32.mxu1 %vm1758_vm1, %v1759_v46  ;;  %1650 = vmatpush3.msk.msra.mxu1 %vm945_vm2, %v939_v63  ;;  %v940_v46 = vld [vmem:[%s2485_s7] sm:$0x1]  ;;  %v2196_v63 = vld [vmem:[%s2130_s24 + $0x70] sm:$0xff]  }
 0x171   : > { %v1616_v19 = vunpack.c.l.bf16 %v2196_v63 }
 0x242   : > { %v934_v56 = vpop.f32.mrb[28].mxu1 }
 0x243   : > { %v935_v29 = vadd.f32 %v934_v56, %v864_v21  ;;  %v1648_v60 = vpop.f32.mrb[29].mxu1  ;;  %v2189_v56 = vld [vmem:[%s2130_s24 + $0x68] sm:$0xff]  }
 0x244   : > { %v2173_v60 = vld [vmem:[%s2130_s24 + $0x50] sm:$0xff]  }
 0x245   : > { %v938_v32 = vmax.f32 %v935_v29, 0.0  ;;  %v2170_v29 = vld [vmem:[%s2130_s24 + $0x48] sm:$0xff]  }
 0x247   : > { %1652 = vmatmul.mubr.msk.f32.vlgmr.msra.gmra.mrb[30].mxu1 %vm941_vm3, %v938_v32 }
 0x31a   : > { %v1015_v1 = vpop.f32.mrb[30].mxu1 }
 0x31b   : > { %v1016_v36 = vadd.f32 %v1015_v1, %v940_v46  ;;  %v1653_v6 = vpop.f32.mrb[31].mxu1  ;;  %v1613_v1 = vunpack.c.h.bf16 %v2189_v56 }
 0x31c   : > { %v2182_v6 = vld [vmem:[%s2130_s24 + $0x60] sm:$0xff]  }
 0x31d   : > { %v1019_v39 = vsub.f32 0.0, %v1016_v36  ;;  %v2179_v36 = vld [vmem:[%s2130_s24 + $0x58] sm:$0xff]  }
 0x31f   : > { %v1020_v17 = vmul.f32 1.442695, %v1019_v39  ;;  %v1027_v39 = vsub.s32 0, %v1026_v62  ;;  %v2199_v62 = vld [vmem:[%s2130_s24 + $0x78] sm:$0xff]  }
 0x321   : > { %1744 = vpow2.f32 %v1020_v17 }
 0x32b   : > { %v1745_v43 = vpop.eup %1744 }
 0x32c   : > { %v1022_v23 = vadd.f32 1.0, %v1745_v43 }
 0x32e   : > { %1746 = vrcp.f32 %v1022_v23 }
 0x338   : > { %v1747_v17 = vpop.eup %1746 }
 0x339   : > { %v1028_v21 = vrot.slane %v1747_v17, %v1027_v39 }
 0x33b   : > { %v1029_v23 = vmul.f32 %v1028_v21, %v1926_v7  ;;  %v1030_v47 = vmul.f32 %v1028_v21, %v1921_v2  ;;  %v1031_v25 = vmul.f32 %v1028_v21, %v1929_v8  ;;  %v1032_v32 = vmul.f32 %v1028_v21, %v1938_v14 }
 0x33c   : > { %v1033_v46 = vmul.f32 %v1028_v21, %v1943_v18  ;;  %v1034_v39 = vmul.f32 %v1028_v21, %v1952_v28  ;;  %v1035_v17 = vmul.f32 %v1028_v21, %v1955_v30  ;;  %v1036_v16 = vmul.f32 %v1028_v21, %v1966_v40 }
 0x33d   : > { %v1037_v48 = vmul.f32 %v1028_v21, %v1969_v44  ;;  %v1038_v43 = vmul.f32 %v1028_v21, %v1978_v53  ;;  %v1039_v7 = vmul.f32 %v1028_v21, %v1983_v61  ;;  %v1040_v2 = vmul.f32 %v1028_v21, %v1990_v9 }
 0x33e   : > { %v1041_v8 = vmul.f32 %v1028_v21, %v1995_v13  ;;  %v1042_v14 = vmul.f32 %v1028_v21, %v2004_v27  ;;  %v1043_v18 = vmul.f32 %v1028_v21, %v2009_v35  ;;  %v1044_v28 = vmul.f32 %v1028_v21, %v2014_v41 }
 0x33f   : > { %v1045_v30 = vmul.f32 %v1028_v21, %v2019_v51  ;;  %v1046_v40 = vmul.f32 %v1028_v21, %v2028_v0  ;;  %v1047_v44 = vmul.f32 %v1028_v21, %v2023_v58  ;;  %v1048_v53 = vmul.f32 %v1028_v21, %v2032_v5 }
 0x340   : > { %v1049_v61 = vmul.f32 %v1028_v21, %v2040_v15  ;;  %v1050_v9 = vmul.f32 %v1028_v21, %v2046_v20  ;;  %v1051_v13 = vmul.f32 %v1028_v21, %v2052_v24  ;;  %v1052_v27 = vmul.f32 %v1028_v21, %v2058_v26 }
 0x341   : > { %v1053_v35 = vmul.f32 %v1028_v21, %v2064_v31  ;;  %v1054_v41 = vmul.f32 %v1028_v21, %v2070_v34  ;;  %v1055_v51 = vmul.f32 %v1028_v21, %v2076_v37  ;;  %v1056_v0 = vmul.f32 %v1028_v21, %v2082_v42 }
 0x342   : > { %v1057_v58 = vmul.f32 %v1028_v21, %v2088_v45  ;;  %v1058_v5 = vmul.f32 %v1028_v21, %v2094_v49  ;;  %v1059_v15 = vmul.f32 %v1028_v21, %v2098_v38  ;;  %v1060_v20 = vmul.f32 %v1028_v21, %v2108_v3 }
 0x343   : > { %v2246_v24 = vadd.f32 %v1560_v59, %v1029_v23  ;;  %v2250_v26 = vadd.f32 %v1561_v4, %v1030_v47  ;;  %v2254_v31 = vadd.f32 %v1564_v11, %v1031_v25  ;;  %v2487_v34 = vunpack.c.h.bf16 %v2136_v54 }
 0x344   : > { %v2488_v42 = vunpack.c.l.bf16 %v2139_v55  ;;  %v2489_v49 = vunpack.c.h.bf16 %v2139_v55  ;;  %v2490_v3 = vunpack.c.l.bf16 %v2142_v57  ;;  %v2491_v59 = vunpack.c.h.bf16 %v2142_v57 }
 0x345   : > { %v2258_v37 = vadd.f32 %v2487_v34, %v1032_v32  ;;  %v2492_v54 = vunpack.c.l.bf16 %v2145_v50  ;;  %v2493_v25 = vunpack.c.h.bf16 %v2145_v50  ;;  %v2494_v55 = vunpack.c.l.bf16 %v2150_v12 }
 0x346   : > { %v2262_v45 = vadd.f32 %v2488_v42, %v1033_v46  ;;  %v2266_v38 = vadd.f32 %v2489_v49, %v1034_v39  ;;  %v2270_v33 = vadd.f32 %v2490_v3, %v1035_v17  ;;  %v2274_v4 = vadd.f32 %v2491_v59, %v1036_v16 }
 0x347   : > { %v2278_v11 = vadd.f32 %v2492_v54, %v1037_v48  ;;  %v2282_v21 = vadd.f32 %v2493_v25, %v1038_v43  ;;  %v2286_v32 = vadd.f32 %v2494_v55, %v1039_v7  ;;  %v2495_v46 = vunpack.c.h.bf16 %v2150_v12 }
 0x348   : > { %v2496_v57 = vunpack.c.l.bf16 %v2153_v10  ;;  %v2497_v47 = vunpack.c.h.bf16 %v2153_v10  ;;  %v2498_v50 = vunpack.c.l.bf16 %v2160_v52  ;;  %v2499_v39 = vunpack.c.h.bf16 %v2160_v52 }
 0x349   : > { %v2290_v23 = vadd.f32 %v2495_v46, %v1040_v2  ;;  %v2500_v12 = vunpack.c.l.bf16 %v2163_v22  ;;  %v2501_v2 = vunpack.c.h.bf16 %v2163_v22  ;;  %v2502_v10 = vunpack.c.l.bf16 %v2170_v29 }
 0x34a   : > { %v2294_v16 = vadd.f32 %v2496_v57, %v1041_v8  ;;  %v2298_v48 = vadd.f32 %v2497_v47, %v1042_v14  ;;  %v2302_v43 = vadd.f32 %v2498_v50, %v1043_v18  ;;  %v2306_v17 = vadd.f32 %v2499_v39, %v1044_v28 }
 0x34b   : > { %v2310_v7 = vadd.f32 %v2500_v12, %v1045_v30  ;;  %v2314_v8 = vadd.f32 %v2501_v2, %v1046_v40  ;;  %v2318_v14 = vadd.f32 %v2502_v10, %v1047_v44  ;;  %v2503_v34 = vunpack.c.h.bf16 %v2170_v29 }
 0x34c   : > { %v2504_v52 = vunpack.c.l.bf16 %v2173_v60  ;;  %v2505_v42 = vunpack.c.h.bf16 %v2173_v60  ;;  %v2506_v22 = vunpack.c.l.bf16 %v2179_v36  ;;  %v2507_v49 = vunpack.c.h.bf16 %v2179_v36 }
 0x34d   : > { %v2322_v18 = vadd.f32 %v2503_v34, %v1048_v53  ;;  %v2508_v29 = vunpack.c.l.bf16 %v2182_v6  ;;  %v2509_v3 = vunpack.c.h.bf16 %v2182_v6  ;;  %v2510_v60 = vunpack.c.l.bf16 %v2189_v56 }
 0x34e   : > { %v2326_v28 = vadd.f32 %v2504_v52, %v1049_v61  ;;  %v2330_v30 = vadd.f32 %v2505_v42, %v1050_v9  ;;  %v2334_v40 = vadd.f32 %v2506_v22, %v1051_v13  ;;  %v2338_v44 = vadd.f32 %v2507_v49, %v1052_v27 }
 0x34f   : > { %v2342_v53 = vadd.f32 %v2508_v29, %v1053_v35  ;;  %v2346_v61 = vadd.f32 %v2509_v3, %v1054_v41  ;;  %v2350_v9 = vadd.f32 %v2510_v60, %v1055_v51  ;;  %v2354_v13 = vadd.f32 %v1613_v1, %v1056_v0 }
 0x350   : > { %v2358_v36 = vadd.f32 %v1616_v19, %v1057_v58  ;;  %v2511_v27 = vunpack.c.h.bf16 %v2196_v63  ;;  %v2512_v6 = vunpack.c.l.bf16 %v2199_v62  ;;  %v2513_v59 = vunpack.c.h.bf16 %v2199_v62 }
 0x351   : > { %v1157_v56 = vmax.f32 %v2246_v24, 0.0  ;;  %v1158_v1 = vmax.f32 %v2250_v26, 0.0  ;;  %v1159_v19 = vmax.f32 %v2254_v31, 0.0  ;;  %v1160_v0 = vmax.f32 %v2258_v37, 0.0 }
 0x352   : > { %v2362_v35 = vadd.f32 %v2511_v27, %v1058_v5  ;;  %v2366_v41 = vadd.f32 %v2512_v6, %v1059_v15  ;;  %v2370_v51 = vadd.f32 %v2513_v59, %v1060_v20  ;;  %v1161_v63 = vmax.f32 %v2262_v45, 0.0 }
 0x353   : > { %v1162_v58 = vmax.f32 %v2266_v38, 0.0  ;;  %v1163_v5 = vmax.f32 %v2270_v33, 0.0  ;;  %v1164_v15 = vmax.f32 %v2274_v4, 0.0  ;;  %v1165_v62 = vmax.f32 %v2278_v11, 0.0 }
 0x354   : > { %v1166_v20 = vmax.f32 %v2282_v21, 0.0  ;;  %v1167_v24 = vmax.f32 %v2286_v32, 0.0  ;;  %v1168_v26 = vmax.f32 %v2290_v23, 0.0  ;;  %v1169_v31 = vmax.f32 %v2294_v16, 0.0 }
 0x355   : > { %v1170_v37 = vmax.f32 %v2298_v48, 0.0  ;;  %v1171_v45 = vmax.f32 %v2302_v43, 0.0  ;;  %v1172_v38 = vmax.f32 %v2306_v17, 0.0  ;;  %v1173_v33 = vmax.f32 %v2310_v7, 0.0 }
 0x356   : > { %v1174_v4 = vmax.f32 %v2314_v8, 0.0  ;;  %v1175_v54 = vmax.f32 %v2318_v14, 0.0  ;;  %v1176_v11 = vmax.f32 %v2322_v18, 0.0  ;;  %v1177_v25 = vmax.f32 %v2326_v28, 0.0 }
 0x357   : > { %v1178_v21 = vmax.f32 %v2330_v30, 0.0  ;;  %v1179_v55 = vmax.f32 %v2334_v40, 0.0  ;;  %v1180_v32 = vmax.f32 %v2338_v44, 0.0  ;;  %v1181_v46 = vmax.f32 %v2342_v53, 0.0 }
 0x358   : > { %v1182_v23 = vmax.f32 %v2346_v61, 0.0  ;;  %v1183_v57 = vmax.f32 %v2350_v9, 0.0  ;;  %v1184_v16 = vmax.f32 %v2354_v13, 0.0  ;;  %v1185_v47 = vmax.f32 %v2358_v36, 0.0 }
 0x359   : > { %v1186_v48 = vmax.f32 %v2362_v35, 0.0  ;;  %v1187_v50 = vmax.f32 %v2366_v41, 0.0  ;;  %v1188_v43 = vmax.f32 %v2370_v51, 0.0  ;;  %v1526_v39 = vpack.c.bf16 %v1157_v56, %v1157_v56 }
 0x35a   : > { %v1527_v17 = vpack.c.bf16 %v1158_v1, %v1158_v1  ;;  %v1528_v12 = vpack.c.bf16 %v1159_v19, %v1159_v19  ;;  %v1529_v7 = vpack.c.bf16 %v1160_v0, %v1160_v0  ;;  %v1530_v2 = vpack.c.bf16 %v1161_v63, %v1161_v63 }
 0x35b   : > { %v1531_v8 = vpack.c.bf16 %v1162_v58, %v1162_v58  ;;  %v1532_v10 = vpack.c.bf16 %v1163_v5, %v1163_v5  ;;  %v1533_v14 = vpack.c.bf16 %v1164_v15, %v1164_v15  ;;  %v1534_v34 = vpack.c.bf16 %v1165_v62, %v1165_v62  ;;  %1318 = vst.msk [vmem:[%s2405_s29] sm:$0xf] %vm1317_vm4, %v1526_v39 }
 0x35c   : > { %v1535_v18 = vpack.c.bf16 %v1166_v20, %v1166_v20  ;;  %v1536_v52 = vpack.c.bf16 %v1167_v24, %v1167_v24  ;;  %v1537_v28 = vpack.c.bf16 %v1168_v26, %v1168_v26  ;;  %1319 = vst.msk [vmem:[%s2405_s29 + $0x4] sm:$0xf] %vm1317_vm4, %v1527_v17  ;;  %1320 = vst.msk [vmem:[%s2405_s29 + $0x8] sm:$0xf] %vm1317_vm4, %v1528_v12 }
 0x35d   : > { %1321 = vst.msk [vmem:[%s2405_s29 + $0xc] sm:$0xf] %vm1317_vm4, %v1529_v7  ;;  %v1538_v42 = vpack.c.bf16 %v1169_v31, %v1169_v31  ;;  %v1539_v30 = vpack.c.bf16 %v1170_v37, %v1170_v37  ;;  %v1540_v22 = vpack.c.bf16 %v1171_v45, %v1171_v45  ;;  %v1541_v40 = vpack.c.bf16 %v1172_v38, %v1172_v38 }
 0x35e   : > { %1322 = vst.msk [vmem:[%s2405_s29 + $0x10] sm:$0xf] %vm1317_vm4, %v1530_v2  ;;  %1323 = vst.msk [vmem:[%s2405_s29 + $0x14] sm:$0xf] %vm1317_vm4, %v1531_v8  ;;  %v1542_v49 = vpack.c.bf16 %v1173_v33, %v1173_v33  ;;  %v1543_v44 = vpack.c.bf16 %v1174_v4, %v1174_v4  ;;  %v1544_v29 = vpack.c.bf16 %v1175_v54, %v1175_v54 }
 0x35f   : > { %1324 = vst.msk [vmem:[%s2405_s29 + $0x18] sm:$0xf] %vm1317_vm4, %v1532_v10  ;;  %1325 = vst.msk [vmem:[%s2405_s29 + $0x1c] sm:$0xf] %vm1317_vm4, %v1533_v14  ;;  %v1545_v53 = vpack.c.bf16 %v1176_v11, %v1176_v11  ;;  %v1546_v3 = vpack.c.bf16 %v1177_v25, %v1177_v25  ;;  %v1547_v61 = vpack.c.bf16 %v1178_v21, %v1178_v21 }
 0x360   : > { %1326 = vst.msk [vmem:[%s2405_s29 + $0x20] sm:$0xf] %vm1317_vm4, %v1534_v34  ;;  %1327 = vst.msk [vmem:[%s2405_s29 + $0x24] sm:$0xf] %vm1317_vm4, %v1535_v18  ;;  %v1548_v60 = vpack.c.bf16 %v1179_v55, %v1179_v55  ;;  %v1549_v9 = vpack.c.bf16 %v1180_v32, %v1180_v32  ;;  %v1550_v13 = vpack.c.bf16 %v1181_v46, %v1181_v46 }
 0x361   : > { %1328 = vst.msk [vmem:[%s2405_s29 + $0x28] sm:$0xf] %vm1317_vm4, %v1536_v52  ;;  %1329 = vst.msk [vmem:[%s2405_s29 + $0x2c] sm:$0xf] %vm1317_vm4, %v1537_v28  ;;  %v1551_v36 = vpack.c.bf16 %v1182_v23, %v1182_v23  ;;  %v1552_v27 = vpack.c.bf16 %v1183_v57, %v1183_v57  ;;  %v1553_v35 = vpack.c.bf16 %v1184_v16, %v1184_v16 }
 0x362   : > { %1330 = vst.msk [vmem:[%s2405_s29 + $0x30] sm:$0xf] %vm1317_vm4, %v1538_v42  ;;  %1331 = vst.msk [vmem:[%s2405_s29 + $0x34] sm:$0xf] %vm1317_vm4, %v1539_v30  ;;  %v1554_v6 = vpack.c.bf16 %v1185_v47, %v1185_v47  ;;  %v1555_v41 = vpack.c.bf16 %v1186_v48, %v1186_v48  ;;  %v1556_v59 = vpack.c.bf16 %v1187_v50, %v1187_v50 }
 0x363   : > { %1332 = vst.msk [vmem:[%s2405_s29 + $0x38] sm:$0xf] %vm1317_vm4, %v1540_v22  ;;  %1333 = vst.msk [vmem:[%s2405_s29 + $0x3c] sm:$0xf] %vm1317_vm4, %v1541_v40  ;;  %v1557_v51 = vpack.c.bf16 %v1188_v43, %v1188_v43 }
 0x364   : > { %1334 = vst.msk [vmem:[%s2405_s29 + $0x40] sm:$0xf] %vm1317_vm4, %v1542_v49  ;;  %1335 = vst.msk [vmem:[%s2405_s29 + $0x44] sm:$0xf] %vm1317_vm4, %v1543_v44 }
 0x365   : > { %1336 = vst.msk [vmem:[%s2405_s29 + $0x48] sm:$0xf] %vm1317_vm4, %v1544_v29  ;;  %1337 = vst.msk [vmem:[%s2405_s29 + $0x4c] sm:$0xf] %vm1317_vm4, %v1545_v53 }
 0x366   : > { %1338 = vst.msk [vmem:[%s2405_s29 + $0x50] sm:$0xf] %vm1317_vm4, %v1546_v3  ;;  %1339 = vst.msk [vmem:[%s2405_s29 + $0x54] sm:$0xf] %vm1317_vm4, %v1547_v61 }
 0x367   : > { %1340 = vst.msk [vmem:[%s2405_s29 + $0x58] sm:$0xf] %vm1317_vm4, %v1548_v60  ;;  %1341 = vst.msk [vmem:[%s2405_s29 + $0x5c] sm:$0xf] %vm1317_vm4, %v1549_v9 }
 0x368   : > { %1342 = vst.msk [vmem:[%s2405_s29 + $0x60] sm:$0xf] %vm1317_vm4, %v1550_v13  ;;  %1343 = vst.msk [vmem:[%s2405_s29 + $0x64] sm:$0xf] %vm1317_vm4, %v1551_v36 }
 0x369   : > { %1344 = vst.msk [vmem:[%s2405_s29 + $0x68] sm:$0xf] %vm1317_vm4, %v1552_v27  ;;  %1345 = vst.msk [vmem:[%s2405_s29 + $0x6c] sm:$0xf] %vm1317_vm4, %v1553_v35 }
 0x36a   : > { %1346 = vst.msk [vmem:[%s2405_s29 + $0x70] sm:$0xf] %vm1317_vm4, %v1554_v6  ;;  %1347 = vst.msk [vmem:[%s2405_s29 + $0x74] sm:$0xf] %vm1317_vm4, %v1555_v41 }
 0x36b   : > { %1348 = vst.msk [vmem:[%s2405_s29 + $0x78] sm:$0xf] %vm1317_vm4, %v1556_v59  ;;  %1349 = vst.msk [vmem:[%s2405_s29 + $0x7c] sm:$0xf] %vm1317_vm4, %v1557_v51 }
 0x36c PF: > { %s18_s27 = sadd.s32 1, %s1754_s27  }
 0x36d   : > { %p15_p4 = scmp.ge.s32.totalorder %s18_s27, 4  }
 0x36f   :  { %17 = sbr.rel (!%p15_p4) target bundleno = 1 (0x1), region = 85 }

// kernel: _lambda_.14
= control target key start
LH: loop header
LB: loop body
LE: loop exit
PB: predicated region body
PF: predicated region fallthrough
CT: control target
= control target key end

     0   :  { %v523_v0 = vmov 0   ;;  %vm182_vm0 = vcmask 130048   ;;  %vm384_vm1 = vcmask 257024   ;;  %s712_s1 = inlined_call_operand.vmem [shape: bf16[144,32], index: 1, kind: input, shape index: {}]   ;;  %s713_s0 = inlined_call_operand.vmem [shape: bf16[128,144], index: 0, kind: input, shape index: {}]   ;;  %s714_s2 = inlined_call_operand.vmem [shape: f32[1,32], index: 2, kind: input, shape index: {}]   ;;  %s715_s3 = inlined_call_operand.vmem [shape: bf16[128,32], index: 3, kind: output, shape index: {}]  }
   0x1   :  { %207 = vmatprep.subr.bf16.mxu0 %v523_v0  ;;  %471 = vmatprep.subr.bf16.mxu1 %v523_v0  ;;  %v490_v1 = vld [vmem:[%s712_s1] sm:$0xff]   ;;  %v491_v2 = vld [vmem:[%s712_s1 + $0x8] sm:$0xff]   ;;  %v492_v3 = vld [vmem:[%s712_s1 + $0x10] sm:$0xff]  }
   0x2   :  { %208 = vmatpush1.bf16.msra.mxu0 %v490_v1  ;;  %480 = vmatpush1.bf16.msra.mxu1 %v490_v1  ;;  %v493_v4 = vld [vmem:[%s712_s1 + $0x18] sm:$0xff]   ;;  %v501_v5 = vld [vmem:[%s713_s0 + $0x4] ss:$8 sps:$4 sm:$0xff]   ;;  %v496_v9 = vld [vmem:[%s712_s1 + $0x30] sm:$0xff]  }
   0x3   :  { %209 = vmatprep.subr.bf16.mxu0 %v523_v0  ;;  %472 = vmatprep.subr.bf16.mxu1 %v523_v0  ;;  %v504_v6 = vld [vmem:[%s713_s0 + $0x44] ss:$8 sps:$4 sm:$0xff]   ;;  %v497_v10 = vld [vmem:[%s712_s1 + $0x38] sm:$0xff]   ;;  %v499_v12 = vld [vmem:[%s713_s0] ss:$8 sps:$4 sm:$0xff]  }
   0x4   :  { %431 = vmatprep.mubr.msk.bf16.mxu0 %vm182_vm0, %v501_v5  ;;  %435 = vmatprep.mubr.msk.bf16.mxu1 %vm182_vm0, %v504_v6  ;;  %v494_v7 = vld [vmem:[%s712_s1 + $0x20] sm:$0xff]   ;;  %v495_v8 = vld [vmem:[%s712_s1 + $0x28] sm:$0xff]   ;;  %v505_v14 = vld [vmem:[%s713_s0 + $0x14] ss:$8 sps:$4 sm:$0xff]  }
   0x5   :  { %v498_v11 = vld [vmem:[%s712_s1 + $0x40] sm:$0xff]   ;;  %v507_v15 = vld [vmem:[%s713_s0 + $0x54] ss:$8 sps:$4 sm:$0xff]   ;;  %v509_v16 = vld [vmem:[%s713_s0 + $0x10] ss:$8 sps:$4 sm:$0xff]  }
   0x6   :  { %210 = vmatpush1.bf16.msra.mxu0 %v491_v2  ;;  %481 = vmatpush1.bf16.msra.mxu1 %v491_v2  ;;  %v502_v13 = vld [vmem:[%s713_s0 + $0x40] ss:$8 sps:$4 sm:$0xff]   ;;  %v510_v17 = vld [vmem:[%s713_s0 + $0x50] ss:$8 sps:$4 sm:$0xff]   ;;  %v511_v18 = vld [vmem:[%s713_s0 + $0x24] ss:$8 sps:$4 sm:$0xff]  }
   0x7   :  { %211 = vmatprep.subr.bf16.mxu0 %v523_v0  ;;  %473 = vmatprep.subr.bf16.mxu1 %v523_v0  ;;  %v513_v19 = vld [vmem:[%s713_s0 + $0x64] ss:$8 sps:$4 sm:$0xff]   ;;  %v515_v20 = vld [vmem:[%s713_s0 + $0x20] ss:$8 sps:$4 sm:$0xff]   ;;  %v517_v22 = vld [vmem:[%s713_s0 + $0x34] ss:$8 sps:$4 sm:$0xff]  }
   0x8   :  { %v516_v21 = vld [vmem:[%s713_s0 + $0x60] ss:$8 sps:$4 sm:$0xff]   ;;  %v519_v23 = vld [vmem:[%s713_s0 + $0x74] ss:$8 sps:$4 sm:$0xff]   ;;  %v521_v24 = vld [vmem:[%s713_s0 + $0x30] ss:$8 sps:$4 sm:$0xff]  }
   0x9   :  { %v522_v25 = vld [vmem:[%s713_s0 + $0x70] ss:$8 sps:$4 sm:$0xff]   ;;  %v630_v26 = vld [vmem:[%s714_s2] ss:$0 sm:$0xff] }
   0xa   :  { %212 = vmatpush1.bf16.msra.mxu0 %v492_v3  ;;  %482 = vmatpush1.bf16.msra.mxu1 %v492_v3 }
   0xb   :  { %213 = vmatprep.subr.bf16.mxu0 %v523_v0  ;;  %474 = vmatprep.subr.bf16.mxu1 %v523_v0 }
   0xe   :  { %214 = vmatpush1.bf16.msra.mxu0 %v493_v4  ;;  %483 = vmatpush1.bf16.msra.mxu1 %v493_v4 }
   0xf   :  { %215 = vmatprep.subr.bf16.mxu0 %v523_v0  ;;  %475 = vmatprep.subr.bf16.mxu1 %v523_v0 }
  0x12   :  { %216 = vmatpush1.bf16.msra.mxu0 %v494_v7  ;;  %484 = vmatpush1.bf16.msra.mxu1 %v494_v7 }
  0x13   :  { %217 = vmatprep.subr.bf16.mxu0 %v523_v0  ;;  %476 = vmatprep.subr.bf16.mxu1 %v523_v0 }
  0x16   :  { %218 = vmatpush1.bf16.msra.mxu0 %v495_v8  ;;  %485 = vmatpush1.bf16.msra.mxu1 %v495_v8 }
  0x17   :  { %219 = vmatprep.subr.bf16.mxu0 %v523_v0  ;;  %477 = vmatprep.subr.bf16.mxu1 %v523_v0 }
  0x1a   :  { %220 = vmatpush1.bf16.msra.mxu0 %v496_v9  ;;  %486 = vmatpush1.bf16.msra.mxu1 %v496_v9 }
  0x1b   :  { %221 = vmatprep.subr.bf16.mxu0 %v523_v0  ;;  %478 = vmatprep.subr.bf16.mxu1 %v523_v0 }
  0x1e   :  { %222 = vmatpush1.bf16.msra.mxu0 %v497_v10  ;;  %487 = vmatpush1.bf16.msra.mxu1 %v497_v10 }
  0x1f   :  { %223 = vmatprep.subr.bf16.mxu0 %v523_v0  ;;  %479 = vmatprep.subr.bf16.mxu1 %v523_v0 }
  0x22   :  { %224 = vmatpush1.bf16.msra.mxu0 %v498_v11  ;;  %488 = vmatpush1.bf16.msra.mxu1 %v498_v11 }
  0x25   :  { %240 = vmatmul.mubr.bf16.vlgmr.msra.gmra.mrb[0].mxu0 %v499_v12  ;;  %272 = vmatmul.mubr.bf16.vlgmr.msra.gmra.mrb[0].mxu1 %v502_v13 }
  0x26   :  { %432 = vmatprep.mubr.msk.bf16.mxu0 %vm182_vm0, %v505_v14  ;;  %436 = vmatprep.mubr.msk.bf16.mxu1 %vm182_vm0, %v507_v15 }
  0x2d   :  { %248 = vmatmul.mubr.bf16.gmra.mrb[4].mxu0 %v509_v16  ;;  %280 = vmatmul.mubr.bf16.gmra.mrb[4].mxu1 %v510_v17 }
  0x2e   :  { %433 = vmatprep.mubr.msk.bf16.mxu0 %vm182_vm0, %v511_v18  ;;  %437 = vmatprep.mubr.msk.bf16.mxu1 %vm182_vm0, %v513_v19 }
  0x35   :  { %256 = vmatmul.mubr.bf16.gmra.mrb[8].mxu0 %v515_v20  ;;  %288 = vmatmul.mubr.bf16.gmra.mrb[8].mxu1 %v516_v21 }
  0x36   :  { %434 = vmatprep.mubr.msk.bf16.mxu0 %vm182_vm0, %v517_v22  ;;  %438 = vmatprep.mubr.msk.bf16.mxu1 %vm182_vm0, %v519_v23 }
  0x3d   :  { %264 = vmatmul.mubr.bf16.gmra.mrb[12].mxu0 %v521_v24  ;;  %296 = vmatmul.mubr.bf16.gmra.mrb[12].mxu1 %v522_v25 }
  0xf8   :  { %v241_v27 = vpop.f32.mrb[0].mxu0  ;;  %v273_v28 = vpop.f32.mrb[0].mxu1 }
  0xf9   :  { %v242_v29 = vadd.f32 %v630_v26, %v241_v27  ;;  %v274_v30 = vadd.f32 %v630_v26, %v273_v28  ;;  %v243_v31 = vpop.f32.mrb[1].mxu0  ;;  %v275_v32 = vpop.f32.mrb[1].mxu1 }
  0xfa   :  { %v244_v33 = vpop.f32.mrb[2].mxu0  ;;  %v276_v34 = vpop.f32.mrb[2].mxu1 }
  0xfb   :  { %v304_v35 = vmax.f32 %v242_v29, 0.0  ;;  %v312_v36 = vmax.f32 %v274_v30, 0.0  ;;  %v245_v37 = vadd.f32 %v630_v26, %v244_v33  ;;  %v277_v38 = vadd.f32 %v630_v26, %v276_v34  ;;  %v246_v39 = vpop.f32.mrb[3].mxu0  ;;  %v278_v40 = vpop.f32.mrb[3].mxu1 }
  0xfd   :  { %v455_v41 = vpack.c.bf16 %v304_v35, %v304_v35  ;;  %v463_v42 = vpack.c.bf16 %v312_v36, %v312_v36  ;;  %v305_v43 = vmax.f32 %v245_v37, 0.0  ;;  %v313_v44 = vmax.f32 %v277_v38, 0.0 }
  0xff   :  { %385 = vst.msk [vmem:[%s715_s3] sm:$0xf] %vm384_vm1, %v455_v41  ;;  %393 = vst.msk [vmem:[%s715_s3 + $0x20] sm:$0xf] %vm384_vm1, %v463_v42  ;;  %v456_v45 = vpack.c.bf16 %v305_v43, %v305_v43  ;;  %v464_v46 = vpack.c.bf16 %v313_v44, %v313_v44 }
 0x100   :  { %v249_v47 = vpop.f32.mrb[4].mxu0  ;;  %v281_v48 = vpop.f32.mrb[4].mxu1 }
 0x101   :  { %386 = vst.msk [vmem:[%s715_s3 + $0x4] sm:$0xf] %vm384_vm1, %v456_v45  ;;  %394 = vst.msk [vmem:[%s715_s3 + $0x24] sm:$0xf] %vm384_vm1, %v464_v46  ;;  %v250_v49 = vadd.f32 %v630_v26, %v249_v47  ;;  %v282_v50 = vadd.f32 %v630_v26, %v281_v48  ;;  %v251_v51 = vpop.f32.mrb[5].mxu0  ;;  %v283_v52 = vpop.f32.mrb[5].mxu1 }
 0x102   :  { %v252_v53 = vpop.f32.mrb[6].mxu0  ;;  %v284_v54 = vpop.f32.mrb[6].mxu1 }
 0x103   :  { %v306_v55 = vmax.f32 %v250_v49, 0.0  ;;  %v314_v56 = vmax.f32 %v282_v50, 0.0  ;;  %v253_v57 = vadd.f32 %v630_v26, %v252_v53  ;;  %v285_v58 = vadd.f32 %v630_v26, %v284_v54  ;;  %v254_v59 = vpop.f32.mrb[7].mxu0  ;;  %v286_v60 = vpop.f32.mrb[7].mxu1 }
 0x105   :  { %v457_v61 = vpack.c.bf16 %v306_v55, %v306_v55  ;;  %v465_v62 = vpack.c.bf16 %v314_v56, %v314_v56  ;;  %v307_v63 = vmax.f32 %v253_v57, 0.0  ;;  %v315_v0 = vmax.f32 %v285_v58, 0.0 }
 0x107   :  { %387 = vst.msk [vmem:[%s715_s3 + $0x8] sm:$0xf] %vm384_vm1, %v457_v61  ;;  %395 = vst.msk [vmem:[%s715_s3 + $0x28] sm:$0xf] %vm384_vm1, %v465_v62  ;;  %v458_v1 = vpack.c.bf16 %v307_v63, %v307_v63  ;;  %v466_v2 = vpack.c.bf16 %v315_v0, %v315_v0 }
 0x108   :  { %v257_v3 = vpop.f32.mrb[8].mxu0  ;;  %v289_v4 = vpop.f32.mrb[8].mxu1 }
 0x109   :  { %388 = vst.msk [vmem:[%s715_s3 + $0xc] sm:$0xf] %vm384_vm1, %v458_v1  ;;  %396 = vst.msk [vmem:[%s715_s3 + $0x2c] sm:$0xf] %vm384_vm1, %v466_v2  ;;  %v258_v5 = vadd.f32 %v630_v26, %v257_v3  ;;  %v290_v6 = vadd.f32 %v630_v26, %v289_v4  ;;  %v259_v7 = vpop.f32.mrb[9].mxu0  ;;  %v291_v8 = vpop.f32.mrb[9].mxu1 }
 0x10a   :  { %v260_v9 = vpop.f32.mrb[10].mxu0  ;;  %v292_v10 = vpop.f32.mrb[10].mxu1 }
 0x10b   :  { %v308_v11 = vmax.f32 %v258_v5, 0.0  ;;  %v316_v12 = vmax.f32 %v290_v6, 0.0  ;;  %v261_v13 = vadd.f32 %v630_v26, %v260_v9  ;;  %v293_v14 = vadd.f32 %v630_v26, %v292_v10  ;;  %v262_v15 = vpop.f32.mrb[11].mxu0  ;;  %v294_v16 = vpop.f32.mrb[11].mxu1 }
 0x10d   :  { %v459_v17 = vpack.c.bf16 %v308_v11, %v308_v11  ;;  %v467_v18 = vpack.c.bf16 %v316_v12, %v316_v12  ;;  %v309_v19 = vmax.f32 %v261_v13, 0.0  ;;  %v317_v20 = vmax.f32 %v293_v14, 0.0 }
 0x10f   :  { %389 = vst.msk [vmem:[%s715_s3 + $0x10] sm:$0xf] %vm384_vm1, %v459_v17  ;;  %397 = vst.msk [vmem:[%s715_s3 + $0x30] sm:$0xf] %vm384_vm1, %v467_v18  ;;  %v460_v21 = vpack.c.bf16 %v309_v19, %v309_v19  ;;  %v468_v22 = vpack.c.bf16 %v317_v20, %v317_v20 }
 0x110   :  { %v265_v23 = vpop.f32.mrb[12].mxu0  ;;  %v297_v24 = vpop.f32.mrb[12].mxu1 }
 0x111   :  { %390 = vst.msk [vmem:[%s715_s3 + $0x14] sm:$0xf] %vm384_vm1, %v460_v21  ;;  %398 = vst.msk [vmem:[%s715_s3 + $0x34] sm:$0xf] %vm384_vm1, %v468_v22  ;;  %v266_v25 = vadd.f32 %v630_v26, %v265_v23  ;;  %v298_v27 = vadd.f32 %v630_v26, %v297_v24  ;;  %v267_v28 = vpop.f32.mrb[13].mxu0  ;;  %v299_v29 = vpop.f32.mrb[13].mxu1 }
 0x112   :  { %v268_v30 = vpop.f32.mrb[14].mxu0  ;;  %v300_v31 = vpop.f32.mrb[14].mxu1 }
 0x113   :  { %v310_v32 = vmax.f32 %v266_v25, 0.0  ;;  %v318_v33 = vmax.f32 %v298_v27, 0.0  ;;  %v269_v34 = vadd.f32 %v630_v26, %v268_v30  ;;  %v301_v35 = vadd.f32 %v630_v26, %v300_v31  ;;  %v270_v36 = vpop.f32.mrb[15].mxu0  ;;  %v302_v37 = vpop.f32.mrb[15].mxu1 }
 0x115   :  { %v461_v38 = vpack.c.bf16 %v310_v32, %v310_v32  ;;  %v469_v39 = vpack.c.bf16 %v318_v33, %v318_v33  ;;  %v311_v40 = vmax.f32 %v269_v34, 0.0  ;;  %v319_v41 = vmax.f32 %v301_v35, 0.0 }
 0x117   :  { %391 = vst.msk [vmem:[%s715_s3 + $0x18] sm:$0xf] %vm384_vm1, %v461_v38  ;;  %399 = vst.msk [vmem:[%s715_s3 + $0x38] sm:$0xf] %vm384_vm1, %v469_v39  ;;  %v462_v42 = vpack.c.bf16 %v311_v40, %v311_v40  ;;  %v470_v43 = vpack.c.bf16 %v319_v41, %v319_v41 }
 0x119   :  { %392 = vst.msk [vmem:[%s715_s3 + $0x1c] sm:$0xf] %vm384_vm1, %v462_v42  ;;  %400 = vst.msk [vmem:[%s715_s3 + $0x3c] sm:$0xf] %vm384_vm1, %v470_v43 }

// kernel: _lambda_.13
= control target key start
LH: loop header
LB: loop body
LE: loop exit
PB: predicated region body
PF: predicated region fallthrough
CT: control target
= control target key end

     0   :  { %vm86_vm0 = vcmask 130048   ;;  %vm272_vm1 = vcmask 257024   ;;  %s503_s1 = inlined_call_operand.vmem [shape: bf16[16,32], index: 1, kind: input, shape index: {}]   ;;  %s504_s0 = inlined_call_operand.vmem [shape: bf16[128,16], index: 0, kind: input, shape index: {}]   ;;  %s505_s2 = inlined_call_operand.vmem [shape: f32[1,32], index: 2, kind: input, shape index: {}]   ;;  %s506_s3 = inlined_call_operand.vmem [shape: bf16[128,32], index: 3, kind: output, shape index: {}]  }
   0x1   :  { %v372_v0 = vld [vmem:[%s503_s1] sm:$0xff]   ;;  %v375_v3 = vld [vmem:[%s504_s0 + $0x8] sm:$0xff]   ;;  %v377_v5 = vld [vmem:[%s504_s0 + $0x10] sm:$0xff]  }
   0x2   :  { %v373_v1 = vld [vmem:[%s504_s0] sm:$0xff]   ;;  %352 = vmatprep.subr.bf16.mxu0 %v372_v0  ;;  %370 = vmatprep.subr.bf16.mxu1 %v372_v0  ;;  %v376_v4 = vld [vmem:[%s504_s0 + $0x28] sm:$0xff]   ;;  %v378_v6 = vld [vmem:[%s504_s0 + $0x30] sm:$0xff]  }
   0x3   :  { %v374_v2 = vld [vmem:[%s504_s0 + $0x20] sm:$0xff]   ;;  %353 = vmatpush3.bf16.msra.mxu0 %v372_v0  ;;  %371 = vmatpush3.bf16.msra.mxu1 %v372_v0  ;;  %v379_v7 = vld [vmem:[%s504_s0 + $0x18] sm:$0xff]  }
   0x4   :  { %354 = vmatprep.mubr.msk.bf16.mxu0 %vm86_vm0, %v373_v1  ;;  %362 = vmatprep.mubr.msk.bf16.mxu1 %vm86_vm0, %v374_v2  ;;  %v380_v8 = vld [vmem:[%s504_s0 + $0x38] sm:$0xff]   ;;  %v293_v9 = vld [vmem:[%s505_s2] ss:$0 sm:$0xff] }
   0x6   :  { %355 = vmatmul.mubr.msk.bf16.vlgmr.msra.gmra.mrb[0].mxu0 %vm86_vm0, %v375_v3  ;;  %363 = vmatmul.mubr.msk.bf16.vlgmr.msra.gmra.mrb[0].mxu1 %vm86_vm0, %v376_v4 }
   0x7   :  { %358 = vmatprep.mubr.msk.bf16.mxu0 %vm86_vm0, %v377_v5  ;;  %366 = vmatprep.mubr.msk.bf16.mxu1 %vm86_vm0, %v378_v6 }
   0xe   :  { %359 = vmatmul.mubr.msk.bf16.gmra.mrb[4].mxu0 %vm86_vm0, %v379_v7  ;;  %367 = vmatmul.mubr.msk.bf16.gmra.mrb[4].mxu1 %vm86_vm0, %v380_v8 }
  0xd9   :  { %v356_v10 = vpop.f32.mrb[0].mxu0  ;;  %v364_v11 = vpop.f32.mrb[0].mxu1 }
  0xda   :  { %v154_v12 = vadd.f32 %v356_v10, %v293_v9  ;;  %v186_v13 = vadd.f32 %v364_v11, %v293_v9  ;;  %v145_v14 = vpop.f32.mrb[1].mxu0  ;;  %v177_v15 = vpop.f32.mrb[1].mxu1 }
  0xdb   :  { %v146_v16 = vadd.f32 %v293_v9, %v145_v14  ;;  %v178_v17 = vadd.f32 %v293_v9, %v177_v15  ;;  %v357_v18 = vpop.f32.mrb[2].mxu0  ;;  %v365_v19 = vpop.f32.mrb[2].mxu1 }
  0xdc   :  { %v329_v20 = vpack.c.bf16 %v154_v12, %v154_v12  ;;  %v337_v21 = vpack.c.bf16 %v186_v13, %v186_v13  ;;  %v157_v22 = vadd.f32 %v357_v18, %v293_v9  ;;  %v189_v23 = vadd.f32 %v365_v19, %v293_v9  ;;  %v148_v24 = vpop.f32.mrb[3].mxu0  ;;  %v180_v25 = vpop.f32.mrb[3].mxu1 }
  0xdd   :  { %v327_v26 = vpack.c.bf16 %v146_v16, %v146_v16  ;;  %v335_v27 = vpack.c.bf16 %v178_v17, %v178_v17  ;;  %v149_v28 = vadd.f32 %v293_v9, %v148_v24  ;;  %v181_v29 = vadd.f32 %v293_v9, %v180_v25 }
  0xde   :  { %275 = vst.msk [vmem:[%s506_s3 + $0x8] sm:$0xf] %vm272_vm1, %v329_v20  ;;  %283 = vst.msk [vmem:[%s506_s3 + $0x28] sm:$0xf] %vm272_vm1, %v337_v21  ;;  %v330_v30 = vpack.c.bf16 %v157_v22, %v157_v22  ;;  %v338_v31 = vpack.c.bf16 %v189_v23, %v189_v23 }
  0xdf   :  { %273 = vst.msk [vmem:[%s506_s3] sm:$0xf] %vm272_vm1, %v327_v26  ;;  %281 = vst.msk [vmem:[%s506_s3 + $0x20] sm:$0xf] %vm272_vm1, %v335_v27  ;;  %v328_v32 = vpack.c.bf16 %v149_v28, %v149_v28  ;;  %v336_v33 = vpack.c.bf16 %v181_v29, %v181_v29 }
  0xe0   :  { %276 = vst.msk [vmem:[%s506_s3 + $0xc] sm:$0xf] %vm272_vm1, %v330_v30  ;;  %284 = vst.msk [vmem:[%s506_s3 + $0x2c] sm:$0xf] %vm272_vm1, %v338_v31 }
  0xe1   :  { %274 = vst.msk [vmem:[%s506_s3 + $0x4] sm:$0xf] %vm272_vm1, %v328_v32  ;;  %282 = vst.msk [vmem:[%s506_s3 + $0x24] sm:$0xf] %vm272_vm1, %v336_v33  ;;  %v360_v34 = vpop.f32.mrb[4].mxu0  ;;  %v368_v35 = vpop.f32.mrb[4].mxu1 }
  0xe2   :  { %v170_v36 = vadd.f32 %v360_v34, %v293_v9  ;;  %v202_v37 = vadd.f32 %v368_v35, %v293_v9  ;;  %v161_v38 = vpop.f32.mrb[5].mxu0  ;;  %v193_v39 = vpop.f32.mrb[5].mxu1 }
  0xe3   :  { %v162_v40 = vadd.f32 %v293_v9, %v161_v38  ;;  %v194_v41 = vadd.f32 %v293_v9, %v193_v39  ;;  %v361_v42 = vpop.f32.mrb[6].mxu0  ;;  %v369_v43 = vpop.f32.mrb[6].mxu1 }
  0xe4   :  { %v333_v44 = vpack.c.bf16 %v170_v36, %v170_v36  ;;  %v341_v45 = vpack.c.bf16 %v202_v37, %v202_v37  ;;  %v173_v46 = vadd.f32 %v361_v42, %v293_v9  ;;  %v205_v47 = vadd.f32 %v369_v43, %v293_v9  ;;  %v164_v48 = vpop.f32.mrb[7].mxu0  ;;  %v196_v49 = vpop.f32.mrb[7].mxu1 }
  0xe5   :  { %v331_v50 = vpack.c.bf16 %v162_v40, %v162_v40  ;;  %v339_v51 = vpack.c.bf16 %v194_v41, %v194_v41  ;;  %v165_v52 = vadd.f32 %v293_v9, %v164_v48  ;;  %v197_v53 = vadd.f32 %v293_v9, %v196_v49 }
  0xe6   :  { %279 = vst.msk [vmem:[%s506_s3 + $0x18] sm:$0xf] %vm272_vm1, %v333_v44  ;;  %287 = vst.msk [vmem:[%s506_s3 + $0x38] sm:$0xf] %vm272_vm1, %v341_v45  ;;  %v334_v54 = vpack.c.bf16 %v173_v46, %v173_v46  ;;  %v342_v55 = vpack.c.bf16 %v205_v47, %v205_v47 }
  0xe7   :  { %277 = vst.msk [vmem:[%s506_s3 + $0x10] sm:$0xf] %vm272_vm1, %v331_v50  ;;  %285 = vst.msk [vmem:[%s506_s3 + $0x30] sm:$0xf] %vm272_vm1, %v339_v51  ;;  %v332_v56 = vpack.c.bf16 %v165_v52, %v165_v52  ;;  %v340_v57 = vpack.c.bf16 %v197_v53, %v197_v53 }
  0xe8   :  { %280 = vst.msk [vmem:[%s506_s3 + $0x1c] sm:$0xf] %vm272_vm1, %v334_v54  ;;  %288 = vst.msk [vmem:[%s506_s3 + $0x3c] sm:$0xf] %vm272_vm1, %v342_v55 }
  0xe9   :  { %278 = vst.msk [vmem:[%s506_s3 + $0x14] sm:$0xf] %vm272_vm1, %v332_v56  ;;  %286 = vst.msk [vmem:[%s506_s3 + $0x34] sm:$0xf] %vm272_vm1, %v340_v57 }

// kernel: _lambda_.15
= control target key start
LH: loop header
LB: loop body
LE: loop exit
PB: predicated region body
PF: predicated region fallthrough
CT: control target
= control target key end

     0   :  { %s1311_s27 = smov 0   ;;  %s1481_s0 = inlined_call_operand.vmem [shape: bf16[2,64,288], index: 0, kind: input, shape index: {}]   ;;  %s1482_s1 = inlined_call_operand.vmem [shape: bf16[288,32], index: 1, kind: input, shape index: {}]   ;;  %s1483_s2 = inlined_call_operand.vmem [shape: f32[1,32], index: 2, kind: input, shape index: {}]   ;;  %s1484_s3 = inlined_call_operand.vmem [shape: bf16[2,64,32], index: 3, kind: input, shape index: {}]   ;;  %s1485_s4 = inlined_call_operand.vmem [shape: f32[32,8], index: 4, kind: input, shape index: {}]   ;;  %s1486_s5 = inlined_call_operand.vmem [shape: f32[1,8], index: 5, kind: input, shape index: {}]   ;;  %s1487_s6 = inlined_call_operand.vmem [shape: f32[8,32], index: 6, kind: input, shape index: {}]   ;;  %s1488_s7 = inlined_call_operand.vmem [shape: f32[1,32], index: 7, kind: input, shape index: {}]   ;;  %s1489_s8 = inlined_call_operand.vmem [shape: bf16[2,64,32], index: 8, kind: output, shape index: {}]  }
   0x1 LB: > { %s1032_s28 = sadd.s32 4294967295, %s1261_s27   ;;  %p1036_p0 = scmp.ge.s32.totalorder %s1261_s27, 1  ;;  %s1261_s27 = sphi %s1311_s27, %s18_s27  }
   0x2   : > { %p272_p1 = scmp.lt.s32.totalorder %s1261_s27, 3 }
   0x4   : > { %p273_p2 = pnand %p1036_p0, %p272_p1 }
   0x5   : > { %v1217_v0 = vld [vmem:[%s1482_s1 + $0x40] sm:$0xff] (!%p273_p2)   ;;  %v1219_v2 = vld [vmem:[%s1482_s1 + $0x48] sm:$0xff] (!%p273_p2)   ;;  %p311_p3 = scmp.lt.s32.totalorder (!%p273_p2), %s1032_s28, 1  ;;  %v1221_v4 = vld [vmem:[%s1482_s1 + $0x50] sm:$0xff] (!%p273_p2)   ;;  %vm554_vm0 = vcmask (!%p273_p2), 261120   ;;  %v1263_v33 = vmov (!%p273_p2), 0.0|0.0  }
   0x6   : > { %276 = sbr.rel (%p273_p2) target bundleno = 772 (0x304), region = 52  ;;  %v1218_v1 = vld [vmem:[%s1482_s1] sm:$0xff] (!%p273_p2)   ;;  %1118 = vmatprep.subr.bf16.mxu0 (!%p273_p2), %v1217_v0  ;;  %v1220_v3 = vld [vmem:[%s1482_s1 + $0x8] sm:$0xff] (!%p273_p2)   ;;  %v1222_v5 = vld [vmem:[%s1482_s1 + $0x10] sm:$0xff] (!%p273_p2)   ;;  %vm1264_vm1 = vmmov (!%p273_p2), 0   ;;  %v1265_v37 = vmov (!%p273_p2), 0.0  }
   0x7   : > { %1119 = vmatpush3.bf16.msra.mxu0 (!%p273_p2), %v1218_v1  ;;  %v1223_v6 = vld [vmem:[%s1482_s1 + $0x58] sm:$0xff] (!%p273_p2)   ;;  %v1225_v8 = vld [vmem:[%s1482_s1 + $0x60] sm:$0xff] (!%p273_p2)   ;;  %v1227_v11 = vld [vmem:[%s1482_s1 + $0x68] sm:$0xff] (!%p273_p2)   ;;  %vm800_vm2 = vcmask (!%p273_p2), 64512   ;;  %vm956_vm3 = vcmask (!%p273_p2), 257024  }
   0x8   : > { %1120 = vmatprep.subr.bf16.mxu0 (!%p273_p2), %v1219_v2  ;;  %v1224_v7 = vld [vmem:[%s1482_s1 + $0x18] sm:$0xff] (!%p273_p2)   ;;  %v1226_v9 = vld [vmem:[%s1482_s1 + $0x20] sm:$0xff] (!%p273_p2)   ;;  %v1228_v12 = vld [vmem:[%s1482_s1 + $0x28] sm:$0xff] (!%p273_p2)  }
   0x9   : > { %v1232_v10 = vld [vmem:[%s1482_s1 + $0x80] sm:$0xff] (!%p273_p2)   ;;  %v1229_v13 = vld [vmem:[%s1482_s1 + $0x70] sm:$0xff] (!%p273_p2)   ;;  %v1237_v15 = vld [vmem:[%s1482_s1 + $0x88] sm:$0xff] (!%p273_p2)  }
   0xa   : > { %1171 = vmatprep.subr.bf16.mxu1 (!%p273_p2), %v1232_v10  ;;  %v1230_v18 = vld [vmem:[%s1482_s1 + $0x30] sm:$0xff] (!%p273_p2)   ;;  %v1231_v19 = vld [vmem:[%s1482_s1 + $0x78] sm:$0xff] (!%p273_p2)   ;;  %v719_v30 = vld [vmem:[%s1485_s4] sm:$0xff] (!%p273_p2) }
   0xb   : > { %1121 = vmatpush3.bf16.msra.mxu0 (!%p273_p2), %v1220_v3  ;;  %1172 = vmatpush3.bf16.msra.mxu1 (!%p273_p2), %v1232_v10  ;;  %v1233_v21 = vld [vmem:[%s1482_s1 + $0x38] sm:$0xff] (!%p273_p2)   ;;  %v720_v31 = vld [vmem:[%s1485_s4 + $0x8] sm:$0xff] (!%p273_p2)  ;;  %v721_v34 = vld [vmem:[%s1485_s4 + $0x10] sm:$0xff] (!%p273_p2) }
   0xc   : > { %1122 = vmatprep.subr.bf16.mxu0 (!%p273_p2), %v1221_v4  ;;  %1173 = vmatprep.subr.bf16.mxu1 (!%p273_p2), %v1237_v15  ;;  %v1200_v32 = vpack.c.bf16 (!%p273_p2), %v720_v31, %v719_v30  ;;  %v722_v35 = vld [vmem:[%s1485_s4 + $0x18] sm:$0xff] (!%p273_p2)  ;;  %v1042_v46 = vld [vmem:[%s1483_s2] ss:$0 sm:$0xff] (!%p273_p2) }
   0xd   : > { %s1491_s28 = smov (!%p311_p3, %s1032_s28), 1  ;;  %v1203_v36 = vpack.c.bf16 %v722_v35, %v721_v34 }
   0xe   : > { %s1205_s23 = smul.u32 96, %s1491_s28 }
   0xf   : > { %1123 = vmatpush3.bf16.msra.mxu0 %v1222_v5  ;;  %1174 = vmatpush3.bf16.msra.mxu1 %v1237_v15 }
  0x10   : > { %1124 = vmatprep.subr.bf16.mxu0 %v1223_v6  ;;  %s1358_s12 = scalar_lea.vmem %s1481_s0, %s1205_s23  ;;  %1199 = vmatprep.subr.bf16.mxu1 %v1263_v33  ;;  %s1089_s23 = sshll.u32 %s1491_s28, 5 }
  0x11   : > { %v1236_v14 = vld [vmem:[%s1358_s12 + $0x4] ss:$12 sps:$4 sm:$0xff]   ;;  %v1238_v16 = vld [vmem:[%s1358_s12 + $0x8] ss:$12 sps:$4 sm:$0xff]   ;;  %v1239_v17 = vld [vmem:[%s1358_s12 + $0x20] ss:$12 sps:$4 sm:$0xff]   ;;  %s320_s26 = scalar_lea.vmem %s1484_s3, %s1089_s23  ;;  %s325_s9 = scalar_lea.vmem %s1489_s8, %s1089_s23 }
  0x12   : > { %599 = vmatprep.mubr.bf16.mxu0 %v1236_v14  ;;  %1175 = vmatprep.mubr.msk.bf16.mxu1 %vm554_vm0, %v1238_v16  ;;  %v1246_v20 = vld [vmem:[%s1358_s12 + $0x38] ss:$12 sps:$4 sm:$0xff]   ;;  %v1247_v22 = vld [vmem:[%s1358_s12 + $0x50] ss:$12 sps:$4 sm:$0xff]   ;;  %v1234_v23 = vld [vmem:[%s1358_s12] ss:$12 sps:$4 sm:$0xff]  }
  0x13   : > { %1125 = vmatpush3.bf16.msra.mxu0 %v1224_v7  ;;  %1176 = vmatmul.mubr.msk.bf16.vlgmr.msra.gmra.mrb[0].mxu1 %vm554_vm0, %v1239_v17  ;;  %v1240_v24 = vld [vmem:[%s1358_s12 + $0x1c] ss:$12 sps:$4 sm:$0xff]   ;;  %v1242_v25 = vld [vmem:[%s1358_s12 + $0x18] ss:$12 sps:$4 sm:$0xff]   ;;  %v1243_v26 = vld [vmem:[%s1358_s12 + $0x34] ss:$12 sps:$4 sm:$0xff]  }
  0x14   : > { %1126 = vmatprep.subr.bf16.mxu0 %v1225_v8  ;;  %1179 = vmatprep.mubr.msk.bf16.mxu1 %vm554_vm0, %v1246_v20  ;;  %v1245_v27 = vld [vmem:[%s1358_s12 + $0x30] ss:$12 sps:$4 sm:$0xff]   ;;  %v1248_v28 = vld [vmem:[%s1358_s12 + $0x4c] ss:$12 sps:$4 sm:$0xff]   ;;  %v1250_v29 = vld [vmem:[%s1358_s12 + $0x48] ss:$12 sps:$4 sm:$0xff]  }
  0x15   : > { %1201 = vmatpush3.bf16.msra.mxu1 %v1200_v32 }
  0x16   : > { %1202 = vmatprep.subr.bf16.mxu1 %v1263_v33 }
  0x17   : > { %1127 = vmatpush3.bf16.msra.mxu0 %v1226_v9 }
  0x18   : > { %1128 = vmatprep.subr.bf16.mxu0 %v1227_v11 }
  0x19   : > { %1204 = vmatpush3.bf16.msra.mxu1 %v1203_v36 }
  0x1a   : > { %1194 = vmatprep.subr.mxu1 %v1265_v37 }
  0x1b   : > { %1129 = vmatpush3.bf16.msra.mxu0 %v1228_v12  ;;  %1180 = vmatmul.mubr.msk.bf16.gmra.mrb[4].mxu1 %vm554_vm0, %v1247_v22 }
  0x1c   : > { %1130 = vmatprep.subr.bf16.mxu0 %v1229_v13  ;;  %1191 = vmatprep.mubr.msk.f32.mxu1 %vm1264_vm1, %v1265_v37 }
  0x1f   : > { %1131 = vmatpush3.bf16.msra.mxu0 %v1230_v18 }
  0x20   : > { %1132 = vmatprep.subr.bf16.mxu0 %v1231_v19 }
  0x23   : > { %1133 = vmatpush3.bf16.msra.mxu0 %v1233_v21 }
  0x26   : > { %600 = vmatmul.mubr.bf16.vlgmr.msra.gmra.mrb[0].mxu0 %v1234_v23 }
  0x27   : > { %607 = vmatprep.mubr.bf16.mxu0 %v1240_v24 }
  0x2e   : > { %608 = vmatmul.mubr.bf16.gmra.mrb[4].mxu0 %v1242_v25 }
  0x2f   : > { %615 = vmatprep.mubr.bf16.mxu0 %v1243_v26 }
  0x36   : > { %616 = vmatmul.mubr.bf16.gmra.mrb[8].mxu0 %v1245_v27 }
  0x37   : > { %623 = vmatprep.mubr.bf16.mxu0 %v1248_v28 }
  0x3e   : > { %624 = vmatmul.mubr.bf16.gmra.mrb[12].mxu0 %v1250_v29 }
  0xe6   : > { %v1177_v38 = vpop.f32.mrb[0].mxu1 }
  0xe7   : > { %v666_v39 = vpop.f32.mrb[1].mxu1 }
  0xe8   : > { %v1178_v40 = vpop.f32.mrb[2].mxu1 }
  0xe9   : > { %v669_v41 = vpop.f32.mrb[3].mxu1 }
  0xee   : > { %v1181_v42 = vpop.f32.mrb[4].mxu1 }
  0xef   : > { %v682_v44 = vpop.f32.mrb[5].mxu1 }
  0xf0   : > { %v1182_v47 = vpop.f32.mrb[6].mxu1 }
  0xf1   : > { %v685_v50 = vpop.f32.mrb[7].mxu1 }
  0xf9   : > { %v1134_v43 = vpop.f32.mrb[0].mxu0 }
  0xfa   : > { %v1135_v45 = vpop.f32.mrb[1].mxu0 }
  0xfb   : > { %v1136_v48 = vadd.f32 %v1135_v45, %v1134_v43  ;;  %v1137_v49 = vpop.f32.mrb[2].mxu0 }
  0xfc   : > { %v1138_v51 = vpop.f32.mrb[3].mxu0 }
  0xfd   : > { %v1139_v52 = vadd.f32 %v1138_v51, %v1137_v49  ;;  %v602_v53 = vadd.f32 %v1136_v48, %v1042_v46 }
  0xff   : > { %v1415_v54 = vadd.f32 %v666_v39, %v602_v53  ;;  %v605_v55 = vadd.f32 %v1139_v52, %v1042_v46 }
 0x101   : > { %v1417_v56 = vadd.f32 %v669_v41, %v605_v55  ;;  %v1140_v57 = vpop.f32.mrb[4].mxu0  ;;  %v697_v6 = vsel %vm554_vm0, %v1415_v54, 0.0 }
 0x102   : > { %v1141_v58 = vpop.f32.mrb[5].mxu0 }
 0x103   : > { %v1142_v59 = vadd.f32 %v1141_v58, %v1140_v57  ;;  %v1143_v60 = vpop.f32.mrb[6].mxu0  ;;  %v698_v2 = vsel %vm554_vm0, %v1417_v56, 0.0 }
 0x104   : > { %v1144_v61 = vpop.f32.mrb[7].mxu0  ;;  %v699_v10 = vadd.f32 %v698_v2, %v697_v6  ;;  %v1115_v2 = vld [vmem:[%s320_s26 + $0x8] sm:$0xff]  }
 0x105   : > { %v610_v62 = vadd.f32 %v1142_v59, %v1042_v46  ;;  %v1145_v63 = vadd.f32 %v1144_v61, %v1143_v60  ;;  %v880_v61 = vlaneseq }
 0x107   : > { %v1419_v0 = vadd.f32 %v1177_v38, %v610_v62  ;;  %v613_v1 = vadd.f32 %v1145_v63, %v1042_v46  ;;  %v881_v62 = vshrl.u32 %v880_v61, 7 }
 0x109   : > { %v1423_v3 = vadd.f32 %v1178_v40, %v613_v1  ;;  %v1146_v4 = vpop.f32.mrb[8].mxu0  ;;  %v700_v7 = vsel %vm554_vm0, %v1419_v0, 0.0  ;;  %v882_v63 = vsub.s32 0, %v881_v62  ;;  %v1100_v1 = vld [vmem:[%s320_s26] sm:$0xff]  }
 0x10a   : > { %v1147_v5 = vpop.f32.mrb[9].mxu0  ;;  %v701_v14 = vadd.f32 %v700_v7, %v699_v10  ;;  %v1101_v7 = vunpack.c.l.bf16 %v1100_v1  ;;  %v1105_v10 = vunpack.c.l.bf16 %v1115_v2 }
 0x10b   : > { %v1148_v8 = vadd.f32 %v1147_v5, %v1146_v4  ;;  %v1149_v9 = vpop.f32.mrb[10].mxu0  ;;  %v702_v16 = vsel %vm554_vm0, %v1423_v3, 0.0  ;;  %v1116_v4 = vld [vmem:[%s320_s26 + $0x10] sm:$0xff]   ;;  %v1117_v5 = vld [vmem:[%s320_s26 + $0x18] sm:$0xff]  }
 0x10c   : > { %v1150_v11 = vpop.f32.mrb[11].mxu0  ;;  %v703_v21 = vadd.f32 %v702_v16, %v701_v14  ;;  %v1113_v14 = vunpack.c.l.bf16 %v1117_v5  ;;  %v1114_v16 = vunpack.c.h.bf16 %v1117_v5 }
 0x10d   : > { %v1151_v12 = vadd.f32 %v1150_v11, %v1149_v9  ;;  %v618_v13 = vadd.f32 %v1148_v8, %v1042_v46  ;;  %v1102_v8 = vunpack.c.h.bf16 %v1100_v1  ;;  %v1106_v11 = vunpack.c.h.bf16 %v1115_v2 }
 0x10f   : > { %v1429_v15 = vadd.f32 %v682_v44, %v618_v13  ;;  %v621_v17 = vadd.f32 %v1151_v12, %v1042_v46  ;;  %v1109_v12 = vunpack.c.l.bf16 %v1116_v4  ;;  %v1110_v13 = vunpack.c.h.bf16 %v1116_v4 }
 0x111   : > { %v704_v18 = vsel %vm554_vm0, %v1429_v15, 0.0  ;;  %v1435_v19 = vadd.f32 %v685_v50, %v621_v17  ;;  %v1152_v20 = vpop.f32.mrb[12].mxu0 }
 0x112   : > { %v1153_v22 = vpop.f32.mrb[13].mxu0  ;;  %v705_v25 = vadd.f32 %v704_v18, %v703_v21 }
 0x113   : > { %v1154_v23 = vadd.f32 %v1153_v22, %v1152_v20  ;;  %v1155_v24 = vpop.f32.mrb[14].mxu0  ;;  %v706_v27 = vsel %vm554_vm0, %v1435_v19, 0.0 }
 0x114   : > { %v1156_v26 = vpop.f32.mrb[15].mxu0  ;;  %v707_v32 = vadd.f32 %v706_v27, %v705_v25 }
 0x115   : > { %v626_v28 = vadd.f32 %v1154_v23, %v1042_v46  ;;  %v1157_v29 = vadd.f32 %v1156_v26, %v1155_v24 }
 0x117   : > { %v691_v30 = vadd.f32 %v1181_v42, %v626_v28  ;;  %v629_v31 = vadd.f32 %v1157_v29, %v1042_v46  ;;  %v798_v42 = vld [vmem:[%s1487_s6] sm:$0xff] }
 0x118   : > { %v723_v46 = vld [vmem:[%s1486_s5] sm:$0x1] }
 0x119   : > { %v708_v33 = vsel %vm554_vm0, %v691_v30, 0.0  ;;  %v694_v34 = vadd.f32 %v1182_v47, %v629_v31 }
 0x11a   : > { %v709_v35 = vadd.f32 %v708_v33, %v707_v32 }
 0x11b   : > { %v710_v36 = vsel %vm554_vm0, %v694_v34, 0.0 }
 0x11c   : > { %v711_v38 = vadd.f32 %v710_v36, %v709_v35 }
 0x11e   : > { %v712_v39 = vrot.slane %v711_v38, 4 }
 0x120   : > { %v713_v40 = vadd.f32 %v712_v39, %v711_v38 }
 0x122   : > { %v714_v41 = vrot.slane %v713_v40, 2 }
 0x124   : > { %v715_v43 = vadd.f32 %v714_v41, %v713_v40 }
 0x126   : > { %v716_v44 = vrot.slane %v715_v43, 1 }
 0x128   : > { %v717_v45 = vadd.f32 %v716_v44, %v715_v43 }
 0x12a   : > { %v718_v48 = vmul.f32 0.015625, %v717_v45 }
 0x12c   : > { %1192 = vmatmul.mubr.msk.f32.vlgmr.msra.gmra.mrb[8].mxu1 %vm554_vm0, %v718_v48 }
 0x12d   : > { %1196 = vmatprep.mubr.msk.f32.mxu1 %vm1264_vm1, %v1265_v37  ;;  %1195 = vmatpush3.msra.mxu1 %v798_v42  ;;  %v799_v37 = vld [vmem:[%s1488_s7] sm:$0x1] }
 0x1ff   : > { %v793_v47 = vpop.f32.mrb[8].mxu1 }
 0x200   : > { %v794_v49 = vadd.f32 %v793_v47, %v723_v46  ;;  %v1193_v50 = vpop.f32.mrb[9].mxu1 }
 0x202   : > { %v797_v51 = vmax.f32 %v794_v49, 0.0 }
 0x204   : > { %1197 = vmatmul.mubr.msk.f32.vlgmr.msra.gmra.mrb[10].mxu1 %vm800_vm2, %v797_v51 }
 0x2d7   : > { %v870_v52 = vpop.f32.mrb[10].mxu1 }
 0x2d8   : > { %v871_v53 = vadd.f32 %v870_v52, %v799_v37  ;;  %v1198_v55 = vpop.f32.mrb[11].mxu1 }
 0x2da   : > { %v874_v57 = vsub.f32 0.0, %v871_v53 }
 0x2dc   : > { %v875_v58 = vmul.f32 1.442695, %v874_v57 }
 0x2de   : > { %1251 = vpow2.f32 %v875_v58 }
 0x2e8   : > { %v1252_v59 = vpop.eup %1251 }
 0x2e9   : > { %v877_v60 = vadd.f32 1.0, %v1252_v59 }
 0x2eb   : > { %1253 = vrcp.f32 %v877_v60 }
 0x2f5   : > { %v1254_v6 = vpop.eup %1253 }
 0x2f6   : > { %v883_v9 = vrot.slane %v1254_v6, %v882_v63 }
 0x2f8   : > { %v884_v17 = vmul.f32 %v883_v9, %v1415_v54  ;;  %v885_v18 = vmul.f32 %v883_v9, %v1417_v56  ;;  %v886_v20 = vmul.f32 %v883_v9, %v1419_v0  ;;  %v887_v21 = vmul.f32 %v883_v9, %v1423_v3 }
 0x2f9   : > { %v888_v22 = vmul.f32 %v883_v9, %v1429_v15  ;;  %v889_v23 = vmul.f32 %v883_v9, %v1435_v19  ;;  %v890_v24 = vmul.f32 %v883_v9, %v691_v30  ;;  %v891_v25 = vmul.f32 %v883_v9, %v694_v34 }
 0x2fa   : > { %v908_v26 = vadd.f32 %v1101_v7, %v884_v17  ;;  %v909_v27 = vadd.f32 %v1102_v8, %v885_v18  ;;  %v910_v28 = vadd.f32 %v1105_v10, %v886_v20  ;;  %v911_v29 = vadd.f32 %v1106_v11, %v887_v21 }
 0x2fb   : > { %v912_v31 = vadd.f32 %v1109_v12, %v888_v22  ;;  %v913_v32 = vadd.f32 %v1110_v13, %v889_v23  ;;  %v914_v54 = vadd.f32 %v1113_v14, %v890_v24  ;;  %v915_v33 = vadd.f32 %v1114_v16, %v891_v25 }
 0x2fc   : > { %v916_v56 = vmax.f32 %v908_v26, 0.0  ;;  %v917_v35 = vmax.f32 %v909_v27, 0.0  ;;  %v918_v0 = vmax.f32 %v910_v28, 0.0  ;;  %v919_v36 = vmax.f32 %v911_v29, 0.0 }
 0x2fd   : > { %v920_v3 = vmax.f32 %v912_v31, 0.0  ;;  %v921_v15 = vmax.f32 %v913_v32, 0.0  ;;  %v922_v19 = vmax.f32 %v914_v54, 0.0  ;;  %v923_v30 = vmax.f32 %v915_v33, 0.0 }
 0x2fe   : > { %v1091_v34 = vpack.c.bf16 %v916_v56, %v916_v56  ;;  %v1092_v38 = vpack.c.bf16 %v917_v35, %v917_v35  ;;  %v1093_v39 = vpack.c.bf16 %v918_v0, %v918_v0  ;;  %v1094_v40 = vpack.c.bf16 %v919_v36, %v919_v36 }
 0x2ff   : > { %v1095_v41 = vpack.c.bf16 %v920_v3, %v920_v3  ;;  %v1096_v43 = vpack.c.bf16 %v921_v15, %v921_v15  ;;  %v1097_v44 = vpack.c.bf16 %v922_v19, %v922_v19  ;;  %v1098_v45 = vpack.c.bf16 %v923_v30, %v923_v30 }
 0x300   : > { %957 = vst.msk [vmem:[%s325_s9] sm:$0xf] %vm956_vm3, %v1091_v34  ;;  %958 = vst.msk [vmem:[%s325_s9 + $0x4] sm:$0xf] %vm956_vm3, %v1092_v38 }
 0x301   : > { %959 = vst.msk [vmem:[%s325_s9 + $0x8] sm:$0xf] %vm956_vm3, %v1093_v39  ;;  %960 = vst.msk [vmem:[%s325_s9 + $0xc] sm:$0xf] %vm956_vm3, %v1094_v40 }
 0x302   : > { %961 = vst.msk [vmem:[%s325_s9 + $0x10] sm:$0xf] %vm956_vm3, %v1095_v41  ;;  %962 = vst.msk [vmem:[%s325_s9 + $0x14] sm:$0xf] %vm956_vm3, %v1096_v43 }
 0x303   : > { %963 = vst.msk [vmem:[%s325_s9 + $0x18] sm:$0xf] %vm956_vm3, %v1097_v44  ;;  %964 = vst.msk [vmem:[%s325_s9 + $0x1c] sm:$0xf] %vm956_vm3, %v1098_v45 }
 0x304 PF: > { %s18_s27 = sadd.s32 1, %s1261_s27  }
 0x305   : > { %p15_p4 = scmp.ge.s32.totalorder %s18_s27, 4  }
 0x307   :  { %17 = sbr.rel (!%p15_p4) target bundleno = 1 (0x1), region = 85 }

// kernel: _lambda_.17
= control target key start
LH: loop header
LB: loop body
LE: loop exit
PB: predicated region body
PF: predicated region fallthrough
CT: control target
= control target key end

     0   :  { %vm204_vm0 = vcmask 261120   ;;  %vm329_vm1 = vcmask 519168   ;;  %s550_s1 = inlined_call_operand.vmem [shape: bf16[288,64], index: 1, kind: input, shape index: {}]   ;;  %s551_s0 = inlined_call_operand.vmem [shape: bf16[32,288], index: 0, kind: input, shape index: {}]   ;;  %s552_s2 = inlined_call_operand.vmem [shape: f32[1,64], index: 2, kind: input, shape index: {}]   ;;  %s553_s3 = inlined_call_operand.vmem [shape: bf16[32,64], index: 3, kind: output, shape index: {}]  }
   0x1   :  { %v413_v0 = vld [vmem:[%s550_s1 + $0x40] sm:$0xff]   ;;  %v415_v2 = vld [vmem:[%s550_s1 + $0x48] sm:$0xff]   ;;  %v417_v4 = vld [vmem:[%s550_s1 + $0x50] sm:$0xff]  }
   0x2   :  { %v414_v1 = vld [vmem:[%s550_s1] sm:$0xff]   ;;  %373 = vmatprep.subr.bf16.mxu0 %v413_v0  ;;  %v416_v3 = vld [vmem:[%s550_s1 + $0x8] sm:$0xff]   ;;  %v418_v5 = vld [vmem:[%s550_s1 + $0x10] sm:$0xff]  }
   0x3   :  { %374 = vmatpush3.bf16.msra.mxu0 %v414_v1  ;;  %v419_v6 = vld [vmem:[%s550_s1 + $0x58] sm:$0xff]   ;;  %v421_v8 = vld [vmem:[%s550_s1 + $0x60] sm:$0xff]   ;;  %v423_v11 = vld [vmem:[%s550_s1 + $0x68] sm:$0xff]  }
   0x4   :  { %375 = vmatprep.subr.bf16.mxu0 %v415_v2  ;;  %v420_v7 = vld [vmem:[%s550_s1 + $0x18] sm:$0xff]   ;;  %v422_v9 = vld [vmem:[%s550_s1 + $0x20] sm:$0xff]   ;;  %v424_v12 = vld [vmem:[%s550_s1 + $0x28] sm:$0xff]  }
   0x5   :  { %v428_v10 = vld [vmem:[%s550_s1 + $0x80] sm:$0xff]   ;;  %v425_v13 = vld [vmem:[%s550_s1 + $0x70] sm:$0xff]   ;;  %v433_v15 = vld [vmem:[%s550_s1 + $0x88] sm:$0xff]  }
   0x6   :  { %405 = vmatprep.subr.bf16.mxu1 %v428_v10  ;;  %v432_v14 = vld [vmem:[%s551_s0 + $0x4] ss:$12 sps:$4 sm:$0xff]   ;;  %v434_v16 = vld [vmem:[%s551_s0 + $0x8] ss:$12 sps:$4 sm:$0xff]   ;;  %v435_v17 = vld [vmem:[%s551_s0 + $0x20] ss:$12 sps:$4 sm:$0xff]  }
   0x7   :  { %376 = vmatpush3.bf16.msra.mxu0 %v416_v3  ;;  %406 = vmatpush3.bf16.msra.mxu1 %v428_v10  ;;  %v426_v18 = vld [vmem:[%s550_s1 + $0x30] sm:$0xff]   ;;  %v427_v19 = vld [vmem:[%s550_s1 + $0x78] sm:$0xff]   ;;  %v430_v21 = vld [vmem:[%s551_s0] ss:$12 sps:$4 sm:$0xff]  }
   0x8   :  { %377 = vmatprep.subr.bf16.mxu0 %v417_v4  ;;  %243 = vmatprep.mubr.bf16.mxu0 %v432_v14  ;;  %v429_v20 = vld [vmem:[%s550_s1 + $0x38] sm:$0xff]   ;;  %v338_v30 = vld [vmem:[%s552_s2] ss:$0 sm:$0xff] }
   0x9   :  { %407 = vmatprep.subr.bf16.mxu1 %v433_v15  ;;  %409 = vmatprep.mubr.msk.bf16.mxu1 %vm204_vm0, %v434_v16  ;;  %v436_v22 = vld [vmem:[%s551_s0 + $0x1c] ss:$12 sps:$4 sm:$0xff]   ;;  %v438_v23 = vld [vmem:[%s551_s0 + $0x18] ss:$12 sps:$4 sm:$0xff]  }
   0xb   :  { %378 = vmatpush3.bf16.msra.mxu0 %v418_v5  ;;  %408 = vmatpush3.bf16.msra.mxu1 %v433_v15 }
   0xc   :  { %379 = vmatprep.subr.bf16.mxu0 %v419_v6 }
   0xe   :  { %410 = vmatmul.mubr.msk.bf16.vlgmr.msra.gmra.mrb[0].mxu1 %vm204_vm0, %v435_v17 }
   0xf   :  { %380 = vmatpush3.bf16.msra.mxu0 %v420_v7 }
  0x10   :  { %381 = vmatprep.subr.bf16.mxu0 %v421_v8 }
  0x13   :  { %382 = vmatpush3.bf16.msra.mxu0 %v422_v9 }
  0x14   :  { %383 = vmatprep.subr.bf16.mxu0 %v423_v11 }
  0x17   :  { %384 = vmatpush3.bf16.msra.mxu0 %v424_v12 }
  0x18   :  { %385 = vmatprep.subr.bf16.mxu0 %v425_v13 }
  0x1b   :  { %386 = vmatpush3.bf16.msra.mxu0 %v426_v18 }
  0x1c   :  { %387 = vmatprep.subr.bf16.mxu0 %v427_v19 }
  0x1f   :  { %388 = vmatpush3.bf16.msra.mxu0 %v429_v20 }
  0x22   :  { %244 = vmatmul.mubr.bf16.vlgmr.msra.gmra.mrb[0].mxu0 %v430_v21 }
  0x23   :  { %251 = vmatprep.mubr.bf16.mxu0 %v436_v22 }
  0x2a   :  { %252 = vmatmul.mubr.bf16.gmra.mrb[4].mxu0 %v438_v23 }
  0xe1   :  { %v411_v24 = vpop.f32.mrb[0].mxu1 }
  0xe2   :  { %v294_v25 = vpop.f32.mrb[1].mxu1 }
  0xe3   :  { %v412_v26 = vpop.f32.mrb[2].mxu1 }
  0xe4   :  { %v297_v27 = vpop.f32.mrb[3].mxu1 }
  0xf5   :  { %v389_v28 = vpop.f32.mrb[0].mxu0 }
  0xf6   :  { %v390_v29 = vpop.f32.mrb[1].mxu0 }
  0xf7   :  { %v391_v31 = vadd.f32 %v390_v29, %v389_v28  ;;  %v392_v32 = vpop.f32.mrb[2].mxu0 }
  0xf8   :  { %v393_v33 = vpop.f32.mrb[3].mxu0 }
  0xf9   :  { %v394_v34 = vadd.f32 %v393_v33, %v392_v32  ;;  %v246_v35 = vadd.f32 %v391_v31, %v338_v30 }
  0xfb   :  { %v295_v36 = vadd.f32 %v294_v25, %v246_v35  ;;  %v249_v37 = vadd.f32 %v394_v34, %v338_v30 }
  0xfd   :  { %v309_v38 = vmax.f32 %v295_v36, 0.0  ;;  %v298_v39 = vadd.f32 %v297_v27, %v249_v37  ;;  %v395_v40 = vpop.f32.mrb[4].mxu0 }
  0xfe   :  { %v396_v41 = vpop.f32.mrb[5].mxu0 }
  0xff   :  { %v369_v42 = vpack.c.bf16 %v309_v38, %v309_v38  ;;  %v310_v43 = vmax.f32 %v298_v39, 0.0  ;;  %v397_v44 = vadd.f32 %v396_v41, %v395_v40  ;;  %v398_v45 = vpop.f32.mrb[6].mxu0 }
 0x100   :  { %v399_v46 = vpop.f32.mrb[7].mxu0 }
 0x101   :  { %330 = vst.msk [vmem:[%s553_s3] sm:$0xf] %vm329_vm1, %v369_v42  ;;  %v370_v47 = vpack.c.bf16 %v310_v43, %v310_v43  ;;  %v254_v48 = vadd.f32 %v397_v44, %v338_v30  ;;  %v400_v49 = vadd.f32 %v399_v46, %v398_v45 }
 0x103   :  { %331 = vst.msk [vmem:[%s553_s3 + $0x4] sm:$0xf] %vm329_vm1, %v370_v47  ;;  %v303_v50 = vadd.f32 %v411_v24, %v254_v48  ;;  %v257_v51 = vadd.f32 %v400_v49, %v338_v30 }
 0x105   :  { %v311_v52 = vmax.f32 %v303_v50, 0.0  ;;  %v306_v53 = vadd.f32 %v412_v26, %v257_v51 }
 0x107   :  { %v371_v54 = vpack.c.bf16 %v311_v52, %v311_v52  ;;  %v312_v55 = vmax.f32 %v306_v53, 0.0 }
 0x109   :  { %332 = vst.msk [vmem:[%s553_s3 + $0x8] sm:$0xf] %vm329_vm1, %v371_v54  ;;  %v372_v56 = vpack.c.bf16 %v312_v55, %v312_v55 }
 0x10b   :  { %333 = vst.msk [vmem:[%s553_s3 + $0xc] sm:$0xf] %vm329_vm1, %v372_v56 }

// kernel: _lambda_.16
= control target key start
LH: loop header
LB: loop body
LE: loop exit
PB: predicated region body
PF: predicated region fallthrough
CT: control target
= control target key end

     0   :  { %vm52_vm0 = vcmask 261120   ;;  %vm124_vm1 = vcmask 519168   ;;  %s211_s1 = inlined_call_operand.vmem [shape: bf16[32,64], index: 1, kind: input, shape index: {}]   ;;  %s212_s0 = inlined_call_operand.vmem [shape: bf16[32,32], index: 0, kind: input, shape index: {}]   ;;  %s213_s2 = inlined_call_operand.vmem [shape: f32[1,64], index: 2, kind: input, shape index: {}]   ;;  %s214_s3 = inlined_call_operand.vmem [shape: bf16[32,64], index: 3, kind: output, shape index: {}]  }
   0x1   :  { %v160_v0 = vld [vmem:[%s211_s1] sm:$0xff]   ;;  %v161_v1 = vld [vmem:[%s211_s1 + $0x8] sm:$0xff]  }
   0x2   :  { %152 = vmatprep.subr.bf16.mxu0 %v160_v0  ;;  %v162_v2 = vld [vmem:[%s212_s0] sm:$0xff]   ;;  %v163_v3 = vld [vmem:[%s212_s0 + $0x8] sm:$0xff]  }
   0x3   :  { %153 = vmatpush3.bf16.msra.mxu0 %v160_v0  ;;  %156 = vmatprep.mubr.msk.bf16.mxu0 %vm52_vm0, %v162_v2  ;;  %v133_v4 = vld [vmem:[%s213_s2] ss:$0 sm:$0xff] }
   0x4   :  { %154 = vmatprep.subr.bf16.mxu0 %v161_v1 }
   0x7   :  { %155 = vmatpush3.bf16.msra.mxu0 %v161_v1 }
   0xa   :  { %157 = vmatmul.mubr.msk.bf16.vlgmr.msra.gmra.mrb[0].mxu0 %vm52_vm0, %v163_v3 }
  0xdd   :  { %v158_v5 = vpop.f32.mrb[0].mxu0 }
  0xde   :  { %v102_v6 = vadd.f32 %v158_v5, %v133_v4  ;;  %v93_v7 = vpop.f32.mrb[1].mxu0 }
  0xdf   :  { %v94_v8 = vadd.f32 %v133_v4, %v93_v7  ;;  %v159_v9 = vpop.f32.mrb[2].mxu0 }
  0xe0   :  { %v146_v10 = vpack.c.bf16 %v102_v6, %v102_v6  ;;  %v105_v11 = vadd.f32 %v159_v9, %v133_v4  ;;  %v96_v12 = vpop.f32.mrb[3].mxu0 }
  0xe1   :  { %v144_v13 = vpack.c.bf16 %v94_v8, %v94_v8  ;;  %v97_v14 = vadd.f32 %v133_v4, %v96_v12 }
  0xe2   :  { %127 = vst.msk [vmem:[%s214_s3 + $0x8] sm:$0xf] %vm124_vm1, %v146_v10  ;;  %v147_v15 = vpack.c.bf16 %v105_v11, %v105_v11 }
  0xe3   :  { %125 = vst.msk [vmem:[%s214_s3] sm:$0xf] %vm124_vm1, %v144_v13  ;;  %v145_v16 = vpack.c.bf16 %v97_v14, %v97_v14 }
  0xe4   :  { %128 = vst.msk [vmem:[%s214_s3 + $0xc] sm:$0xf] %vm124_vm1, %v147_v15 }
  0xe5   :  { %126 = vst.msk [vmem:[%s214_s3 + $0x4] sm:$0xf] %vm124_vm1, %v145_v16 }

// kernel: _lambda_.19
= control target key start
LH: loop header
LB: loop body
LE: loop exit
PB: predicated region body
PF: predicated region fallthrough
CT: control target
= control target key end

     0   :  { %v230_v3 = vmov 0.0|0.0   ;;  %vm231_vm0 = vmmov 0   ;;  %v232_v6 = vmov 0.0   ;;  %vm23_vm1 = vcmask 523264   ;;  %s304_s0 = inlined_call_operand.vmem [shape: bf16[2,16,64], index: 0, kind: input, shape index: {}]   ;;  %s305_s1 = inlined_call_operand.vmem [shape: f32[64,10], index: 1, kind: input, shape index: {}]   ;;  %s306_s2 = inlined_call_operand.vmem [shape: f32[1,10], index: 2, kind: input, shape index: {}]   ;;  %s307_s3 = inlined_call_operand.hbm [shape: f32[2,10], index: 3, kind: output, shape index: {}]  }
   0x1   :  { %v44_v0 = vld [vmem:[%s305_s1] sm:$0xff]  ;;  %v45_v1 = vld [vmem:[%s305_s1 + $0x8] sm:$0xff]  ;;  %v46_v2 = vld [vmem:[%s305_s1 + $0x10] sm:$0xff]  ;;  %190 = vmatprep.subr.bf16.mxu0 %v230_v3  ;;  %187 = vmatprep.mubr.msk.f32.mxu0 %vm231_vm0, %v232_v6 }
   0x2   :  { %v191_v4 = vpack.c.bf16 %v45_v1, %v44_v0  ;;  %v47_v5 = vld [vmem:[%s305_s1 + $0x18] sm:$0xff]  ;;  %v154_v7 = vld [vmem:[%s304_s0] sm:$0xff]   ;;  %v161_v11 = vld [vmem:[%s304_s0 + $0x8] sm:$0xff]  }
   0x3   :  { %v194_v8 = vpack.c.bf16 %v47_v5, %v46_v2  ;;  %v155_v9 = vunpack.c.l.bf16 %v154_v7  ;;  %v156_v10 = vunpack.c.h.bf16 %v154_v7 }
   0x4   :  { %192 = vmatpush3.bf16.msra.mxu0 %v191_v4 }
   0x5   :  { %8 = vsyncpa [#allocation3], 0  ;;  %193 = vmatprep.subr.bf16.mxu0 %v230_v3  ;;  %v48_v12 = vld [vmem:[%s305_s1 + $0x20] sm:$0xff]  ;;  %v49_v13 = vld [vmem:[%s305_s1 + $0x28] sm:$0xff]  ;;  %v159_v14 = vunpack.c.l.bf16 %v161_v11  ;;  %v160_v15 = vunpack.c.h.bf16 %v161_v11  ;;  %v24_v16 = vsel %vm23_vm1, %v155_v9, 0.0  ;;  %v25_v17 = vsel %vm23_vm1, %v156_v10, 0.0 }
   0x6   :  { %v26_v18 = vadd.f32 %v25_v17, %v24_v16  ;;  %v197_v21 = vpack.c.bf16 %v49_v13, %v48_v12  ;;  %v50_v23 = vld [vmem:[%s305_s1 + $0x30] sm:$0xff]  ;;  %v51_v24 = vld [vmem:[%s305_s1 + $0x38] sm:$0xff]  ;;  %vm61_vm2 = vcmask 1041409   ;;  %v151_v41 = vld [vmem:[%s306_s2] ss:$0 sm:$0xff]  ;;  %s233_s5 = smov [#allocation2]  }
   0x7   :  { %v33_v19 = vsel %vm23_vm1, %v159_v14, 0.0  ;;  %v34_v20 = vsel %vm23_vm1, %v160_v15, 0.0  ;;  %v200_v28 = vpack.c.bf16 %v51_v24, %v50_v23  ;;  %s143_s6 = sshll.u32 %s233_s5, 4  ;;  %vm135_vm3 = vcmask 74752   ;;  %s144_s6 = int_to_ptr.vmem [resolvable:$true] %s143_s6 }
   0x8   :  { %195 = vmatpush3.bf16.msra.mxu0 %v194_v8  ;;  %v35_v22 = vadd.f32 %v34_v20, %v33_v19  ;;  %v27_v25 = vrot.slane %v26_v18, 4  ;;  %s206_s7 = scalar_lea.vmem %s144_s6, 32  ;;  %p211_p1 = scmp.lt.s32.totalorder %s144_s6, %s144_s6 }
   0x9   :  { %196 = vmatprep.subr.bf16.mxu0 %v230_v3  ;;  %p207_p0 = scmp.ne.s32.totalorder %s144_s6, %s206_s7  ;;  %p212_p2 = scmp.lt.s32.totalorder %s206_s7, %s206_s7 }
   0xa   :  { %v36_v26 = vrot.slane %v35_v22, 4  ;;  %v28_v27 = vadd.f32 %v27_v25, %v26_v18 }
   0xb   :  { %p213_p3 = por %p212_p2, %p211_p1 }
   0xc   :  { %198 = vmatpush3.bf16.msra.mxu0 %v197_v21  ;;  %v37_v29 = vadd.f32 %v36_v26, %v35_v22  ;;  %v29_v30 = vrot.slane %v28_v27, 2 }
   0xd   :  { %199 = vmatprep.subr.bf16.mxu0 %v230_v3  ;;  %p214_p4 = pnand %p213_p3, %p207_p0 }
   0xe   :  { %v38_v31 = vrot.slane %v37_v29, 2  ;;  %v30_v32 = vadd.f32 %v29_v30, %v28_v27 }
  0x10   :  { %201 = vmatpush3.bf16.msra.mxu0 %v200_v28  ;;  %v39_v33 = vadd.f32 %v38_v31, %v37_v29  ;;  %v31_v34 = vrot.slane %v30_v32, 1 }
  0x12   :  { %v40_v35 = vrot.slane %v39_v33, 1  ;;  %v32_v36 = vadd.f32 %v31_v34, %v30_v32 }
  0x14   :  { %v41_v37 = vadd.f32 %v40_v35, %v39_v33  ;;  %v42_v38 = vmul.f32 0.0625, %v32_v36 }
  0x16   :  { %v43_v39 = vmul.f32 0.0625, %v41_v37 }
  0x18   :  { %v62_v40 = vsel %vm61_vm2, %v43_v39, %v42_v38 }
  0x19   :  { %188 = vmatmul.mubr.msk.f32.vlgmr.msra.gmra.mrb[0].mxu0 %vm23_vm1, %v62_v40 }
  0xec   :  { %v131_v42 = vpop.f32.mrb[0].mxu0 }
  0xed   :  { %v132_v43 = vadd.f32 %v151_v41, %v131_v42  ;;  %v189_v44 = vpop.f32.mrb[1].mxu0 }
  0xef   :  { %136 = vst.msk [vmem:[#allocation2] sm:$0x3] %vm135_vm3, %v132_v43 }
  0xf0   :  { %217 = shalt.err (!%p214_p4)
}
  0xf1   :  { %s218_s10 = scalar_lea.hbm %s307_s3, 32 }
  0xf2   :  { %p219_p5 = scmp.ne.s32.totalorder %s307_s3, %s218_s10  ;;  %p222_p6 = scmp.lt.u32.totalorder %s218_s10, %s307_s3 }
  0xf4   :  { %p224_p7 = pnand %p222_p6, %p219_p5 }
  0xf6   :  { %227 = shalt.err (!%p224_p7)
}
  0xf7   :  { %146 = dma.vmem_to_hbm [thread:$0]  %s144_s6, 32, %s307_s3, [#allocation3]  }
  0xf8   :  { %228 = dma.done.wait [#allocation3], 32  }
  0xf9   :  { %229 = vsyncadd [#allocation3], 4294967264 }
  0xfa   :  { %150 = vsyncpa [#allocation3], 1 }

// kernel: _lambda_.18
= control target key start
LH: loop header
LB: loop body
LE: loop exit
PB: predicated region body
PF: predicated region fallthrough
CT: control target
= control target key end

     0   :  { %s1344_s27 = smov 0   ;;  %s1540_s0 = inlined_call_operand.vmem [shape: bf16[2,16,576], index: 0, kind: input, shape index: {}]   ;;  %s1541_s1 = inlined_call_operand.vmem [shape: bf16[576,64], index: 1, kind: input, shape index: {}]   ;;  %s1542_s2 = inlined_call_operand.vmem [shape: f32[1,64], index: 2, kind: input, shape index: {}]   ;;  %s1543_s3 = inlined_call_operand.vmem [shape: bf16[2,16,64], index: 3, kind: input, shape index: {}]   ;;  %s1544_s4 = inlined_call_operand.vmem [shape: f32[64,16], index: 4, kind: input, shape index: {}]   ;;  %s1545_s5 = inlined_call_operand.vmem [shape: f32[1,16], index: 5, kind: input, shape index: {}]   ;;  %s1546_s6 = inlined_call_operand.vmem [shape: f32[16,64], index: 6, kind: input, shape index: {}]   ;;  %s1547_s7 = inlined_call_operand.vmem [shape: f32[1,64], index: 7, kind: input, shape index: {}]   ;;  %s1548_s8 = inlined_call_operand.vmem [shape: bf16[2,16,64], index: 8, kind: output, shape index: {}]  }
   0x1 LB: > { %s1048_s28 = sadd.s32 4294967295, %s1294_s27   ;;  %p1052_p0 = scmp.ge.s32.totalorder %s1294_s27, 1  ;;  %s1294_s27 = sphi %s1344_s27, %s18_s27  }
   0x2   : > { %p272_p1 = scmp.lt.s32.totalorder %s1294_s27, 3 }
   0x4   : > { %p273_p2 = pnand %p1052_p0, %p272_p1 }
   0x5   : > { %v1241_v0 = vld [vmem:[%s1541_s1 + $0x40] sm:$0xff] (!%p273_p2)   ;;  %v1245_v4 = vld [vmem:[%s1541_s1 + $0x48] sm:$0xff] (!%p273_p2)   ;;  %v1249_v8 = vld [vmem:[%s1541_s1 + $0x50] sm:$0xff] (!%p273_p2)   ;;  %p311_p3 = scmp.lt.s32.totalorder (!%p273_p2), %s1048_s28, 1  ;;  %v1296_v33 = vmov (!%p273_p2), 0.0   ;;  %vm1297_vm0 = vmmov (!%p273_p2), 0  }
   0x6   : > { %276 = sbr.rel (%p273_p2) target bundleno = 756 (0x2f4), region = 52  ;;  %v1242_v1 = vld [vmem:[%s1541_s1] sm:$0xff] (!%p273_p2)   ;;  %1115 = vmatprep.subr.bf16.mxu0 (!%p273_p2), %v1241_v0  ;;  %v1246_v5 = vld [vmem:[%s1541_s1 + $0x8] sm:$0xff] (!%p273_p2)   ;;  %v1250_v9 = vld [vmem:[%s1541_s1 + $0x10] sm:$0xff] (!%p273_p2)   ;;  %vm653_vm1 = vcmask (!%p273_p2), 523264   ;;  %v1298_v45 = vmov (!%p273_p2), 0.0|0.0  }
   0x7   : > { %v1243_v2 = vld [vmem:[%s1541_s1 + $0xc0] sm:$0xff] (!%p273_p2)   ;;  %1116 = vmatpush3.bf16.msra.mxu0 (!%p273_p2), %v1242_v1  ;;  %v1247_v6 = vld [vmem:[%s1541_s1 + $0xc8] sm:$0xff] (!%p273_p2)   ;;  %v1251_v10 = vld [vmem:[%s1541_s1 + $0xd0] sm:$0xff] (!%p273_p2)   ;;  %vm876_vm2 = vcmask (!%p273_p2), 130048   ;;  %vm978_vm3 = vcmask (!%p273_p2), 519168  }
   0x8   : > { %v1244_v3 = vld [vmem:[%s1541_s1 + $0x80] sm:$0xff] (!%p273_p2)   ;;  %1137 = vmatprep.subr.bf16.mxu1 (!%p273_p2), %v1243_v2  ;;  %1117 = vmatprep.subr.bf16.mxu0 (!%p273_p2), %v1245_v4  ;;  %v1248_v7 = vld [vmem:[%s1541_s1 + $0x88] sm:$0xff] (!%p273_p2)   ;;  %v1252_v11 = vld [vmem:[%s1541_s1 + $0x90] sm:$0xff] (!%p273_p2)  }
   0x9   : > { %1138 = vmatpush3.bf16.msra.mxu1 (!%p273_p2), %v1244_v3  ;;  %v1253_v12 = vld [vmem:[%s1541_s1 + $0x58] sm:$0xff] (!%p273_p2)   ;;  %v1257_v16 = vld [vmem:[%s1541_s1 + $0x60] sm:$0xff] (!%p273_p2)   ;;  %v1261_v20 = vld [vmem:[%s1541_s1 + $0x68] sm:$0xff] (!%p273_p2)  }
   0xa   : > { %1139 = vmatprep.subr.bf16.mxu1 (!%p273_p2), %v1247_v6  ;;  %v1254_v13 = vld [vmem:[%s1541_s1 + $0x18] sm:$0xff] (!%p273_p2)   ;;  %v1258_v17 = vld [vmem:[%s1541_s1 + $0x20] sm:$0xff] (!%p273_p2)   ;;  %v1262_v21 = vld [vmem:[%s1541_s1 + $0x28] sm:$0xff] (!%p273_p2)  }
   0xb   : > { %1118 = vmatpush3.bf16.msra.mxu0 (!%p273_p2), %v1246_v5  ;;  %v1255_v14 = vld [vmem:[%s1541_s1 + $0xd8] sm:$0xff] (!%p273_p2)   ;;  %v1259_v18 = vld [vmem:[%s1541_s1 + $0xe0] sm:$0xff] (!%p273_p2)   ;;  %v1263_v22 = vld [vmem:[%s1541_s1 + $0xe8] sm:$0xff] (!%p273_p2)  }
   0xc   : > { %1119 = vmatprep.subr.bf16.mxu0 (!%p273_p2), %v1249_v8  ;;  %v1256_v15 = vld [vmem:[%s1541_s1 + $0x98] sm:$0xff] (!%p273_p2)   ;;  %v1260_v19 = vld [vmem:[%s1541_s1 + $0xa0] sm:$0xff] (!%p273_p2)   ;;  %v1264_v23 = vld [vmem:[%s1541_s1 + $0xa8] sm:$0xff] (!%p273_p2)  }
   0xd   : > { %1140 = vmatpush3.bf16.msra.mxu1 %v1248_v7  ;;  %s1550_s28 = smov (!%p311_p3, %s1048_s28), 1  ;;  %v1265_v24 = vld [vmem:[%s1541_s1 + $0x70] sm:$0xff]   ;;  %v1269_v28 = vld [vmem:[%s1541_s1 + $0x78] sm:$0xff]   ;;  %v1279_v37 = vld [vmem:[%s1541_s1 + $0x100] sm:$0xff]  }
   0xe   : > { %1141 = vmatprep.subr.bf16.mxu1 %v1251_v10  ;;  %s1229_s17 = smul.u32 40, %s1550_s28  ;;  %v1266_v25 = vld [vmem:[%s1541_s1 + $0x30] sm:$0xff]   ;;  %v1270_v29 = vld [vmem:[%s1541_s1 + $0x38] sm:$0xff]   ;;  %v1280_v38 = vld [vmem:[%s1541_s1 + $0x108] sm:$0xff]  }
   0xf   : > { %1120 = vmatpush3.bf16.msra.mxu0 %v1250_v9  ;;  %v1267_v26 = vld [vmem:[%s1541_s1 + $0xf0] sm:$0xff]   ;;  %v1271_v30 = vld [vmem:[%s1541_s1 + $0xf8] sm:$0xff]   ;;  %v790_v42 = vld [vmem:[%s1544_s4] sm:$0xff] }
  0x10   : > { %1121 = vmatprep.subr.bf16.mxu0 %v1253_v12  ;;  %v1268_v27 = vld [vmem:[%s1541_s1 + $0xb0] sm:$0xff]   ;;  %s1449_s30 = scalar_lea.vmem %s1540_s0, %s1229_s17  ;;  %v1275_v34 = vld [vmem:[%s1541_s1 + $0xb8] sm:$0xff]   ;;  %v791_v43 = vld [vmem:[%s1544_s4 + $0x8] sm:$0xff] }
  0x11   : > { %1142 = vmatpush3.bf16.msra.mxu1 %v1252_v11  ;;  %v1272_v31 = vld [vmem:[%s1449_s30] ss:$20 sps:$4 sm:$0xff]   ;;  %v1274_v32 = vld [vmem:[%s1449_s30 + $0x4] ss:$20 sps:$4 sm:$0xff]   ;;  %v1276_v35 = vld [vmem:[%s1449_s30 + $0x8] ss:$20 sps:$4 sm:$0xff]   ;;  %v1215_v44 = vpack.c.bf16 %v791_v43, %v790_v42 }
  0x12   : > { %1143 = vmatprep.subr.bf16.mxu1 %v1255_v14  ;;  %689 = vmatprep.mubr.bf16.mxu0 %v1274_v32  ;;  %v1278_v36 = vld [vmem:[%s1449_s30 + $0xc] ss:$20 sps:$4 sm:$0xff]   ;;  %v1281_v39 = vld [vmem:[%s1541_s1 + $0x110] sm:$0xff]   ;;  %v1282_v40 = vld [vmem:[%s1541_s1 + $0x118] sm:$0xff]  }
  0x13   : > { %1122 = vmatpush3.bf16.msra.mxu0 %v1254_v13  ;;  %730 = vmatprep.mubr.bf16.mxu1 %v1278_v36  ;;  %v1283_v41 = vld [vmem:[%s1449_s30 + $0x10] ss:$20 sps:$4 sm:$0xff]   ;;  %v793_v47 = vld [vmem:[%s1544_s4 + $0x18] sm:$0xff]  ;;  %v795_v50 = vld [vmem:[%s1544_s4 + $0x28] sm:$0xff]  ;;  %s1107_s30 = sshll.u32 %s1550_s28, 3 }
  0x14   : > { %1123 = vmatprep.subr.bf16.mxu0 %v1257_v16  ;;  %v792_v46 = vld [vmem:[%s1544_s4 + $0x10] sm:$0xff]  ;;  %v794_v49 = vld [vmem:[%s1544_s4 + $0x20] sm:$0xff]  ;;  %v797_v53 = vld [vmem:[%s1544_s4 + $0x38] sm:$0xff]  ;;  %s320_s12 = scalar_lea.vmem %s1543_s3, %s1107_s30  ;;  %s325_s28 = scalar_lea.vmem %s1548_s8, %s1107_s30 }
  0x15   : > { %1144 = vmatpush3.bf16.msra.mxu1 %v1256_v15  ;;  %v1218_v48 = vpack.c.bf16 %v793_v47, %v792_v46  ;;  %v1221_v51 = vpack.c.bf16 %v795_v50, %v794_v49  ;;  %v796_v52 = vld [vmem:[%s1544_s4 + $0x30] sm:$0xff]  ;;  %v1058_v56 = vld [vmem:[%s1542_s2] ss:$0 sm:$0xff] }
  0x16   : > { %1145 = vmatprep.subr.bf16.mxu1 %v1259_v18  ;;  %v1224_v54 = vpack.c.bf16 %v797_v53, %v796_v52  ;;  %v875_v32 = vld [vmem:[%s1547_s7] sm:$0x1] }
  0x17   : > { %1124 = vmatpush3.bf16.msra.mxu0 %v1258_v17  ;;  %v1112_v43 = vld [vmem:[%s320_s12] sm:$0xff]  }
  0x18   : > { %1125 = vmatprep.subr.bf16.mxu0 %v1261_v20  ;;  %v1114_v46 = vunpack.c.h.bf16 %v1112_v43 }
  0x19   : > { %1146 = vmatpush3.bf16.msra.mxu1 %v1260_v19 }
  0x1a   : > { %1147 = vmatprep.subr.bf16.mxu1 %v1263_v22 }
  0x1b   : > { %1126 = vmatpush3.bf16.msra.mxu0 %v1262_v21 }
  0x1c   : > { %1127 = vmatprep.subr.bf16.mxu0 %v1265_v24  ;;  %v873_v24 = vld [vmem:[%s1546_s6] sm:$0xff] }
  0x1d   : > { %1148 = vmatpush3.bf16.msra.mxu1 %v1264_v23 }
  0x1e   : > { %1149 = vmatprep.subr.bf16.mxu1 %v1267_v26 }
  0x1f   : > { %1128 = vmatpush3.bf16.msra.mxu0 %v1266_v25  ;;  %v874_v25 = vld [vmem:[%s1546_s6 + $0x8] sm:$0xff] }
  0x20   : > { %1129 = vmatprep.subr.bf16.mxu0 %v1269_v28  ;;  %v1227_v26 = vpack.c.bf16 %v874_v25, %v873_v24 }
  0x21   : > { %1150 = vmatpush3.bf16.msra.mxu1 %v1268_v27  ;;  %v798_v27 = vld [vmem:[%s1545_s5] sm:$0x1] }
  0x22   : > { %1151 = vmatprep.subr.bf16.mxu1 %v1271_v30 }
  0x23   : > { %1130 = vmatpush3.bf16.msra.mxu0 %v1270_v29 }
  0x24   : > { %1176 = vmatprep.subr.bf16.mxu0 %v1296_v33 }
  0x25   : > { %1152 = vmatpush3.bf16.msra.mxu1 %v1275_v34 }
  0x26   : > { %690 = vmatmul.mubr.bf16.vlgmr.msra.gmra.mrb[0].mxu0 %v1272_v31  ;;  %1214 = vmatprep.subr.bf16.mxu1 %v1298_v45 }
  0x27   : > { %1184 = vmatprep.mubr.msk.bf16.mxu0 %vm1297_vm0, %v1296_v33  ;;  %1177 = vmatpush3.bf16.msra.mxu0 %v1279_v37 }
  0x28   : > { %731 = vmatmul.mubr.bf16.vlgmr.msra.gmra.mrb[0].mxu1 %v1276_v35  ;;  %1178 = vmatprep.subr.bf16.mxu0 %v1296_v33 }
  0x29   : > { %1204 = vmatprep.mubr.msk.f32.mxu1 %vm1297_vm0, %v1296_v33  ;;  %1216 = vmatpush3.bf16.msra.mxu1 %v1215_v44 }
  0x2a   : > { %1217 = vmatprep.subr.bf16.mxu1 %v1298_v45 }
  0x2b   : > { %1179 = vmatpush3.bf16.msra.mxu0 %v1280_v38 }
  0x2c   : > { %1180 = vmatprep.subr.bf16.mxu0 %v1296_v33 }
  0x2d   : > { %1219 = vmatpush3.bf16.msra.mxu1 %v1218_v48 }
  0x2e   : > { %1220 = vmatprep.subr.bf16.mxu1 %v1298_v45 }
  0x2f   : > { %1181 = vmatpush3.bf16.msra.mxu0 %v1281_v39 }
  0x30   : > { %1182 = vmatprep.subr.bf16.mxu0 %v1296_v33 }
  0x31   : > { %1222 = vmatpush3.bf16.msra.mxu1 %v1221_v51 }
  0x32   : > { %1223 = vmatprep.subr.bf16.mxu1 %v1298_v45 }
  0x33   : > { %1183 = vmatpush3.bf16.msra.mxu0 %v1282_v40  ;;  %v956_v40 = vlaneseq }
  0x35   : > { %1225 = vmatpush3.bf16.msra.mxu1 %v1224_v54 }
  0x36   : > { %1185 = vmatmul.mubr.msk.bf16.vlgmr.msra.gmra.mrb[4].mxu0 %vm653_vm1, %v1283_v41  ;;  %1226 = vmatprep.subr.bf16.mxu1 %v1298_v45  ;;  %v957_v41 = vshrl.u32 %v956_v40, 7  ;;  %v1113_v45 = vunpack.c.l.bf16 %v1112_v43 }
  0x38   : > { %v958_v42 = vsub.s32 0, %v957_v41 }
  0xf9   : > { %v1131_v55 = vpop.f32.mrb[0].mxu0 }
  0xfa   : > { %v1132_v57 = vpop.f32.mrb[1].mxu0 }
  0xfb   : > { %v1133_v58 = vadd.f32 %v1132_v57, %v1131_v55  ;;  %v1134_v59 = vpop.f32.mrb[2].mxu0  ;;  %v1153_v60 = vpop.f32.mrb[0].mxu1 }
  0xfc   : > { %v1135_v61 = vpop.f32.mrb[3].mxu0  ;;  %v1154_v0 = vpop.f32.mrb[1].mxu1 }
  0xfd   : > { %v692_v62 = vadd.f32 %v1133_v58, %v1058_v56  ;;  %v1136_v63 = vadd.f32 %v1135_v61, %v1134_v59  ;;  %v1155_v1 = vadd.f32 %v1154_v0, %v1153_v60  ;;  %v1156_v2 = vpop.f32.mrb[2].mxu1 }
  0xfe   : > { %v1157_v4 = vpop.f32.mrb[3].mxu1 }
  0xff   : > { %v695_v3 = vadd.f32 %v1136_v63, %v1058_v56  ;;  %v1158_v5 = vadd.f32 %v1157_v4, %v1156_v2  ;;  %v733_v6 = vadd.f32 %v1155_v1, %v692_v62 }
 0x101   : > { %v736_v7 = vadd.f32 %v1158_v5, %v695_v3 }
 0x109   : > { %v773_v8 = vpop.f32.mrb[4].mxu0 }
 0x10a   : > { %v774_v9 = vadd.f32 %v773_v8, %v733_v6  ;;  %v1186_v10 = vpop.f32.mrb[5].mxu0 }
 0x10b   : > { %v776_v11 = vpop.f32.mrb[6].mxu0 }
 0x10c   : > { %v777_v12 = vadd.f32 %v776_v11, %v736_v7  ;;  %v1187_v13 = vpop.f32.mrb[7].mxu0  ;;  %v780_v14 = vsel %vm653_vm1, %v774_v9, 0.0 }
 0x10e   : > { %v781_v15 = vsel %vm653_vm1, %v777_v12, 0.0 }
 0x10f   : > { %v782_v16 = vadd.f32 %v781_v15, %v780_v14 }
 0x111   : > { %v783_v17 = vrot.slane %v782_v16, 4 }
 0x113   : > { %v784_v18 = vadd.f32 %v783_v17, %v782_v16 }
 0x115   : > { %v785_v19 = vrot.slane %v784_v18, 2 }
 0x117   : > { %v786_v20 = vadd.f32 %v785_v19, %v784_v18 }
 0x119   : > { %v787_v21 = vrot.slane %v786_v20, 1 }
 0x11b   : > { %v788_v22 = vadd.f32 %v787_v21, %v786_v20 }
 0x11d   : > { %v789_v23 = vmul.f32 0.0625, %v788_v22 }
 0x11f   : > { %1205 = vmatmul.mubr.msk.f32.vlgmr.msra.gmra.mrb[4].mxu1 %vm653_vm1, %v789_v23 }
 0x120   : > { %1211 = vmatprep.mubr.msk.f32.mxu1 %vm1297_vm0, %v1296_v33  ;;  %1228 = vmatpush3.bf16.msra.mxu1 %v1227_v26 }
 0x1f2   : > { %v868_v28 = vpop.f32.mrb[4].mxu1 }
 0x1f3   : > { %v869_v29 = vadd.f32 %v868_v28, %v798_v27  ;;  %v1206_v30 = vpop.f32.mrb[5].mxu1 }
 0x1f5   : > { %v872_v31 = vmax.f32 %v869_v29, 0.0 }
 0x1f7   : > { %1212 = vmatmul.mubr.msk.f32.vlgmr.msra.gmra.mrb[6].mxu1 %vm876_vm2, %v872_v31 }
 0x2ca   : > { %v946_v33 = vpop.f32.mrb[6].mxu1 }
 0x2cb   : > { %v947_v34 = vadd.f32 %v946_v33, %v875_v32  ;;  %v1213_v35 = vpop.f32.mrb[7].mxu1 }
 0x2cd   : > { %v950_v36 = vsub.f32 0.0, %v947_v34 }
 0x2cf   : > { %v951_v37 = vmul.f32 1.442695, %v950_v36 }
 0x2d1   : > { %1284 = vpow2.f32 %v951_v37 }
 0x2db   : > { %v1285_v38 = vpop.eup %1284 }
 0x2dc   : > { %v953_v39 = vadd.f32 1.0, %v1285_v38 }
 0x2de   : > { %1286 = vrcp.f32 %v953_v39 }
 0x2e8   : > { %v1287_v44 = vpop.eup %1286 }
 0x2e9   : > { %v959_v47 = vrot.slane %v1287_v44, %v958_v42 }
 0x2eb   : > { %v960_v48 = vmul.f32 %v959_v47, %v774_v9  ;;  %v961_v49 = vmul.f32 %v959_v47, %v777_v12 }
 0x2ed   : > { %v966_v50 = vadd.f32 %v1113_v45, %v960_v48  ;;  %v967_v51 = vadd.f32 %v1114_v46, %v961_v49 }
 0x2ef   : > { %v968_v52 = vmax.f32 %v966_v50, 0.0  ;;  %v969_v53 = vmax.f32 %v967_v51, 0.0 }
 0x2f1   : > { %v1109_v54 = vpack.c.bf16 %v968_v52, %v968_v52  ;;  %v1110_v55 = vpack.c.bf16 %v969_v53, %v969_v53 }
 0x2f3   : > { %979 = vst.msk [vmem:[%s325_s28] sm:$0xf] %vm978_vm3, %v1109_v54  ;;  %980 = vst.msk [vmem:[%s325_s28 + $0x4] sm:$0xf] %vm978_vm3, %v1110_v55 }
 0x2f4 PF: > { %s18_s27 = sadd.s32 1, %s1294_s27  }
 0x2f5   : > { %p15_p4 = scmp.ge.s32.totalorder %s18_s27, 4  }
 0x2f7   :  { %17 = sbr.rel (!%p15_p4) target bundleno = 1 (0x1), region = 85 }

</bundles_post_ra>
